<compile_context>
chip_gen: v7x
topology: tpu7x:2x2x1
jax: 0.10.0
libtpu: 0.0.40
codegen_flags: <defaults>
</compile_context>

<pallas_src>
import functools

import numpy as np

import jax
import jax.numpy as jnp
from jax.experimental import pallas as pl
from jax.experimental.pallas import tpu as pltpu

_CLAMP = 1e-7          # torch.clamp(min=1e-07) in the reference stft()


def _round_up(x, m):
    return ((x + m - 1) // m) * m


def _chip_vmem_bytes():
    """Physical VMEM per TensorCore; falls back to the v7x minimum (64 MiB)."""
    try:
        return int(pltpu.get_tpu_info().vmem_capacity_bytes)
    except Exception:
        return 64 * 2**20


# ----------------------------------------------------------------------------
# Pallas kernel
# ----------------------------------------------------------------------------
def _stft_loss_kernel(frames_ref, basis_hbm_ref,      # inputs
                      acc_ref,                        # output (resident / core)
                      basis_vmem, dma_sem):           # scratch
    """Grid: (core, frame-tile); axis 0 "parallel", axis 1 "arbitrary".

      frames_ref    : (2, tm, n_fft)      stacked [pred | targ] frame tile (VMEM)
      basis_hbm_ref : (n_fft, 2*nb_pad)   combined [cos | sin] DFT basis (HBM)
      acc_ref       : (1, 3, 8, nb_pad)   per-core partial sums (resident)
      basis_vmem    : (n_fft, 2*nb_pad)   single-buffered VMEM copy of basis
    """
    i = pl.program_id(1)

    @pl.when(i == 0)
    def _init():
        acc_ref[...] = jnp.zeros_like(acc_ref)
        # Basis is constant over the whole grid: copy it into (per-core) VMEM
        # once instead of letting the pipeline double-buffer it every step.
        cp = pltpu.make_async_copy(basis_hbm_ref, basis_vmem, dma_sem)
        cp.start()
        cp.wait()
        # TODO(synk): split this copy into bin chunks (wait only on the first)
        # or hoist it into a preceding pallas_call returning a DMA semaphore
        # (cross-call future) to hide the one-time i==0 basis stall.

    basis = basis_vmem[...]                    # (n_fft, 2 * nb_pad)
    n_fft = basis.shape[0]
    nb_pad = basis.shape[1] // 2
    tm = frames_ref.shape[1]

    # ONE wide, lane-dense MXU matmul for both signals:
    # rows [0,tm) = predicted, [tm,2tm) = target; cols [0,nb_pad)=Re, rest Im.
    lhs = frames_ref[...].reshape(2 * tm, n_fft)
    spec = jnp.dot(lhs, basis, preferred_element_type=jnp.float32)

    re = spec[:, :nb_pad]
    im = spec[:, nb_pad:]
    pw = jnp.maximum(re * re + im * im, _CLAMP)          # (2*tm, nb_pad) f32
    p_pow = pw[:tm, :]
    t_pow = pw[tm:, :]

    # log-magnitude term via ONE log of the power ratio (plus one divide)
    # instead of two logs: |log|P| - log|T|| = 0.5*|log(pow_p/pow_t)|.
    log_term = 0.5 * jnp.abs(jnp.log(p_pow / t_pow))
    # (|T|-|P|)^2 = t + p - 2*sqrt(t*p): one sqrt instead of two; clamp at 0
    # against rounding-induced tiny negatives.
    sq_diff = jnp.maximum(t_pow + p_pow - 2.0 * jnp.sqrt(t_pow * p_pow), 0.0)

    def fold(x):
        # (tm, nb_pad) -> (8, nb_pad): tree-reduce 8-row groups with pure-VPU
        # vreg adds (dep chain ~log2(tm/8)); the tiny scalar reduction happens
        # outside the kernel.
        parts = [x[g * 8:(g + 1) * 8, :] for g in range(tm // 8)]
        while len(parts) > 1:
            nxt = [parts[k] + parts[k + 1] for k in range(0, len(parts) - 1, 2)]
            if len(parts) % 2:
                nxt.append(parts[-1])
            parts = nxt
        return parts[0]

    acc_ref[0, 0, :, :] += fold(log_term)   # -> sum | log|P| - log|T| |
    acc_ref[0, 1, :, :] += fold(sq_diff)    # -> sum (|T| - |P|)^2
    acc_ref[0, 2, :, :] += fold(t_pow)      # -> sum |T|^2 (pad-corrected outside)


# ----------------------------------------------------------------------------
# Framing (torch.stft center=True, reflect pad) and windowed DFT basis.
# ----------------------------------------------------------------------------
def _frame(x, n_fft, hop):
    """(B, T) -> (B * n_frames, n_fft) frames, n_frames = 1 + T // hop.
    Matches torch.stft(center=True, pad_mode='reflect')."""
    B, T = x.shape
    pad = n_fft // 2
    x_pad = jnp.pad(x, ((0, 0), (pad, pad)), mode="reflect")
    n_frames = 1 + T // hop
    idx = jnp.arange(n_frames)[:, None] * hop + jnp.arange(n_fft)[None, :]
    frames = x_pad[:, idx]                               # (B, n_frames, n_fft)
    # TODO(synk): move the framing into the kernel (pl.ANY signal + manual
    # make_async_copy of the contiguous (tm-1)*hop+n_fft sample window and
    # hop-strided row builds) to avoid materializing this ~n_fft/hop-times
    # overlapped frame tensor in HBM.
    return frames.reshape(B * n_frames, n_fft)


def _dft_basis(n_fft, win_size, n_bins_pad, dtype):
    """Combined windowed one-sided DFT basis (n_fft, 2*n_bins_pad): columns
    [0, n_bins) hold w*cos, columns [n_bins_pad, n_bins_pad+n_bins) hold
    -w*sin; remaining (lane-padding) columns are zero.  Window = periodic
    Hann of length win_size, zero-padded & centred to n_fft (as torch.stft)."""
    n_bins = n_fft // 2 + 1
    n = np.arange(win_size)
    win = 0.5 * (1.0 - np.cos(2.0 * np.pi * n / win_size))   # periodic Hann
    lpad = (n_fft - win_size) // 2
    w = np.zeros(n_fft, dtype=np.float64)
    w[lpad:lpad + win_size] = win
    k = np.arange(n_bins)
    nn = np.arange(n_fft)
    ang = 2.0 * np.pi * np.outer(nn, k) / n_fft              # (n_fft, n_bins)
    basis = np.zeros((n_fft, 2 * n_bins_pad), dtype=np.float64)
    basis[:, :n_bins] = w[:, None] * np.cos(ang)
    basis[:, n_bins_pad:n_bins_pad + n_bins] = w[:, None] * (-np.sin(ang))
    return jnp.asarray(basis, dtype=dtype)


# ----------------------------------------------------------------------------
# Single-resolution STFTLoss.forward -> (sc_loss, mag_loss)
# ----------------------------------------------------------------------------
def _stft_loss(predicts, targets, fft_size, hop_size, win_size,
               tm_max=None, matmul_dtype=jnp.bfloat16):
    n_bins = fft_size // 2 + 1
    nb_pad = _round_up(n_bins, 128)     # lane-dense; 2*nb_pad is a 256-multiple

    B, T = predicts.shape
    n_frames = 1 + T // hop_size
    M = B * n_frames

    # Frame predicted & target together: one framing pass, stacked LHS layout
    # (2, M, n_fft) so the kernel does a single matmul (and tile DMA) per step.
    sig = jnp.concatenate([predicts, targets], axis=0)            # (2B, T)
    frames = _frame(sig, fft_size, hop_size).reshape(2, M, fft_size)

    # Chip-aware tiling: v5e/v6e (128 MiB VMEM, 1 TC) -> big tiles, 1 core;
    # v7x (64 MiB VMEM per TC, 2 TCs) -> capped tiles, 2-way parallel axis.
    vmem_cap = _chip_vmem_bytes()
    big_vmem = vmem_cap >= 96 * 2**20
    if tm_max is None:
        tm_max = 512 if big_vmem else 256
    n_par = 1 if big_vmem else 2

    tm = min(tm_max, _round_up(M, 8))          # frame-tile rows (multiple of 8)
    n_tiles = (M + tm - 1) // tm
    tiles_per_core = (n_tiles + n_par - 1) // n_par
    m_pad = n_par * tiles_per_core * tm
    if m_pad != M:
        frames = jnp.pad(frames, ((0, 0), (0, m_pad - M), (0, 0)))

    # bf16 default: fast MXU path on every generation, half the frame/basis
    # bytes; magnitude/log math stays f32 (f32 MXU accumulation).  Pass
    # matmul_dtype=jnp.float32 for tight numerical parity with torch.
    frames = frames.astype(matmul_dtype)
    basis = _dft_basis(fft_size, win_size, nb_pad, matmul_dtype)

    bpe = jnp.dtype(matmul_dtype).itemsize
    vmem_est = (fft_size * 2 * nb_pad * bpe          # basis (single-buffered)
                + 2 * 2 * tm * fft_size * bpe        # stacked tile, double-buffered
                + 2 * tm * 2 * nb_pad * 4            # f32 matmul output
                + 6 * tm * nb_pad * 4                # f32 elementwise temporaries
                + 2 * 3 * 8 * nb_pad * 4)            # resident accumulator block
    # Never request more scoped VMEM than the chip physically has (v7x: 64 MiB).
    vmem_limit = int(min(max(int(vmem_est * 1.4), 32 * 2**20),
                         int(0.85 * vmem_cap)))

    # TODO(synk): for fft_size >= 4096 (bf16) add an inner grid axis tiling the
    # bin axis (per-chunk basis slab) so basis + temporaries stay within v7x's
    # 64 MiB VMEM without re-reading frames from HBM.
    acc = pl.pallas_call(
        _stft_loss_kernel,
        out_shape=jax.ShapeDtypeStruct((n_par, 3, 8, nb_pad), jnp.float32),
        grid=(n_par, tiles_per_core),
        in_specs=[
            pl.BlockSpec((2, tm, fft_size),
                         lambda c, i: (0, c * tiles_per_core + i, 0)),
            pl.BlockSpec(memory_space=pl.ANY),  # basis stays in HBM; DMA'd once
        ],
        out_specs=pl.BlockSpec((1, 3, 8, nb_pad), lambda c, i: (c, 0, 0, 0)),
        scratch_shapes=[
            pltpu.VMEM((fft_size, 2 * nb_pad), matmul_dtype),
            pltpu.SemaphoreType.DMA(()),
        ],
        compiler_params=pltpu.CompilerParams(
            dimension_semantics=("parallel", "arbitrary"),
            vmem_limit_bytes=vmem_limit,
        ),
    )(frames, basis)

    sums = jnp.sum(acc, axis=(0, 2, 3))           # tiny final reduction -> (3,)

    # Exact removal of the clamp(0, 1e-7) contributions of padded (zero) frame
    # rows and padded (zero) basis columns to sum|T|^2; those padded elements
    # contribute exactly 0 to the other two terms.
    pad_elems = M * (nb_pad - n_bins) + (m_pad - M) * nb_pad
    sum_sq_targ = sums[2] - jnp.float32(_CLAMP * pad_elems)

    sc_loss = jnp.sqrt(sums[1]) / jnp.sqrt(sum_sq_targ)    # SpectralConvergence
    mag_loss = sums[0] / jnp.float32(M * n_bins)           # LogSTFTMagnitude
    return sc_loss, mag_loss


def multi_resolution_stft_loss(fake_signals, true_signals,
                               fft_sizes, win_sizes, hop_sizes,
                               matmul_dtype=jnp.bfloat16):
    """MultiResolutionSTFTLoss.forward -> (sc_loss, mag_loss)."""
    sc_losses, mag_losses = [], []
    for fft_size, win_size, hop_size in zip(fft_sizes, win_sizes, hop_sizes):
        sc, mag = _stft_loss(fake_signals, true_signals,
                             fft_size, hop_size, win_size,
                             matmul_dtype=matmul_dtype)
        sc_losses.append(sc)
        mag_losses.append(mag)
    sc_loss = sum(sc_losses) / len(sc_losses)
    mag_loss = sum(mag_losses) / len(mag_losses)
    return sc_loss, mag_loss


# ----------------------------------------------------------------------------
# Pure-JAX reference (mirrors the torch module) used only as a sanity check.
# ----------------------------------------------------------------------------
def _reference_mr_stft_loss(predicts, targets, fft_sizes, win_sizes, hop_sizes):
    sc_losses, mag_losses = [], []
    for fft_size, win_size, hop_size in zip(fft_sizes, win_sizes, hop_sizes):
        n_bins = fft_size // 2 + 1
        basis = _dft_basis(fft_size, win_size, n_bins, jnp.float32)

        def mag(x):
            f = _frame(x, fft_size, hop_size)
            spec = f @ basis
            re, im = spec[:, :n_bins], spec[:, n_bins:]
            return jnp.sqrt(jnp.maximum(re * re + im * im, _CLAMP))

        pm, tmag = mag(predicts), mag(targets)
        sc_losses.append(jnp.sqrt(jnp.sum((tmag - pm) ** 2))
                         / jnp.sqrt(jnp.sum(tmag ** 2)))
        mag_losses.append(jnp.mean(jnp.abs(jnp.log(pm) - jnp.log(tmag))))
    return (sum(sc_losses) / len(sc_losses),
            sum(mag_losses) / len(mag_losses))


if __name__ == "__main__":
    # Small, module-consistent configuration (the module accepts custom
    # fft/win/hop sizes; defaults are [1024,2048,512]/[600,1200,240]/[120,240,50]).
    fft_sizes = (128, 256, 64)
    win_sizes = (80, 160, 40)
    hop_sizes = (16, 32, 8)

    key = jax.random.PRNGKey(0)
    k1, k2 = jax.random.split(key)
    B, T = 2, 400
    fake_signals = jax.random.normal(k1, (B, T), dtype=jnp.float32)
    true_signals = jax.random.normal(k2, (B, T), dtype=jnp.float32)

    loss_bf16 = jax.jit(functools.partial(
        multi_resolution_stft_loss,
        fft_sizes=fft_sizes, win_sizes=win_sizes, hop_sizes=hop_sizes,
        matmul_dtype=jnp.bfloat16))
    loss_f32 = jax.jit(functools.partial(
        multi_resolution_stft_loss,
        fft_sizes=fft_sizes, win_sizes=win_sizes, hop_sizes=hop_sizes,
        matmul_dtype=jnp.float32))

    sc_bf16, mag_bf16 = jax.block_until_ready(loss_bf16(fake_signals, true_signals))
    sc_f32, mag_f32 = jax.block_until_ready(loss_f32(fake_signals, true_signals))

    # Sanity check against a pure-JAX reference of the torch module.
    sc_ref, mag_ref = _reference_mr_stft_loss(
        fake_signals, true_signals, fft_sizes, win_sizes, hop_sizes)

    assert jnp.isfinite(sc_bf16) and jnp.isfinite(mag_bf16)
    assert jnp.isfinite(sc_f32) and jnp.isfinite(mag_f32)
    # f32 MXU path: tight parity with the reference.
    np.testing.assert_allclose(np.asarray(sc_f32), np.asarray(sc_ref),
                               rtol=2e-3, atol=2e-4)
    np.testing.assert_allclose(np.asarray(mag_f32), np.asarray(mag_ref),
                               rtol=2e-3, atol=2e-4)
    # bf16 default fast path: looser tolerance for bf16 frame/basis quantization.
    np.testing.assert_allclose(np.asarray(sc_bf16), np.asarray(sc_ref),
                               rtol=5e-2, atol=5e-3)
    np.testing.assert_allclose(np.asarray(mag_bf16), np.asarray(mag_ref),
                               rtol=5e-2, atol=5e-3)
    print("KERNEL_OK")
</pallas_src>

<mosaic_0001>
module attributes {stable_mosaic.version = 11 : i64} {
  func.func @_stft_loss_kernel(%arg0: i32, %arg1: i32, %arg2: memref<2x32x256xbf16, #tpu.memory_space<vmem>>, %arg3: memref<256x512xbf16, #tpu.memory_space<any>>, %arg4: memref<1x3x8x256xf32, #tpu.memory_space<vmem>>, %arg5: memref<256x512xbf16, #tpu.memory_space<vmem>>, %arg6: memref<!tpu.dma_semaphore, #tpu.memory_space<semaphore_mem>>) attributes {dimension_semantics = [#tpu.dimension_semantics<parallel>, #tpu.dimension_semantics<arbitrary>], iteration_bounds = array<i64: 2, 1>, scalar_prefetch = 0 : i64, scratch_operands = 2 : i64, tpu.core_type = #tpu.core_type<tc>, window_params = [{transform_indices = @transform_0, window_bounds = array<i64: 2, 32, 256>}, {}, {transform_indices = @transform_2, window_bounds = array<i64: 1, 3, 8, 256>}]} {
    %c0_i32 = arith.constant 0 : i32
    %0 = arith.cmpi eq, %arg1, %c0_i32 : i32
    %1 = arith.extui %0 : i1 to i32
    %c0_i32_0 = arith.constant 0 : i32
    %2 = arith.cmpi ne, %1, %c0_i32_0 : i32
    scf.if %2 {
      %cst_31 = arith.constant 0.000000e+00 : f32
      %68 = vector.broadcast %cst_31 : f32 to vector<1x3x8x256xf32>
      %c0_32 = arith.constant 0 : index
      %c0_33 = arith.constant 0 : index
      %c0_34 = arith.constant 0 : index
      %c0_35 = arith.constant 0 : index
      %69 = vector.load %arg4[%c0_32, %c0_33, %c0_34, %c0_35] : memref<1x3x8x256xf32, #tpu.memory_space<vmem>>, vector<1x3x8x256xf32>
      tpu.vector_store %arg4[%c0_32, %c0_33, %c0_34, %c0_35], %68 {strides = array<i32>} : memref<1x3x8x256xf32, #tpu.memory_space<vmem>>, vector<1x3x8x256xf32>,
      tpu.enqueue_dma source(%arg3 : memref<256x512xbf16, #tpu.memory_space<any>>) target(%arg5 : memref<256x512xbf16, #tpu.memory_space<vmem>>) target_semaphore(%arg6 : memref<!tpu.dma_semaphore, #tpu.memory_space<semaphore_mem>>)
      tpu.wait_dma2 semaphore(%arg6 : memref<!tpu.dma_semaphore, #tpu.memory_space<semaphore_mem>>) src(%arg3 : memref<256x512xbf16, #tpu.memory_space<any>>) dst(%arg5 : memref<256x512xbf16, #tpu.memory_space<vmem>>)
    } else {
    }
    %c0 = arith.constant 0 : index
    %c0_1 = arith.constant 0 : index
    %3 = vector.load %arg5[%c0, %c0_1] : memref<256x512xbf16, #tpu.memory_space<vmem>>, vector<256x512xbf16>
    %c0_2 = arith.constant 0 : index
    %c0_3 = arith.constant 0 : index
    %c0_4 = arith.constant 0 : index
    %4 = vector.load %arg2[%c0_2, %c0_3, %c0_4] : memref<2x32x256xbf16, #tpu.memory_space<vmem>>, vector<2x32x256xbf16>
    %5 = vector.shape_cast %4 : vector<2x32x256xbf16> to vector<64x256xbf16>
    %cst = arith.constant dense<0.000000e+00> : vector<64x512xf32>
    %6 = tpu.matmul %5, %3, %cst {dimension_numbers = #tpu.dot_dimension_numbers<[1], [0], [0], [1], [0, 0, 1, 1], [], []>} : vector<64x256xbf16>, vector<256x512xbf16>, vector<64x512xf32> -> vector<64x512xf32>
    %7 = vector.extract_strided_slice %6 {offsets = [0, 0], sizes = [64, 256], strides = [1, 1]} : vector<64x512xf32> to vector<64x256xf32>
    %8 = vector.extract_strided_slice %6 {offsets = [0, 256], sizes = [64, 256], strides = [1, 1]} : vector<64x512xf32> to vector<64x256xf32>
    %9 = arith.mulf %7, %7 : vector<64x256xf32>
    %10 = arith.mulf %8, %8 : vector<64x256xf32>
    %11 = arith.addf %9, %10 : vector<64x256xf32>
    %cst_5 = arith.constant 1.000000e-07 : f32
    %12 = vector.broadcast %cst_5 : f32 to vector<64x256xf32>
    %13 = arith.maximumf %11, %12 : vector<64x256xf32>
    %14 = vector.extract_strided_slice %13 {offsets = [0, 0], sizes = [32, 256], strides = [1, 1]} : vector<64x256xf32> to vector<32x256xf32>
    %15 = vector.extract_strided_slice %13 {offsets = [32, 0], sizes = [32, 256], strides = [1, 1]} : vector<64x256xf32> to vector<32x256xf32>
    %16 = arith.divf %14, %15 : vector<32x256xf32>
    %17 = math.log %16 : vector<32x256xf32>
    %18 = math.absf %17 : vector<32x256xf32>
    %cst_6 = arith.constant 5.000000e-01 : f32
    %19 = vector.broadcast %cst_6 : f32 to vector<32x256xf32>
    %20 = arith.mulf %19, %18 : vector<32x256xf32>
    %21 = arith.addf %15, %14 : vector<32x256xf32>
    %22 = arith.mulf %15, %14 : vector<32x256xf32>
    %23 = math.sqrt %22 : vector<32x256xf32>
    %cst_7 = arith.constant 2.000000e+00 : f32
    %24 = vector.broadcast %cst_7 : f32 to vector<32x256xf32>
    %25 = arith.mulf %24, %23 : vector<32x256xf32>
    %26 = arith.subf %21, %25 : vector<32x256xf32>
    %cst_8 = arith.constant 0.000000e+00 : f32
    %27 = vector.broadcast %cst_8 : f32 to vector<32x256xf32>
    %28 = arith.maximumf %26, %27 : vector<32x256xf32>
    %c0_9 = arith.constant 0 : index
    %c0_10 = arith.constant 0 : index
    %c0_11 = arith.constant 0 : index
    %c0_12 = arith.constant 0 : index
    %29 = vector.load %arg4[%c0_9, %c0_10, %c0_11, %c0_12] : memref<1x3x8x256xf32, #tpu.memory_space<vmem>>, vector<1x1x8x256xf32>
    %30 = vector.shape_cast %29 : vector<1x1x8x256xf32> to vector<8x256xf32>
    %31 = vector.extract_strided_slice %20 {offsets = [0, 0], sizes = [8, 256], strides = [1, 1]} : vector<32x256xf32> to vector<8x256xf32>
    %32 = vector.extract_strided_slice %20 {offsets = [8, 0], sizes = [8, 256], strides = [1, 1]} : vector<32x256xf32> to vector<8x256xf32>
    %33 = vector.extract_strided_slice %20 {offsets = [16, 0], sizes = [8, 256], strides = [1, 1]} : vector<32x256xf32> to vector<8x256xf32>
    %34 = vector.extract_strided_slice %20 {offsets = [24, 0], sizes = [8, 256], strides = [1, 1]} : vector<32x256xf32> to vector<8x256xf32>
    %35 = arith.addf %31, %32 : vector<8x256xf32>
    %36 = arith.addf %33, %34 : vector<8x256xf32>
    %37 = arith.addf %35, %36 : vector<8x256xf32>
    %38 = arith.addf %30, %37 : vector<8x256xf32>
    %c0_13 = arith.constant 0 : index
    %c0_14 = arith.constant 0 : index
    %c0_15 = arith.constant 0 : index
    %c0_16 = arith.constant 0 : index
    %39 = vector.load %arg4[%c0_13, %c0_14, %c0_15, %c0_16] : memref<1x3x8x256xf32, #tpu.memory_space<vmem>>, vector<1x1x8x256xf32>
    %40 = vector.shape_cast %39 : vector<1x1x8x256xf32> to vector<8x256xf32>
    %41 = vector.shape_cast %38 : vector<8x256xf32> to vector<1x1x8x256xf32>
    tpu.vector_store %arg4[%c0_13, %c0_14, %c0_15, %c0_16], %41 {strides = array<i32>} : memref<1x3x8x256xf32, #tpu.memory_space<vmem>>, vector<1x1x8x256xf32>,
    %c0_17 = arith.constant 0 : index
    %c1 = arith.constant 1 : index
    %c0_18 = arith.constant 0 : index
    %c0_19 = arith.constant 0 : index
    %42 = vector.load %arg4[%c0_17, %c1, %c0_18, %c0_19] : memref<1x3x8x256xf32, #tpu.memory_space<vmem>>, vector<1x1x8x256xf32>
    %43 = vector.shape_cast %42 : vector<1x1x8x256xf32> to vector<8x256xf32>
    %44 = vector.extract_strided_slice %28 {offsets = [0, 0], sizes = [8, 256], strides = [1, 1]} : vector<32x256xf32> to vector<8x256xf32>
    %45 = vector.extract_strided_slice %28 {offsets = [8, 0], sizes = [8, 256], strides = [1, 1]} : vector<32x256xf32> to vector<8x256xf32>
    %46 = vector.extract_strided_slice %28 {offsets = [16, 0], sizes = [8, 256], strides = [1, 1]} : vector<32x256xf32> to vector<8x256xf32>
    %47 = vector.extract_strided_slice %28 {offsets = [24, 0], sizes = [8, 256], strides = [1, 1]} : vector<32x256xf32> to vector<8x256xf32>
    %48 = arith.addf %44, %45 : vector<8x256xf32>
    %49 = arith.addf %46, %47 : vector<8x256xf32>
    %50 = arith.addf %48, %49 : vector<8x256xf32>
    %51 = arith.addf %43, %50 : vector<8x256xf32>
    %c0_20 = arith.constant 0 : index
    %c1_21 = arith.constant 1 : index
    %c0_22 = arith.constant 0 : index
    %c0_23 = arith.constant 0 : index
    %52 = vector.load %arg4[%c0_20, %c1_21, %c0_22, %c0_23] : memref<1x3x8x256xf32, #tpu.memory_space<vmem>>, vector<1x1x8x256xf32>
    %53 = vector.shape_cast %52 : vector<1x1x8x256xf32> to vector<8x256xf32>
    %54 = vector.shape_cast %51 : vector<8x256xf32> to vector<1x1x8x256xf32>
    tpu.vector_store %arg4[%c0_20, %c1_21, %c0_22, %c0_23], %54 {strides = array<i32>} : memref<1x3x8x256xf32, #tpu.memory_space<vmem>>, vector<1x1x8x256xf32>,
    %c0_24 = arith.constant 0 : index
    %c2 = arith.constant 2 : index
    %c0_25 = arith.constant 0 : index
    %c0_26 = arith.constant 0 : index
    %55 = vector.load %arg4[%c0_24, %c2, %c0_25, %c0_26] : memref<1x3x8x256xf32, #tpu.memory_space<vmem>>, vector<1x1x8x256xf32>
    %56 = vector.shape_cast %55 : vector<1x1x8x256xf32> to vector<8x256xf32>
    %57 = vector.extract_strided_slice %15 {offsets = [0, 0], sizes = [8, 256], strides = [1, 1]} : vector<32x256xf32> to vector<8x256xf32>
    %58 = vector.extract_strided_slice %15 {offsets = [8, 0], sizes = [8, 256], strides = [1, 1]} : vector<32x256xf32> to vector<8x256xf32>
    %59 = vector.extract_strided_slice %15 {offsets = [16, 0], sizes = [8, 256], strides = [1, 1]} : vector<32x256xf32> to vector<8x256xf32>
    %60 = vector.extract_strided_slice %15 {offsets = [24, 0], sizes = [8, 256], strides = [1, 1]} : vector<32x256xf32> to vector<8x256xf32>
    %61 = arith.addf %57, %58 : vector<8x256xf32>
    %62 = arith.addf %59, %60 : vector<8x256xf32>
    %63 = arith.addf %61, %62 : vector<8x256xf32>
    %64 = arith.addf %56, %63 : vector<8x256xf32>
    %c0_27 = arith.constant 0 : index
    %c2_28 = arith.constant 2 : index
    %c0_29 = arith.constant 0 : index
    %c0_30 = arith.constant 0 : index
    %65 = vector.load %arg4[%c0_27, %c2_28, %c0_29, %c0_30] : memref<1x3x8x256xf32, #tpu.memory_space<vmem>>, vector<1x1x8x256xf32>
    %66 = vector.shape_cast %65 : vector<1x1x8x256xf32> to vector<8x256xf32>
    %67 = vector.shape_cast %64 : vector<8x256xf32> to vector<1x1x8x256xf32>
    tpu.vector_store %arg4[%c0_27, %c2_28, %c0_29, %c0_30], %67 {strides = array<i32>} : memref<1x3x8x256xf32, #tpu.memory_space<vmem>>, vector<1x1x8x256xf32>,
    return
  }
  func.func @transform_0(%arg0: i32, %arg1: i32) -> (i32, i32, i32) {
    %c1_i32 = arith.constant 1 : i32
    %0 = arith.muli %arg0, %c1_i32 : i32
    %1 = arith.addi %0, %arg1 : i32
    %c0_i32 = arith.constant 0 : i32
    %c0_i32_0 = arith.constant 0 : i32
    %c0_i32_1 = arith.constant 0 : i32
    return %c0_i32, %1, %c0_i32_0 : i32, i32, i32
  }
  func.func @transform_2(%arg0: i32, %arg1: i32) -> (i32, i32, i32, i32) {
    %c0_i32 = arith.constant 0 : i32
    %c0_i32_0 = arith.constant 0 : i32
    %c0_i32_1 = arith.constant 0 : i32
    %c0_i32_2 = arith.constant 0 : i32
    return %arg0, %c0_i32, %c0_i32_0, %c0_i32_1 : i32, i32, i32, i32
  }
}

module attributes {stable_mosaic.version = 11 : i64} {
  func.func @_stft_loss_kernel(%arg0: i32, %arg1: i32, %arg2: memref<2x56x128xbf16, #tpu.memory_space<vmem>>, %arg3: memref<128x256xbf16, #tpu.memory_space<any>>, %arg4: memref<1x3x8x128xf32, #tpu.memory_space<vmem>>, %arg5: memref<128x256xbf16, #tpu.memory_space<vmem>>, %arg6: memref<!tpu.dma_semaphore, #tpu.memory_space<semaphore_mem>>) attributes {dimension_semantics = [#tpu.dimension_semantics<parallel>, #tpu.dimension_semantics<arbitrary>], iteration_bounds = array<i64: 2, 1>, scalar_prefetch = 0 : i64, scratch_operands = 2 : i64, tpu.core_type = #tpu.core_type<tc>, window_params = [{transform_indices = @transform_0, window_bounds = array<i64: 2, 56, 128>}, {}, {transform_indices = @transform_2, window_bounds = array<i64: 1, 3, 8, 128>}]} {
    %c0_i32 = arith.constant 0 : i32
    %0 = arith.cmpi eq, %arg1, %c0_i32 : i32
    %1 = arith.extui %0 : i1 to i32
    %c0_i32_0 = arith.constant 0 : i32
    %2 = arith.cmpi ne, %1, %c0_i32_0 : i32
    scf.if %2 {
      %cst_31 = arith.constant 0.000000e+00 : f32
      %86 = vector.broadcast %cst_31 : f32 to vector<1x3x8x128xf32>
      %c0_32 = arith.constant 0 : index
      %c0_33 = arith.constant 0 : index
      %c0_34 = arith.constant 0 : index
      %c0_35 = arith.constant 0 : index
      %87 = vector.load %arg4[%c0_32, %c0_33, %c0_34, %c0_35] : memref<1x3x8x128xf32, #tpu.memory_space<vmem>>, vector<1x3x8x128xf32>
      tpu.vector_store %arg4[%c0_32, %c0_33, %c0_34, %c0_35], %86 {strides = array<i32>} : memref<1x3x8x128xf32, #tpu.memory_space<vmem>>, vector<1x3x8x128xf32>,
      tpu.enqueue_dma source(%arg3 : memref<128x256xbf16, #tpu.memory_space<any>>) target(%arg5 : memref<128x256xbf16, #tpu.memory_space<vmem>>) target_semaphore(%arg6 : memref<!tpu.dma_semaphore, #tpu.memory_space<semaphore_mem>>)
      tpu.wait_dma2 semaphore(%arg6 : memref<!tpu.dma_semaphore, #tpu.memory_space<semaphore_mem>>) src(%arg3 : memref<128x256xbf16, #tpu.memory_space<any>>) dst(%arg5 : memref<128x256xbf16, #tpu.memory_space<vmem>>)
    } else {
    }
    %c0 = arith.constant 0 : index
    %c0_1 = arith.constant 0 : index
    %3 = vector.load %arg5[%c0, %c0_1] : memref<128x256xbf16, #tpu.memory_space<vmem>>, vector<128x256xbf16>
    %c0_2 = arith.constant 0 : index
    %c0_3 = arith.constant 0 : index
    %c0_4 = arith.constant 0 : index
    %4 = vector.load %arg2[%c0_2, %c0_3, %c0_4] : memref<2x56x128xbf16, #tpu.memory_space<vmem>>, vector<2x56x128xbf16>
    %5 = vector.shape_cast %4 : vector<2x56x128xbf16> to vector<112x128xbf16>
    %cst = arith.constant dense<0.000000e+00> : vector<112x256xf32>
    %6 = tpu.matmul %5, %3, %cst {dimension_numbers = #tpu.dot_dimension_numbers<[1], [0], [0], [1], [0, 0, 1, 1], [], []>} : vector<112x128xbf16>, vector<128x256xbf16>, vector<112x256xf32> -> vector<112x256xf32>
    %7 = vector.extract_strided_slice %6 {offsets = [0, 0], sizes = [112, 128], strides = [1, 1]} : vector<112x256xf32> to vector<112x128xf32>
    %8 = vector.extract_strided_slice %6 {offsets = [0, 128], sizes = [112, 128], strides = [1, 1]} : vector<112x256xf32> to vector<112x128xf32>
    %9 = arith.mulf %7, %7 : vector<112x128xf32>
    %10 = arith.mulf %8, %8 : vector<112x128xf32>
    %11 = arith.addf %9, %10 : vector<112x128xf32>
    %cst_5 = arith.constant 1.000000e-07 : f32
    %12 = vector.broadcast %cst_5 : f32 to vector<112x128xf32>
    %13 = arith.maximumf %11, %12 : vector<112x128xf32>
    %14 = vector.extract_strided_slice %13 {offsets = [0, 0], sizes = [56, 128], strides = [1, 1]} : vector<112x128xf32> to vector<56x128xf32>
    %15 = vector.extract_strided_slice %13 {offsets = [56, 0], sizes = [56, 128], strides = [1, 1]} : vector<112x128xf32> to vector<56x128xf32>
    %16 = arith.divf %14, %15 : vector<56x128xf32>
    %17 = math.log %16 : vector<56x128xf32>
    %18 = math.absf %17 : vector<56x128xf32>
    %cst_6 = arith.constant 5.000000e-01 : f32
    %19 = vector.broadcast %cst_6 : f32 to vector<56x128xf32>
    %20 = arith.mulf %19, %18 : vector<56x128xf32>
    %21 = arith.addf %15, %14 : vector<56x128xf32>
    %22 = arith.mulf %15, %14 : vector<56x128xf32>
    %23 = math.sqrt %22 : vector<56x128xf32>
    %cst_7 = arith.constant 2.000000e+00 : f32
    %24 = vector.broadcast %cst_7 : f32 to vector<56x128xf32>
    %25 = arith.mulf %24, %23 : vector<56x128xf32>
    %26 = arith.subf %21, %25 : vector<56x128xf32>
    %cst_8 = arith.constant 0.000000e+00 : f32
    %27 = vector.broadcast %cst_8 : f32 to vector<56x128xf32>
    %28 = arith.maximumf %26, %27 : vector<56x128xf32>
    %c0_9 = arith.constant 0 : index
    %c0_10 = arith.constant 0 : index
    %c0_11 = arith.constant 0 : index
    %c0_12 = arith.constant 0 : index
    %29 = vector.load %arg4[%c0_9, %c0_10, %c0_11, %c0_12] : memref<1x3x8x128xf32, #tpu.memory_space<vmem>>, vector<1x1x8x128xf32>
    %30 = vector.shape_cast %29 : vector<1x1x8x128xf32> to vector<8x128xf32>
    %31 = vector.extract_strided_slice %20 {offsets = [0, 0], sizes = [8, 128], strides = [1, 1]} : vector<56x128xf32> to vector<8x128xf32>
    %32 = vector.extract_strided_slice %20 {offsets = [8, 0], sizes = [8, 128], strides = [1, 1]} : vector<56x128xf32> to vector<8x128xf32>
    %33 = vector.extract_strided_slice %20 {offsets = [16, 0], sizes = [8, 128], strides = [1, 1]} : vector<56x128xf32> to vector<8x128xf32>
    %34 = vector.extract_strided_slice %20 {offsets = [24, 0], sizes = [8, 128], strides = [1, 1]} : vector<56x128xf32> to vector<8x128xf32>
    %35 = vector.extract_strided_slice %20 {offsets = [32, 0], sizes = [8, 128], strides = [1, 1]} : vector<56x128xf32> to vector<8x128xf32>
    %36 = vector.extract_strided_slice %20 {offsets = [40, 0], sizes = [8, 128], strides = [1, 1]} : vector<56x128xf32> to vector<8x128xf32>
    %37 = vector.extract_strided_slice %20 {offsets = [48, 0], sizes = [8, 128], strides = [1, 1]} : vector<56x128xf32> to vector<8x128xf32>
    %38 = arith.addf %31, %32 : vector<8x128xf32>
    %39 = arith.addf %33, %34 : vector<8x128xf32>
    %40 = arith.addf %35, %36 : vector<8x128xf32>
    %41 = arith.addf %38, %39 : vector<8x128xf32>
    %42 = arith.addf %40, %37 : vector<8x128xf32>
    %43 = arith.addf %41, %42 : vector<8x128xf32>
    %44 = arith.addf %30, %43 : vector<8x128xf32>
    %c0_13 = arith.constant 0 : index
    %c0_14 = arith.constant 0 : index
    %c0_15 = arith.constant 0 : index
    %c0_16 = arith.constant 0 : index
    %45 = vector.load %arg4[%c0_13, %c0_14, %c0_15, %c0_16] : memref<1x3x8x128xf32, #tpu.memory_space<vmem>>, vector<1x1x8x128xf32>
    %46 = vector.shape_cast %45 : vector<1x1x8x128xf32> to vector<8x128xf32>
    %47 = vector.shape_cast %44 : vector<8x128xf32> to vector<1x1x8x128xf32>
    tpu.vector_store %arg4[%c0_13, %c0_14, %c0_15, %c0_16], %47 {strides = array<i32>} : memref<1x3x8x128xf32, #tpu.memory_space<vmem>>, vector<1x1x8x128xf32>,
    %c0_17 = arith.constant 0 : index
    %c1 = arith.constant 1 : index
    %c0_18 = arith.constant 0 : index
    %c0_19 = arith.constant 0 : index
    %48 = vector.load %arg4[%c0_17, %c1, %c0_18, %c0_19] : memref<1x3x8x128xf32, #tpu.memory_space<vmem>>, vector<1x1x8x128xf32>
    %49 = vector.shape_cast %48 : vector<1x1x8x128xf32> to vector<8x128xf32>
    %50 = vector.extract_strided_slice %28 {offsets = [0, 0], sizes = [8, 128], strides = [1, 1]} : vector<56x128xf32> to vector<8x128xf32>
    %51 = vector.extract_strided_slice %28 {offsets = [8, 0], sizes = [8, 128], strides = [1, 1]} : vector<56x128xf32> to vector<8x128xf32>
    %52 = vector.extract_strided_slice %28 {offsets = [16, 0], sizes = [8, 128], strides = [1, 1]} : vector<56x128xf32> to vector<8x128xf32>
    %53 = vector.extract_strided_slice %28 {offsets = [24, 0], sizes = [8, 128], strides = [1, 1]} : vector<56x128xf32> to vector<8x128xf32>
    %54 = vector.extract_strided_slice %28 {offsets = [32, 0], sizes = [8, 128], strides = [1, 1]} : vector<56x128xf32> to vector<8x128xf32>
    %55 = vector.extract_strided_slice %28 {offsets = [40, 0], sizes = [8, 128], strides = [1, 1]} : vector<56x128xf32> to vector<8x128xf32>
    %56 = vector.extract_strided_slice %28 {offsets = [48, 0], sizes = [8, 128], strides = [1, 1]} : vector<56x128xf32> to vector<8x128xf32>
    %57 = arith.addf %50, %51 : vector<8x128xf32>
    %58 = arith.addf %52, %53 : vector<8x128xf32>
    %59 = arith.addf %54, %55 : vector<8x128xf32>
    %60 = arith.addf %57, %58 : vector<8x128xf32>
    %61 = arith.addf %59, %56 : vector<8x128xf32>
    %62 = arith.addf %60, %61 : vector<8x128xf32>
    %63 = arith.addf %49, %62 : vector<8x128xf32>
    %c0_20 = arith.constant 0 : index
    %c1_21 = arith.constant 1 : index
    %c0_22 = arith.constant 0 : index
    %c0_23 = arith.constant 0 : index
    %64 = vector.load %arg4[%c0_20, %c1_21, %c0_22, %c0_23] : memref<1x3x8x128xf32, #tpu.memory_space<vmem>>, vector<1x1x8x128xf32>
    %65 = vector.shape_cast %64 : vector<1x1x8x128xf32> to vector<8x128xf32>
    %66 = vector.shape_cast %63 : vector<8x128xf32> to vector<1x1x8x128xf32>
    tpu.vector_store %arg4[%c0_20, %c1_21, %c0_22, %c0_23], %66 {strides = array<i32>} : memref<1x3x8x128xf32, #tpu.memory_space<vmem>>, vector<1x1x8x128xf32>,
    %c0_24 = arith.constant 0 : index
    %c2 = arith.constant 2 : index
    %c0_25 = arith.constant 0 : index
    %c0_26 = arith.constant 0 : index
    %67 = vector.load %arg4[%c0_24, %c2, %c0_25, %c0_26] : memref<1x3x8x128xf32, #tpu.memory_space<vmem>>, vector<1x1x8x128xf32>
    %68 = vector.shape_cast %67 : vector<1x1x8x128xf32> to vector<8x128xf32>
    %69 = vector.extract_strided_slice %15 {offsets = [0, 0], sizes = [8, 128], strides = [1, 1]} : vector<56x128xf32> to vector<8x128xf32>
    %70 = vector.extract_strided_slice %15 {offsets = [8, 0], sizes = [8, 128], strides = [1, 1]} : vector<56x128xf32> to vector<8x128xf32>
    %71 = vector.extract_strided_slice %15 {offsets = [16, 0], sizes = [8, 128], strides = [1, 1]} : vector<56x128xf32> to vector<8x128xf32>
    %72 = vector.extract_strided_slice %15 {offsets = [24, 0], sizes = [8, 128], strides = [1, 1]} : vector<56x128xf32> to vector<8x128xf32>
    %73 = vector.extract_strided_slice %15 {offsets = [32, 0], sizes = [8, 128], strides = [1, 1]} : vector<56x128xf32> to vector<8x128xf32>
    %74 = vector.extract_strided_slice %15 {offsets = [40, 0], sizes = [8, 128], strides = [1, 1]} : vector<56x128xf32> to vector<8x128xf32>
    %75 = vector.extract_strided_slice %15 {offsets = [48, 0], sizes = [8, 128], strides = [1, 1]} : vector<56x128xf32> to vector<8x128xf32>
    %76 = arith.addf %69, %70 : vector<8x128xf32>
    %77 = arith.addf %71, %72 : vector<8x128xf32>
    %78 = arith.addf %73, %74 : vector<8x128xf32>
    %79 = arith.addf %76, %77 : vector<8x128xf32>
    %80 = arith.addf %78, %75 : vector<8x128xf32>
    %81 = arith.addf %79, %80 : vector<8x128xf32>
    %82 = arith.addf %68, %81 : vector<8x128xf32>
    %c0_27 = arith.constant 0 : index
    %c2_28 = arith.constant 2 : index
    %c0_29 = arith.constant 0 : index
    %c0_30 = arith.constant 0 : index
    %83 = vector.load %arg4[%c0_27, %c2_28, %c0_29, %c0_30] : memref<1x3x8x128xf32, #tpu.memory_space<vmem>>, vector<1x1x8x128xf32>
    %84 = vector.shape_cast %83 : vector<1x1x8x128xf32> to vector<8x128xf32>
    %85 = vector.shape_cast %82 : vector<8x128xf32> to vector<1x1x8x128xf32>
    tpu.vector_store %arg4[%c0_27, %c2_28, %c0_29, %c0_30], %85 {strides = array<i32>} : memref<1x3x8x128xf32, #tpu.memory_space<vmem>>, vector<1x1x8x128xf32>,
    return
  }
  func.func @transform_0(%arg0: i32, %arg1: i32) -> (i32, i32, i32) {
    %c1_i32 = arith.constant 1 : i32
    %0 = arith.muli %arg0, %c1_i32 : i32
    %1 = arith.addi %0, %arg1 : i32
    %c0_i32 = arith.constant 0 : i32
    %c0_i32_0 = arith.constant 0 : i32
    %c0_i32_1 = arith.constant 0 : i32
    return %c0_i32, %1, %c0_i32_0 : i32, i32, i32
  }
  func.func @transform_2(%arg0: i32, %arg1: i32) -> (i32, i32, i32, i32) {
    %c0_i32 = arith.constant 0 : i32
    %c0_i32_0 = arith.constant 0 : i32
    %c0_i32_1 = arith.constant 0 : i32
    %c0_i32_2 = arith.constant 0 : i32
    return %arg0, %c0_i32, %c0_i32_0, %c0_i32_1 : i32, i32, i32, i32
  }
}

module attributes {stable_mosaic.version = 11 : i64} {
  func.func @_stft_loss_kernel(%arg0: i32, %arg1: i32, %arg2: memref<2x104x64xbf16, #tpu.memory_space<vmem>>, %arg3: memref<64x256xbf16, #tpu.memory_space<any>>, %arg4: memref<1x3x8x128xf32, #tpu.memory_space<vmem>>, %arg5: memref<64x256xbf16, #tpu.memory_space<vmem>>, %arg6: memref<!tpu.dma_semaphore, #tpu.memory_space<semaphore_mem>>) attributes {dimension_semantics = [#tpu.dimension_semantics<parallel>, #tpu.dimension_semantics<arbitrary>], iteration_bounds = array<i64: 2, 1>, scalar_prefetch = 0 : i64, scratch_operands = 2 : i64, tpu.core_type = #tpu.core_type<tc>, window_params = [{transform_indices = @transform_0, window_bounds = array<i64: 2, 104, 64>}, {}, {transform_indices = @transform_2, window_bounds = array<i64: 1, 3, 8, 128>}]} {
    %c0_i32 = arith.constant 0 : i32
    %0 = arith.cmpi eq, %arg1, %c0_i32 : i32
    %1 = arith.extui %0 : i1 to i32
    %c0_i32_0 = arith.constant 0 : i32
    %2 = arith.cmpi ne, %1, %c0_i32_0 : i32
    scf.if %2 {
      %cst_31 = arith.constant 0.000000e+00 : f32
      %122 = vector.broadcast %cst_31 : f32 to vector<1x3x8x128xf32>
      %c0_32 = arith.constant 0 : index
      %c0_33 = arith.constant 0 : index
      %c0_34 = arith.constant 0 : index
      %c0_35 = arith.constant 0 : index
      %123 = vector.load %arg4[%c0_32, %c0_33, %c0_34, %c0_35] : memref<1x3x8x128xf32, #tpu.memory_space<vmem>>, vector<1x3x8x128xf32>
      tpu.vector_store %arg4[%c0_32, %c0_33, %c0_34, %c0_35], %122 {strides = array<i32>} : memref<1x3x8x128xf32, #tpu.memory_space<vmem>>, vector<1x3x8x128xf32>,
      tpu.enqueue_dma source(%arg3 : memref<64x256xbf16, #tpu.memory_space<any>>) target(%arg5 : memref<64x256xbf16, #tpu.memory_space<vmem>>) target_semaphore(%arg6 : memref<!tpu.dma_semaphore, #tpu.memory_space<semaphore_mem>>)
      tpu.wait_dma2 semaphore(%arg6 : memref<!tpu.dma_semaphore, #tpu.memory_space<semaphore_mem>>) src(%arg3 : memref<64x256xbf16, #tpu.memory_space<any>>) dst(%arg5 : memref<64x256xbf16, #tpu.memory_space<vmem>>)
    } else {
    }
    %c0 = arith.constant 0 : index
    %c0_1 = arith.constant 0 : index
    %3 = vector.load %arg5[%c0, %c0_1] : memref<64x256xbf16, #tpu.memory_space<vmem>>, vector<64x256xbf16>
    %c0_2 = arith.constant 0 : index
    %c0_3 = arith.constant 0 : index
    %c0_4 = arith.constant 0 : index
    %4 = vector.load %arg2[%c0_2, %c0_3, %c0_4] : memref<2x104x64xbf16, #tpu.memory_space<vmem>>, vector<2x104x64xbf16>
    %5 = vector.shape_cast %4 : vector<2x104x64xbf16> to vector<208x64xbf16>
    %cst = arith.constant dense<0.000000e+00> : vector<208x256xf32>
    %6 = tpu.matmul %5, %3, %cst {dimension_numbers = #tpu.dot_dimension_numbers<[1], [0], [0], [1], [0, 0, 1, 1], [], []>} : vector<208x64xbf16>, vector<64x256xbf16>, vector<208x256xf32> -> vector<208x256xf32>
    %7 = vector.extract_strided_slice %6 {offsets = [0, 0], sizes = [208, 128], strides = [1, 1]} : vector<208x256xf32> to vector<208x128xf32>
    %8 = vector.extract_strided_slice %6 {offsets = [0, 128], sizes = [208, 128], strides = [1, 1]} : vector<208x256xf32> to vector<208x128xf32>
    %9 = arith.mulf %7, %7 : vector<208x128xf32>
    %10 = arith.mulf %8, %8 : vector<208x128xf32>
    %11 = arith.addf %9, %10 : vector<208x128xf32>
    %cst_5 = arith.constant 1.000000e-07 : f32
    %12 = vector.broadcast %cst_5 : f32 to vector<208x128xf32>
    %13 = arith.maximumf %11, %12 : vector<208x128xf32>
    %14 = vector.extract_strided_slice %13 {offsets = [0, 0], sizes = [104, 128], strides = [1, 1]} : vector<208x128xf32> to vector<104x128xf32>
    %15 = vector.extract_strided_slice %13 {offsets = [104, 0], sizes = [104, 128], strides = [1, 1]} : vector<208x128xf32> to vector<104x128xf32>
    %16 = arith.divf %14, %15 : vector<104x128xf32>
    %17 = math.log %16 : vector<104x128xf32>
    %18 = math.absf %17 : vector<104x128xf32>
    %cst_6 = arith.constant 5.000000e-01 : f32
    %19 = vector.broadcast %cst_6 : f32 to vector<104x128xf32>
    %20 = arith.mulf %19, %18 : vector<104x128xf32>
    %21 = arith.addf %15, %14 : vector<104x128xf32>
    %22 = arith.mulf %15, %14 : vector<104x128xf32>
    %23 = math.sqrt %22 : vector<104x128xf32>
    %cst_7 = arith.constant 2.000000e+00 : f32
    %24 = vector.broadcast %cst_7 : f32 to vector<104x128xf32>
    %25 = arith.mulf %24, %23 : vector<104x128xf32>
    %26 = arith.subf %21, %25 : vector<104x128xf32>
    %cst_8 = arith.constant 0.000000e+00 : f32
    %27 = vector.broadcast %cst_8 : f32 to vector<104x128xf32>
    %28 = arith.maximumf %26, %27 : vector<104x128xf32>
    %c0_9 = arith.constant 0 : index
    %c0_10 = arith.constant 0 : index
    %c0_11 = arith.constant 0 : index
    %c0_12 = arith.constant 0 : index
    %29 = vector.load %arg4[%c0_9, %c0_10, %c0_11, %c0_12] : memref<1x3x8x128xf32, #tpu.memory_space<vmem>>, vector<1x1x8x128xf32>
    %30 = vector.shape_cast %29 : vector<1x1x8x128xf32> to vector<8x128xf32>
    %31 = vector.extract_strided_slice %20 {offsets = [0, 0], sizes = [8, 128], strides = [1, 1]} : vector<104x128xf32> to vector<8x128xf32>
    %32 = vector.extract_strided_slice %20 {offsets = [8, 0], sizes = [8, 128], strides = [1, 1]} : vector<104x128xf32> to vector<8x128xf32>
    %33 = vector.extract_strided_slice %20 {offsets = [16, 0], sizes = [8, 128], strides = [1, 1]} : vector<104x128xf32> to vector<8x128xf32>
    %34 = vector.extract_strided_slice %20 {offsets = [24, 0], sizes = [8, 128], strides = [1, 1]} : vector<104x128xf32> to vector<8x128xf32>
    %35 = vector.extract_strided_slice %20 {offsets = [32, 0], sizes = [8, 128], strides = [1, 1]} : vector<104x128xf32> to vector<8x128xf32>
    %36 = vector.extract_strided_slice %20 {offsets = [40, 0], sizes = [8, 128], strides = [1, 1]} : vector<104x128xf32> to vector<8x128xf32>
    %37 = vector.extract_strided_slice %20 {offsets = [48, 0], sizes = [8, 128], strides = [1, 1]} : vector<104x128xf32> to vector<8x128xf32>
    %38 = vector.extract_strided_slice %20 {offsets = [56, 0], sizes = [8, 128], strides = [1, 1]} : vector<104x128xf32> to vector<8x128xf32>
    %39 = vector.extract_strided_slice %20 {offsets = [64, 0], sizes = [8, 128], strides = [1, 1]} : vector<104x128xf32> to vector<8x128xf32>
    %40 = vector.extract_strided_slice %20 {offsets = [72, 0], sizes = [8, 128], strides = [1, 1]} : vector<104x128xf32> to vector<8x128xf32>
    %41 = vector.extract_strided_slice %20 {offsets = [80, 0], sizes = [8, 128], strides = [1, 1]} : vector<104x128xf32> to vector<8x128xf32>
    %42 = vector.extract_strided_slice %20 {offsets = [88, 0], sizes = [8, 128], strides = [1, 1]} : vector<104x128xf32> to vector<8x128xf32>
    %43 = vector.extract_strided_slice %20 {offsets = [96, 0], sizes = [8, 128], strides = [1, 1]} : vector<104x128xf32> to vector<8x128xf32>
    %44 = arith.addf %31, %32 : vector<8x128xf32>
    %45 = arith.addf %33, %34 : vector<8x128xf32>
    %46 = arith.addf %35, %36 : vector<8x128xf32>
    %47 = arith.addf %37, %38 : vector<8x128xf32>
    %48 = arith.addf %39, %40 : vector<8x128xf32>
    %49 = arith.addf %41, %42 : vector<8x128xf32>
    %50 = arith.addf %44, %45 : vector<8x128xf32>
    %51 = arith.addf %46, %47 : vector<8x128xf32>
    %52 = arith.addf %48, %49 : vector<8x128xf32>
    %53 = arith.addf %50, %51 : vector<8x128xf32>
    %54 = arith.addf %52, %43 : vector<8x128xf32>
    %55 = arith.addf %53, %54 : vector<8x128xf32>
    %56 = arith.addf %30, %55 : vector<8x128xf32>
    %c0_13 = arith.constant 0 : index
    %c0_14 = arith.constant 0 : index
    %c0_15 = arith.constant 0 : index
    %c0_16 = arith.constant 0 : index
    %57 = vector.load %arg4[%c0_13, %c0_14, %c0_15, %c0_16] : memref<1x3x8x128xf32, #tpu.memory_space<vmem>>, vector<1x1x8x128xf32>
    %58 = vector.shape_cast %57 : vector<1x1x8x128xf32> to vector<8x128xf32>
    %59 = vector.shape_cast %56 : vector<8x128xf32> to vector<1x1x8x128xf32>
    tpu.vector_store %arg4[%c0_13, %c0_14, %c0_15, %c0_16], %59 {strides = array<i32>} : memref<1x3x8x128xf32, #tpu.memory_space<vmem>>, vector<1x1x8x128xf32>,
    %c0_17 = arith.constant 0 : index
    %c1 = arith.constant 1 : index
    %c0_18 = arith.constant 0 : index
    %c0_19 = arith.constant 0 : index
    %60 = vector.load %arg4[%c0_17, %c1, %c0_18, %c0_19] : memref<1x3x8x128xf32, #tpu.memory_space<vmem>>, vector<1x1x8x128xf32>
    %61 = vector.shape_cast %60 : vector<1x1x8x128xf32> to vector<8x128xf32>
    %62 = vector.extract_strided_slice %28 {offsets = [0, 0], sizes = [8, 128], strides = [1, 1]} : vector<104x128xf32> to vector<8x128xf32>
    %63 = vector.extract_strided_slice %28 {offsets = [8, 0], sizes = [8, 128], strides = [1, 1]} : vector<104x128xf32> to vector<8x128xf32>
    %64 = vector.extract_strided_slice %28 {offsets = [16, 0], sizes = [8, 128], strides = [1, 1]} : vector<104x128xf32> to vector<8x128xf32>
    %65 = vector.extract_strided_slice %28 {offsets = [24, 0], sizes = [8, 128], strides = [1, 1]} : vector<104x128xf32> to vector<8x128xf32>
    %66 = vector.extract_strided_slice %28 {offsets = [32, 0], sizes = [8, 128], strides = [1, 1]} : vector<104x128xf32> to vector<8x128xf32>
    %67 = vector.extract_strided_slice %28 {offsets = [40, 0], sizes = [8, 128], strides = [1, 1]} : vector<104x128xf32> to vector<8x128xf32>
    %68 = vector.extract_strided_slice %28 {offsets = [48, 0], sizes = [8, 128], strides = [1, 1]} : vector<104x128xf32> to vector<8x128xf32>
    %69 = vector.extract_strided_slice %28 {offsets = [56, 0], sizes = [8, 128], strides = [1, 1]} : vector<104x128xf32> to vector<8x128xf32>
    %70 = vector.extract_strided_slice %28 {offsets = [64, 0], sizes = [8, 128], strides = [1, 1]} : vector<104x128xf32> to vector<8x128xf32>
    %71 = vector.extract_strided_slice %28 {offsets = [72, 0], sizes = [8, 128], strides = [1, 1]} : vector<104x128xf32> to vector<8x128xf32>
    %72 = vector.extract_strided_slice %28 {offsets = [80, 0], sizes = [8, 128], strides = [1, 1]} : vector<104x128xf32> to vector<8x128xf32>
    %73 = vector.extract_strided_slice %28 {offsets = [88, 0], sizes = [8, 128], strides = [1, 1]} : vector<104x128xf32> to vector<8x128xf32>
    %74 = vector.extract_strided_slice %28 {offsets = [96, 0], sizes = [8, 128], strides = [1, 1]} : vector<104x128xf32> to vector<8x128xf32>
    %75 = arith.addf %62, %63 : vector<8x128xf32>
    %76 = arith.addf %64, %65 : vector<8x128xf32>
    %77 = arith.addf %66, %67 : vector<8x128xf32>
    %78 = arith.addf %68, %69 : vector<8x128xf32>
    %79 = arith.addf %70, %71 : vector<8x128xf32>
    %80 = arith.addf %72, %73 : vector<8x128xf32>
    %81 = arith.addf %75, %76 : vector<8x128xf32>
    %82 = arith.addf %77, %78 : vector<8x128xf32>
    %83 = arith.addf %79, %80 : vector<8x128xf32>
    %84 = arith.addf %81, %82 : vector<8x128xf32>
    %85 = arith.addf %83, %74 : vector<8x128xf32>
    %86 = arith.addf %84, %85 : vector<8x128xf32>
    %87 = arith.addf %61, %86 : vector<8x128xf32>
    %c0_20 = arith.constant 0 : index
    %c1_21 = arith.constant 1 : index
    %c0_22 = arith.constant 0 : index
    %c0_23 = arith.constant 0 : index
    %88 = vector.load %arg4[%c0_20, %c1_21, %c0_22, %c0_23] : memref<1x3x8x128xf32, #tpu.memory_space<vmem>>, vector<1x1x8x128xf32>
    %89 = vector.shape_cast %88 : vector<1x1x8x128xf32> to vector<8x128xf32>
    %90 = vector.shape_cast %87 : vector<8x128xf32> to vector<1x1x8x128xf32>
    tpu.vector_store %arg4[%c0_20, %c1_21, %c0_22, %c0_23], %90 {strides = array<i32>} : memref<1x3x8x128xf32, #tpu.memory_space<vmem>>, vector<1x1x8x128xf32>,
    %c0_24 = arith.constant 0 : index
    %c2 = arith.constant 2 : index
    %c0_25 = arith.constant 0 : index
    %c0_26 = arith.constant 0 : index
    %91 = vector.load %arg4[%c0_24, %c2, %c0_25, %c0_26] : memref<1x3x8x128xf32, #tpu.memory_space<vmem>>, vector<1x1x8x128xf32>
    %92 = vector.shape_cast %91 : vector<1x1x8x128xf32> to vector<8x128xf32>
    %93 = vector.extract_strided_slice %15 {offsets = [0, 0], sizes = [8, 128], strides = [1, 1]} : vector<104x128xf32> to vector<8x128xf32>
    %94 = vector.extract_strided_slice %15 {offsets = [8, 0], sizes = [8, 128], strides = [1, 1]} : vector<104x128xf32> to vector<8x128xf32>
    %95 = vector.extract_strided_slice %15 {offsets = [16, 0], sizes = [8, 128], strides = [1, 1]} : vector<104x128xf32> to vector<8x128xf32>
    %96 = vector.extract_strided_slice %15 {offsets = [24, 0], sizes = [8, 128], strides = [1, 1]} : vector<104x128xf32> to vector<8x128xf32>
    %97 = vector.extract_strided_slice %15 {offsets = [32, 0], sizes = [8, 128], strides = [1, 1]} : vector<104x128xf32> to vector<8x128xf32>
    %98 = vector.extract_strided_slice %15 {offsets = [40, 0], sizes = [8, 128], strides = [1, 1]} : vector<104x128xf32> to vector<8x128xf32>
    %99 = vector.extract_strided_slice %15 {offsets = [48, 0], sizes = [8, 128], strides = [1, 1]} : vector<104x128xf32> to vector<8x128xf32>
    %100 = vector.extract_strided_slice %15 {offsets = [56, 0], sizes = [8, 128], strides = [1, 1]} : vector<104x128xf32> to vector<8x128xf32>
    %101 = vector.extract_strided_slice %15 {offsets = [64, 0], sizes = [8, 128], strides = [1, 1]} : vector<104x128xf32> to vector<8x128xf32>
    %102 = vector.extract_strided_slice %15 {offsets = [72, 0], sizes = [8, 128], strides = [1, 1]} : vector<104x128xf32> to vector<8x128xf32>
    %103 = vector.extract_strided_slice %15 {offsets = [80, 0], sizes = [8, 128], strides = [1, 1]} : vector<104x128xf32> to vector<8x128xf32>
    %104 = vector.extract_strided_slice %15 {offsets = [88, 0], sizes = [8, 128], strides = [1, 1]} : vector<104x128xf32> to vector<8x128xf32>
    %105 = vector.extract_strided_slice %15 {offsets = [96, 0], sizes = [8, 128], strides = [1, 1]} : vector<104x128xf32> to vector<8x128xf32>
    %106 = arith.addf %93, %94 : vector<8x128xf32>
    %107 = arith.addf %95, %96 : vector<8x128xf32>
    %108 = arith.addf %97, %98 : vector<8x128xf32>
    %109 = arith.addf %99, %100 : vector<8x128xf32>
    %110 = arith.addf %101, %102 : vector<8x128xf32>
    %111 = arith.addf %103, %104 : vector<8x128xf32>
    %112 = arith.addf %106, %107 : vector<8x128xf32>
    %113 = arith.addf %108, %109 : vector<8x128xf32>
    %114 = arith.addf %110, %111 : vector<8x128xf32>
    %115 = arith.addf %112, %113 : vector<8x128xf32>
    %116 = arith.addf %114, %105 : vector<8x128xf32>
    %117 = arith.addf %115, %116 : vector<8x128xf32>
    %118 = arith.addf %92, %117 : vector<8x128xf32>
    %c0_27 = arith.constant 0 : index
    %c2_28 = arith.constant 2 : index
    %c0_29 = arith.constant 0 : index
    %c0_30 = arith.constant 0 : index
    %119 = vector.load %arg4[%c0_27, %c2_28, %c0_29, %c0_30] : memref<1x3x8x128xf32, #tpu.memory_space<vmem>>, vector<1x1x8x128xf32>
    %120 = vector.shape_cast %119 : vector<1x1x8x128xf32> to vector<8x128xf32>
    %121 = vector.shape_cast %118 : vector<8x128xf32> to vector<1x1x8x128xf32>
    tpu.vector_store %arg4[%c0_27, %c2_28, %c0_29, %c0_30], %121 {strides = array<i32>} : memref<1x3x8x128xf32, #tpu.memory_space<vmem>>, vector<1x1x8x128xf32>,
    return
  }
  func.func @transform_0(%arg0: i32, %arg1: i32) -> (i32, i32, i32) {
    %c1_i32 = arith.constant 1 : i32
    %0 = arith.muli %arg0, %c1_i32 : i32
    %1 = arith.addi %0, %arg1 : i32
    %c0_i32 = arith.constant 0 : i32
    %c0_i32_0 = arith.constant 0 : i32
    %c0_i32_1 = arith.constant 0 : i32
    return %c0_i32, %1, %c0_i32_0 : i32, i32, i32
  }
  func.func @transform_2(%arg0: i32, %arg1: i32) -> (i32, i32, i32, i32) {
    %c0_i32 = arith.constant 0 : i32
    %c0_i32_0 = arith.constant 0 : i32
    %c0_i32_1 = arith.constant 0 : i32
    %c0_i32_2 = arith.constant 0 : i32
    return %arg0, %c0_i32, %c0_i32_0, %c0_i32_1 : i32, i32, i32, i32
  }
}

</mosaic_0001>

<bundles_post_ra>
// kernel: multi_resolution_stft_loss.4
= control target key start
LH: loop header
LB: loop body
LE: loop exit
PB: predicated region body
PF: predicated region fallthrough
CT: control target
= control target key end

     0   :  { %s1559_s9 = smov 0   ;;  %s1561_s10 = smov 0   ;;  %s2150_s0 = inlined_call_operand.vmem [shape: bf16[2,64,256], index: 0, kind: input, shape index: {}]   ;;  %s2151_s1 = inlined_call_operand.vmem [shape: bf16[256,512], index: 1, kind: input, shape index: {}]   ;;  %s2152_s2 = inlined_call_operand.vmem [shape: f32[2,3,8,256], index: 2, kind: output, shape index: {}]  }
   0x1   :  { %s1563_s11 = smov 0   ;;  %s1565_s12 = smov 0  }
   0x2   :  { %s1567_s13 = smov 0  }
   0x3 LB: > { %s24_s14 = sadd.s32 1, %s1537_s12  ;;  %p40_p1 = scmp.ne.s32.totalorder %s1529_s10, %s1525_s9  ;;  %s1541_s13 = sphi %s1567_s13, %s12_s13   ;;  %s1537_s12 = sphi %s1565_s12, %s2156_s12   ;;  %s1533_s11 = sphi %s1563_s11, %s2155_s11   ;;  %s1529_s10 = sphi %s1561_s10, %s2154_s10   ;;  %s1525_s9 = sphi %s1559_s9, %s2153_s9  }
   0x4   : > { %p26_p0 = scmp.ge.s32.totalorder %s24_s14, 2  ;;  %p41_p2 = scmp.eq.s32.totalorder %s1541_s13, 0 }
   0x5   : > { %s33_s16 = sadd.s32 1, %s1529_s10  ;;  %p1370_p5 = scmp.ge.s32.totalorder %s1541_s13, 2 }
   0x6   : > { %s2158_s14 = smov (%p26_p0, %s24_s14), 0  ;;  %p42_p3 = por %p41_p2, %p40_p1 }
   0x7   : > { %s30_s15 = ssub.s32 %s1537_s12, %s2158_s14  ;;  %92 = sbr.rel (%p1370_p5) target bundleno = 22 (0x16), region = 16 }
   0x8   : > { %p31_p4 = scmp.eq.s32.totalorder %s30_s15, 0 }
   0xa   : > { %s1594_s17 = scalar_select %p31_p4, %s1529_s10, %s33_s16  }
   0xe   : > { %95 = sbr.rel (!%p42_p3) target bundleno = 22 (0x16), region = 20  ;;  %s97_s18 = sand.u32 (%p42_p3), 1, %s1529_s10  }
   0xf   : > { %s1398_s19 = sshll.u32 (%p42_p3), %s1537_s12, 5  ;;  %s1371_s20 = sshll.u32 (%p42_p3), %s97_s18, 6 }
  0x10   : > { %s104_s23 = scalar_lea.vmem (%p42_p3), %s2150_s0, %s1398_s19  ;;  %s99_s24 = scalar_lea.vmem (%p42_p3), [#allocation4], %s1371_s20 }
  0x11   : > { %v146_v0 = vld [vmem:[%s104_s23] sm:$0xff] (%p42_p3)  ;;  %v148_v1 = vld [vmem:[%s104_s23 + $0x8] sm:$0xff] (%p42_p3)  ;;  %v150_v2 = vld [vmem:[%s104_s23 + $0x10] sm:$0xff] (%p42_p3) }
  0x12   : > { %147 = vst [vmem:[%s99_s24] sm:$0xff] (%p42_p3), %v146_v0  ;;  %149 = vst [vmem:[%s99_s24 + $0x8] sm:$0xff] (%p42_p3), %v148_v1  ;;  %v152_v3 = vld [vmem:[%s104_s23 + $0x18] sm:$0xff] (%p42_p3)  ;;  %v154_v4 = vld [vmem:[%s104_s23 + $0x40] sm:$0xff] (%p42_p3) }
  0x13   : > { %151 = vst [vmem:[%s99_s24 + $0x10] sm:$0xff] (%p42_p3), %v150_v2  ;;  %v156_v5 = vld [vmem:[%s104_s23 + $0x48] sm:$0xff] (%p42_p3)  ;;  %153 = vst [vmem:[%s99_s24 + $0x18] sm:$0xff] (%p42_p3), %v152_v3  ;;  %v158_v6 = vld [vmem:[%s104_s23 + $0x50] sm:$0xff] (%p42_p3) }
  0x14   : > { %155 = vst [vmem:[%s99_s24 + $0x20] sm:$0xff] (%p42_p3), %v154_v4  ;;  %157 = vst [vmem:[%s99_s24 + $0x28] sm:$0xff] (%p42_p3), %v156_v5  ;;  %v160_v7 = vld [vmem:[%s104_s23 + $0x58] sm:$0xff] (%p42_p3) }
  0x15   : > { %159 = vst [vmem:[%s99_s24 + $0x30] sm:$0xff] %v158_v6  ;;  %161 = vst [vmem:[%s99_s24 + $0x38] sm:$0xff] %v160_v7 }
  0x16 PF: > { %p1375_p6 = scmp.ge.s32.totalorder %s1541_s13, 1  ;;  %p166_p7 = scmp.lt.s32.totalorder %s1541_s13, 3 }
  0x18   : > { %p167_p8 = pnand %p1375_p6, %p166_p7 }
  0x19   : > { %s173_s25 = sand.u32 (!%p167_p8), 1, %s1525_s9   ;;  %p194_p9 = scmp.lt.s32.totalorder (!%p167_p8), %s1533_s11, 1  ;;  %v226_v8 = vld [vmem:[%s2151_s1] sm:$0xf] (!%p167_p8)  ;;  %v228_v10 = vld [vmem:[%s2151_s1 + $0x10] sm:$0xf] (!%p167_p8) }
  0x1a   : > { %170 = sbr.rel (%p167_p8) target bundleno = 460 (0x1cc), region = 58  ;;  %v240_v9 = vld [vmem:[%s2151_s1 + $0x1c] sm:$0xff] (!%p167_p8)   ;;  %s1612_s30 = sshll.u32 (!%p167_p8), %s173_s25, 6  ;;  %227 = vst [vmem:[#allocation2] sm:$0xf] (!%p167_p8), %v226_v8  ;;  %v1543_v31 = vmov (!%p167_p8), 0.0  }
  0x1b   : > { %v230_v11 = vld [vmem:[%s2151_s1 + $0x4] sm:$0xf] (!%p167_p8)  ;;  %241 = vst [vmem:[#allocation2 + $0x1c] sm:$0xff] (!%p167_p8), %v240_v9   ;;  %v256_v12 = vld [vmem:[%s2151_s1 + $0x3c] sm:$0xff] (!%p167_p8)   ;;  %229 = vst [vmem:[#allocation2 + $0x4] sm:$0xf] (!%p167_p8), %v228_v10 }
  0x1c   : > { %231 = vst [vmem:[#allocation2 + $0x8] sm:$0xf] (!%p167_p8), %v230_v11  ;;  %v232_v13 = vld [vmem:[%s2151_s1 + $0x14] sm:$0xf] (!%p167_p8)  ;;  %v234_v14 = vld [vmem:[%s2151_s1 + $0x8] sm:$0xf] (!%p167_p8) }
  0x1d   : > { %257 = vst [vmem:[#allocation2 + $0x3c] sm:$0xff] (!%p167_p8), %v256_v12   ;;  %v272_v15 = vld [vmem:[%s2151_s1 + $0x5c] sm:$0xff] (!%p167_p8)   ;;  %233 = vst [vmem:[#allocation2 + $0xc] sm:$0xf] (!%p167_p8), %v232_v13  ;;  %v236_v16 = vld [vmem:[%s2151_s1 + $0x18] sm:$0xf] (!%p167_p8) }
  0x1e   : > { %235 = vst [vmem:[#allocation2 + $0x10] sm:$0xf] (!%p167_p8), %v234_v14  ;;  %v238_v17 = vld [vmem:[%s2151_s1 + $0xc] sm:$0xf] (!%p167_p8)  ;;  %273 = vst [vmem:[#allocation2 + $0x5c] sm:$0xff] (!%p167_p8), %v272_v15   ;;  %v288_v18 = vld [vmem:[%s2151_s1 + $0x7c] sm:$0xff] (!%p167_p8)  }
  0x1f   : > { %237 = vst [vmem:[#allocation2 + $0x14] sm:$0xf] (!%p167_p8), %v236_v16  ;;  %239 = vst [vmem:[#allocation2 + $0x18] sm:$0xf] (!%p167_p8), %v238_v17  ;;  %v244_v19 = vld [vmem:[%s2151_s1 + $0x30] sm:$0xf] (!%p167_p8) }
  0x20   : > { %v246_v20 = vld [vmem:[%s2151_s1 + $0x24] sm:$0xf] (!%p167_p8)  ;;  %v248_v21 = vld [vmem:[%s2151_s1 + $0x34] sm:$0xf] (!%p167_p8)  ;;  %289 = vst [vmem:[#allocation2 + $0x7c] sm:$0xff] (!%p167_p8), %v288_v18   ;;  %v304_v24 = vld [vmem:[%s2151_s1 + $0x9c] sm:$0xff] (!%p167_p8)  }
  0x21   : > { %s2160_s11 = smov (!%p194_p9, %s1533_s11), 1  ;;  %245 = vst [vmem:[#allocation2 + $0x24] sm:$0xf] %v244_v19  ;;  %247 = vst [vmem:[#allocation2 + $0x28] sm:$0xf] %v246_v20  ;;  %v320_v51 = vld [vmem:[%s2151_s1 + $0xbc] sm:$0xff]  }
  0x22   : > { %s1399_s6 = smul.u32 48, %s2160_s11  ;;  %249 = vst [vmem:[#allocation2 + $0x2c] sm:$0xf] %v248_v21  ;;  %v250_v22 = vld [vmem:[%s2151_s1 + $0x28] sm:$0xf]  ;;  %305 = vst [vmem:[#allocation2 + $0x9c] sm:$0xff] %v304_v24  }
  0x23   : > { %v252_v23 = vld [vmem:[%s2151_s1 + $0x38] sm:$0xf]  ;;  %251 = vst [vmem:[#allocation2 + $0x30] sm:$0xf] %v250_v22  ;;  %v254_v25 = vld [vmem:[%s2151_s1 + $0x2c] sm:$0xf] }
  0x24   : > { %253 = vst [vmem:[#allocation2 + $0x34] sm:$0xf] %v252_v23  ;;  %v260_v26 = vld [vmem:[%s2151_s1 + $0x50] sm:$0xf]  ;;  %v262_v27 = vld [vmem:[%s2151_s1 + $0x44] sm:$0xf]  ;;  %s1674_s26 = scalar_lea.vmem %s2152_s2, %s1399_s6 }
  0x25   : > { %255 = vst [vmem:[#allocation2 + $0x38] sm:$0xf] %v254_v25  ;;  %261 = vst [vmem:[#allocation2 + $0x44] sm:$0xf] %v260_v26  ;;  %v264_v28 = vld [vmem:[%s2151_s1 + $0x54] sm:$0xf] }
  0x26   : > { %263 = vst [vmem:[#allocation2 + $0x48] sm:$0xf] %v262_v27  ;;  %v266_v29 = vld [vmem:[%s2151_s1 + $0x48] sm:$0xf]  ;;  %v268_v30 = vld [vmem:[%s2151_s1 + $0x58] sm:$0xf]  ;;  %203 = vst [vmem:[%s1674_s26] sm:$0xff] %v1543_v31 }
  0x27   : > { %204 = vst [vmem:[%s1674_s26 + $0x8] sm:$0xff] %v1543_v31  ;;  %205 = vst [vmem:[%s1674_s26 + $0x10] sm:$0xff] %v1543_v31  ;;  %v270_v32 = vld [vmem:[%s2151_s1 + $0x4c] sm:$0xf]  ;;  %v276_v33 = vld [vmem:[%s2151_s1 + $0x70] sm:$0xf] }
  0x28   : > { %206 = vst [vmem:[%s1674_s26 + $0x18] sm:$0xff] %v1543_v31  ;;  %207 = vst [vmem:[%s1674_s26 + $0x20] sm:$0xff] %v1543_v31  ;;  %v278_v34 = vld [vmem:[%s2151_s1 + $0x64] sm:$0xf]  ;;  %v280_v35 = vld [vmem:[%s2151_s1 + $0x74] sm:$0xf] }
  0x29   : > { %208 = vst [vmem:[%s1674_s26 + $0x28] sm:$0xff] %v1543_v31  ;;  %265 = vst [vmem:[#allocation2 + $0x4c] sm:$0xf] %v264_v28  ;;  %v282_v36 = vld [vmem:[%s2151_s1 + $0x68] sm:$0xf]  ;;  %v336_v58 = vld [vmem:[%s2151_s1 + $0xdc] sm:$0xff]  }
  0x2a   : > { %267 = vst [vmem:[#allocation2 + $0x50] sm:$0xf] %v266_v29  ;;  %269 = vst [vmem:[#allocation2 + $0x54] sm:$0xf] %v268_v30  ;;  %v284_v37 = vld [vmem:[%s2151_s1 + $0x78] sm:$0xf] }
  0x2b   : > { %271 = vst [vmem:[#allocation2 + $0x58] sm:$0xf] %v270_v32  ;;  %277 = vst [vmem:[#allocation2 + $0x64] sm:$0xf] %v276_v33  ;;  %v286_v38 = vld [vmem:[%s2151_s1 + $0x6c] sm:$0xf] }
  0x2c   : > { %279 = vst [vmem:[#allocation2 + $0x68] sm:$0xf] %v278_v34  ;;  %281 = vst [vmem:[#allocation2 + $0x6c] sm:$0xf] %v280_v35  ;;  %v292_v39 = vld [vmem:[%s2151_s1 + $0x90] sm:$0xf] }
  0x2d   : > { %283 = vst [vmem:[#allocation2 + $0x70] sm:$0xf] %v282_v36  ;;  %285 = vst [vmem:[#allocation2 + $0x74] sm:$0xf] %v284_v37  ;;  %v294_v40 = vld [vmem:[%s2151_s1 + $0x84] sm:$0xf] }
  0x2e   : > { %287 = vst [vmem:[#allocation2 + $0x78] sm:$0xf] %v286_v38  ;;  %293 = vst [vmem:[#allocation2 + $0x84] sm:$0xf] %v292_v39  ;;  %v296_v41 = vld [vmem:[%s2151_s1 + $0x94] sm:$0xf] }
  0x2f   : > { %295 = vst [vmem:[#allocation2 + $0x88] sm:$0xf] %v294_v40  ;;  %v298_v42 = vld [vmem:[%s2151_s1 + $0x88] sm:$0xf]  ;;  %v300_v43 = vld [vmem:[%s2151_s1 + $0x98] sm:$0xf] }
  0x30   : > { %297 = vst [vmem:[#allocation2 + $0x8c] sm:$0xf] %v296_v41  ;;  %299 = vst [vmem:[#allocation2 + $0x90] sm:$0xf] %v298_v42  ;;  %v302_v44 = vld [vmem:[%s2151_s1 + $0x8c] sm:$0xf] }
  0x31   : > { %301 = vst [vmem:[#allocation2 + $0x94] sm:$0xf] %v300_v43  ;;  %v308_v45 = vld [vmem:[%s2151_s1 + $0xb0] sm:$0xf]  ;;  %v310_v46 = vld [vmem:[%s2151_s1 + $0xa4] sm:$0xf] }
  0x32   : > { %303 = vst [vmem:[#allocation2 + $0x98] sm:$0xf] %v302_v44  ;;  %309 = vst [vmem:[#allocation2 + $0xa4] sm:$0xf] %v308_v45  ;;  %v312_v47 = vld [vmem:[%s2151_s1 + $0xb4] sm:$0xf] }
  0x33   : > { %311 = vst [vmem:[#allocation2 + $0xa8] sm:$0xf] %v310_v46  ;;  %v314_v48 = vld [vmem:[%s2151_s1 + $0xa8] sm:$0xf]  ;;  %v316_v49 = vld [vmem:[%s2151_s1 + $0xb8] sm:$0xf] }
  0x34   : > { %313 = vst [vmem:[#allocation2 + $0xac] sm:$0xf] %v312_v47  ;;  %315 = vst [vmem:[#allocation2 + $0xb0] sm:$0xf] %v314_v48  ;;  %v318_v50 = vld [vmem:[%s2151_s1 + $0xac] sm:$0xf] }
  0x35   : > { %317 = vst [vmem:[#allocation2 + $0xb4] sm:$0xf] %v316_v49  ;;  %v324_v52 = vld [vmem:[%s2151_s1 + $0xd0] sm:$0xf]  ;;  %319 = vst [vmem:[#allocation2 + $0xb8] sm:$0xf] %v318_v50 }
  0x36   : > { %321 = vst [vmem:[#allocation2 + $0xbc] sm:$0xff] %v320_v51   ;;  %325 = vst [vmem:[#allocation2 + $0xc4] sm:$0xf] %v324_v52  ;;  %v326_v53 = vld [vmem:[%s2151_s1 + $0xc4] sm:$0xf]  ;;  %v352_v1 = vld [vmem:[%s2151_s1 + $0xfc] sm:$0xff]  }
  0x37   : > { %v328_v54 = vld [vmem:[%s2151_s1 + $0xd4] sm:$0xf]  ;;  %v330_v55 = vld [vmem:[%s2151_s1 + $0xc8] sm:$0xf]  ;;  %327 = vst [vmem:[#allocation2 + $0xc8] sm:$0xf] %v326_v53 }
  0x38   : > { %329 = vst [vmem:[#allocation2 + $0xcc] sm:$0xf] %v328_v54  ;;  %331 = vst [vmem:[#allocation2 + $0xd0] sm:$0xf] %v330_v55  ;;  %v332_v56 = vld [vmem:[%s2151_s1 + $0xd8] sm:$0xf] }
  0x39   : > { %v334_v57 = vld [vmem:[%s2151_s1 + $0xcc] sm:$0xf]  ;;  %333 = vst [vmem:[#allocation2 + $0xd4] sm:$0xf] %v332_v56  ;;  %337 = vst [vmem:[#allocation2 + $0xdc] sm:$0xff] %v336_v58   ;;  %v368_v8 = vld [vmem:[%s2151_s1 + $0x11c] sm:$0xff]  }
  0x3a   : > { %335 = vst [vmem:[#allocation2 + $0xd8] sm:$0xf] %v334_v57  ;;  %v340_v59 = vld [vmem:[%s2151_s1 + $0xf0] sm:$0xf]  ;;  %v342_v60 = vld [vmem:[%s2151_s1 + $0xe4] sm:$0xf] }
  0x3b   : > { %v344_v61 = vld [vmem:[%s2151_s1 + $0xf4] sm:$0xf]  ;;  %341 = vst [vmem:[#allocation2 + $0xe4] sm:$0xf] %v340_v59  ;;  %343 = vst [vmem:[#allocation2 + $0xe8] sm:$0xf] %v342_v60 }
  0x3c   : > { %345 = vst [vmem:[#allocation2 + $0xec] sm:$0xf] %v344_v61  ;;  %v346_v62 = vld [vmem:[%s2151_s1 + $0xe8] sm:$0xf]  ;;  %v348_v63 = vld [vmem:[%s2151_s1 + $0xf8] sm:$0xf] }
  0x3d   : > { %v350_v0 = vld [vmem:[%s2151_s1 + $0xec] sm:$0xf]  ;;  %347 = vst [vmem:[#allocation2 + $0xf0] sm:$0xf] %v346_v62  ;;  %349 = vst [vmem:[#allocation2 + $0xf4] sm:$0xf] %v348_v63 }
  0x3e   : > { %351 = vst [vmem:[#allocation2 + $0xf8] sm:$0xf] %v350_v0  ;;  %v356_v2 = vld [vmem:[%s2151_s1 + $0x110] sm:$0xf]  ;;  %v358_v3 = vld [vmem:[%s2151_s1 + $0x104] sm:$0xf] }
  0x3f   : > { %353 = vst [vmem:[#allocation2 + $0xfc] sm:$0xff] %v352_v1   ;;  %357 = vst [vmem:[#allocation2 + $0x104] sm:$0xf] %v356_v2  ;;  %v360_v4 = vld [vmem:[%s2151_s1 + $0x114] sm:$0xf]  ;;  %v384_v15 = vld [vmem:[%s2151_s1 + $0x13c] sm:$0xff]  }
  0x40   : > { %359 = vst [vmem:[#allocation2 + $0x108] sm:$0xf] %v358_v3  ;;  %v362_v5 = vld [vmem:[%s2151_s1 + $0x108] sm:$0xf]  ;;  %v364_v6 = vld [vmem:[%s2151_s1 + $0x118] sm:$0xf] }
  0x41   : > { %361 = vst [vmem:[#allocation2 + $0x10c] sm:$0xf] %v360_v4  ;;  %363 = vst [vmem:[#allocation2 + $0x110] sm:$0xf] %v362_v5  ;;  %v366_v7 = vld [vmem:[%s2151_s1 + $0x10c] sm:$0xf] }
  0x42   : > { %365 = vst [vmem:[#allocation2 + $0x114] sm:$0xf] %v364_v6  ;;  %v372_v9 = vld [vmem:[%s2151_s1 + $0x130] sm:$0xf]  ;;  %367 = vst [vmem:[#allocation2 + $0x118] sm:$0xf] %v366_v7 }
  0x43   : > { %369 = vst [vmem:[#allocation2 + $0x11c] sm:$0xff] %v368_v8   ;;  %373 = vst [vmem:[#allocation2 + $0x124] sm:$0xf] %v372_v9  ;;  %v374_v10 = vld [vmem:[%s2151_s1 + $0x124] sm:$0xf]  ;;  %v400_v22 = vld [vmem:[%s2151_s1 + $0x15c] sm:$0xff]  }
  0x44   : > { %v376_v11 = vld [vmem:[%s2151_s1 + $0x134] sm:$0xf]  ;;  %v378_v12 = vld [vmem:[%s2151_s1 + $0x128] sm:$0xf]  ;;  %375 = vst [vmem:[#allocation2 + $0x128] sm:$0xf] %v374_v10 }
  0x45   : > { %377 = vst [vmem:[#allocation2 + $0x12c] sm:$0xf] %v376_v11  ;;  %379 = vst [vmem:[#allocation2 + $0x130] sm:$0xf] %v378_v12  ;;  %v380_v13 = vld [vmem:[%s2151_s1 + $0x138] sm:$0xf] }
  0x46   : > { %v382_v14 = vld [vmem:[%s2151_s1 + $0x12c] sm:$0xf]  ;;  %381 = vst [vmem:[#allocation2 + $0x134] sm:$0xf] %v380_v13  ;;  %385 = vst [vmem:[#allocation2 + $0x13c] sm:$0xff] %v384_v15   ;;  %v416_v29 = vld [vmem:[%s2151_s1 + $0x17c] sm:$0xff]  }
  0x47   : > { %383 = vst [vmem:[#allocation2 + $0x138] sm:$0xf] %v382_v14  ;;  %v388_v16 = vld [vmem:[%s2151_s1 + $0x150] sm:$0xf]  ;;  %v390_v17 = vld [vmem:[%s2151_s1 + $0x144] sm:$0xf] }
  0x48   : > { %v392_v18 = vld [vmem:[%s2151_s1 + $0x154] sm:$0xf]  ;;  %389 = vst [vmem:[#allocation2 + $0x144] sm:$0xf] %v388_v16  ;;  %391 = vst [vmem:[#allocation2 + $0x148] sm:$0xf] %v390_v17 }
  0x49   : > { %393 = vst [vmem:[#allocation2 + $0x14c] sm:$0xf] %v392_v18  ;;  %v394_v19 = vld [vmem:[%s2151_s1 + $0x148] sm:$0xf]  ;;  %v396_v20 = vld [vmem:[%s2151_s1 + $0x158] sm:$0xf] }
  0x4a   : > { %v398_v21 = vld [vmem:[%s2151_s1 + $0x14c] sm:$0xf]  ;;  %395 = vst [vmem:[#allocation2 + $0x150] sm:$0xf] %v394_v19  ;;  %397 = vst [vmem:[#allocation2 + $0x154] sm:$0xf] %v396_v20 }
  0x4b   : > { %399 = vst [vmem:[#allocation2 + $0x158] sm:$0xf] %v398_v21  ;;  %v404_v23 = vld [vmem:[%s2151_s1 + $0x170] sm:$0xf]  ;;  %v406_v24 = vld [vmem:[%s2151_s1 + $0x164] sm:$0xf] }
  0x4c   : > { %401 = vst [vmem:[#allocation2 + $0x15c] sm:$0xff] %v400_v22   ;;  %405 = vst [vmem:[#allocation2 + $0x164] sm:$0xf] %v404_v23  ;;  %v408_v25 = vld [vmem:[%s2151_s1 + $0x174] sm:$0xf]  ;;  %v432_v36 = vld [vmem:[%s2151_s1 + $0x19c] sm:$0xff]  }
  0x4d   : > { %407 = vst [vmem:[#allocation2 + $0x168] sm:$0xf] %v406_v24  ;;  %v410_v26 = vld [vmem:[%s2151_s1 + $0x168] sm:$0xf]  ;;  %v412_v27 = vld [vmem:[%s2151_s1 + $0x178] sm:$0xf] }
  0x4e   : > { %409 = vst [vmem:[#allocation2 + $0x16c] sm:$0xf] %v408_v25  ;;  %411 = vst [vmem:[#allocation2 + $0x170] sm:$0xf] %v410_v26  ;;  %v414_v28 = vld [vmem:[%s2151_s1 + $0x16c] sm:$0xf] }
  0x4f   : > { %413 = vst [vmem:[#allocation2 + $0x174] sm:$0xf] %v412_v27  ;;  %v420_v30 = vld [vmem:[%s2151_s1 + $0x190] sm:$0xf]  ;;  %415 = vst [vmem:[#allocation2 + $0x178] sm:$0xf] %v414_v28 }
  0x50   : > { %417 = vst [vmem:[#allocation2 + $0x17c] sm:$0xff] %v416_v29   ;;  %421 = vst [vmem:[#allocation2 + $0x184] sm:$0xf] %v420_v30  ;;  %v422_v31 = vld [vmem:[%s2151_s1 + $0x184] sm:$0xf]  ;;  %v448_v43 = vld [vmem:[%s2151_s1 + $0x1bc] sm:$0xff]  }
  0x51   : > { %v424_v32 = vld [vmem:[%s2151_s1 + $0x194] sm:$0xf]  ;;  %v426_v33 = vld [vmem:[%s2151_s1 + $0x188] sm:$0xf]  ;;  %423 = vst [vmem:[#allocation2 + $0x188] sm:$0xf] %v422_v31 }
  0x52   : > { %425 = vst [vmem:[#allocation2 + $0x18c] sm:$0xf] %v424_v32  ;;  %427 = vst [vmem:[#allocation2 + $0x190] sm:$0xf] %v426_v33  ;;  %v428_v34 = vld [vmem:[%s2151_s1 + $0x198] sm:$0xf] }
  0x53   : > { %v430_v35 = vld [vmem:[%s2151_s1 + $0x18c] sm:$0xf]  ;;  %429 = vst [vmem:[#allocation2 + $0x194] sm:$0xf] %v428_v34  ;;  %433 = vst [vmem:[#allocation2 + $0x19c] sm:$0xff] %v432_v36   ;;  %v464_v50 = vld [vmem:[%s2151_s1 + $0x1dc] sm:$0xff]  }
  0x54   : > { %431 = vst [vmem:[#allocation2 + $0x198] sm:$0xf] %v430_v35  ;;  %v436_v37 = vld [vmem:[%s2151_s1 + $0x1b0] sm:$0xf]  ;;  %v438_v38 = vld [vmem:[%s2151_s1 + $0x1a4] sm:$0xf] }
  0x55   : > { %v440_v39 = vld [vmem:[%s2151_s1 + $0x1b4] sm:$0xf]  ;;  %437 = vst [vmem:[#allocation2 + $0x1a4] sm:$0xf] %v436_v37  ;;  %439 = vst [vmem:[#allocation2 + $0x1a8] sm:$0xf] %v438_v38 }
  0x56   : > { %441 = vst [vmem:[#allocation2 + $0x1ac] sm:$0xf] %v440_v39  ;;  %v442_v40 = vld [vmem:[%s2151_s1 + $0x1a8] sm:$0xf]  ;;  %v444_v41 = vld [vmem:[%s2151_s1 + $0x1b8] sm:$0xf] }
  0x57   : > { %v446_v42 = vld [vmem:[%s2151_s1 + $0x1ac] sm:$0xf]  ;;  %443 = vst [vmem:[#allocation2 + $0x1b0] sm:$0xf] %v442_v40  ;;  %445 = vst [vmem:[#allocation2 + $0x1b4] sm:$0xf] %v444_v41 }
  0x58   : > { %447 = vst [vmem:[#allocation2 + $0x1b8] sm:$0xf] %v446_v42  ;;  %v452_v44 = vld [vmem:[%s2151_s1 + $0x1d0] sm:$0xf]  ;;  %v454_v45 = vld [vmem:[%s2151_s1 + $0x1c4] sm:$0xf] }
  0x59   : > { %449 = vst [vmem:[#allocation2 + $0x1bc] sm:$0xff] %v448_v43   ;;  %453 = vst [vmem:[#allocation2 + $0x1c4] sm:$0xf] %v452_v44  ;;  %v456_v46 = vld [vmem:[%s2151_s1 + $0x1d4] sm:$0xf]  ;;  %s1962_s23 = scalar_lea.vmem [#allocation4], %s1612_s30 }
  0x5a   : > { %455 = vst [vmem:[#allocation2 + $0x1c8] sm:$0xf] %v454_v45  ;;  %v458_v47 = vld [vmem:[%s2151_s1 + $0x1c8] sm:$0xf]  ;;  %v460_v48 = vld [vmem:[%s2151_s1 + $0x1d8] sm:$0xf] }
  0x5b   : > { %457 = vst [vmem:[#allocation2 + $0x1cc] sm:$0xf] %v456_v46  ;;  %459 = vst [vmem:[#allocation2 + $0x1d0] sm:$0xf] %v458_v47  ;;  %v462_v49 = vld [vmem:[%s2151_s1 + $0x1cc] sm:$0xf] }
  0x5c   : > { %461 = vst [vmem:[#allocation2 + $0x1d4] sm:$0xf] %v460_v48  ;;  %v468_v51 = vld [vmem:[%s2151_s1 + $0x1f0] sm:$0xf]  ;;  %463 = vst [vmem:[#allocation2 + $0x1d8] sm:$0xf] %v462_v49 }
  0x5d   : > { %465 = vst [vmem:[#allocation2 + $0x1dc] sm:$0xff] %v464_v50   ;;  %469 = vst [vmem:[#allocation2 + $0x1e4] sm:$0xf] %v468_v51  ;;  %v470_v52 = vld [vmem:[%s2151_s1 + $0x1e4] sm:$0xf] }
  0x5e   : > { %v472_v53 = vld [vmem:[%s2151_s1 + $0x1f4] sm:$0xf]  ;;  %v474_v54 = vld [vmem:[%s2151_s1 + $0x1e8] sm:$0xf]  ;;  %471 = vst [vmem:[#allocation2 + $0x1e8] sm:$0xf] %v470_v52 }
  0x5f   : > { %473 = vst [vmem:[#allocation2 + $0x1ec] sm:$0xf] %v472_v53  ;;  %475 = vst [vmem:[#allocation2 + $0x1f0] sm:$0xf] %v474_v54  ;;  %v476_v55 = vld [vmem:[%s2151_s1 + $0x1f8] sm:$0xf] }
  0x60   : > { %v478_v56 = vld [vmem:[%s2151_s1 + $0x1ec] sm:$0xf]  ;;  %v480_v57 = vld [vmem:[%s2151_s1 + $0x1fc] sm:$0xf]  ;;  %477 = vst [vmem:[#allocation2 + $0x1f4] sm:$0xf] %v476_v55 }
  0x61   : > { %479 = vst [vmem:[#allocation2 + $0x1f8] sm:$0xf] %v478_v56  ;;  %481 = vst [vmem:[#allocation2 + $0x1fc] sm:$0xf] %v480_v57 }
  0x62   : > { %768 = vsyncadd [#allocation3], 8192 }
  0x63   : > { %1521 = dma.done.wait [#allocation3], 8192 }
  0x64   : > { %1522 = vsyncadd [#allocation3], 4294959104  ;;  %v774_v58 = vld [vmem:[#allocation2 + $0x8] sm:$0xff]  ;;  %v776_v59 = vld [vmem:[#allocation2 + $0x18] sm:$0xff] }
  0x65   : > { %v773_v60 = vld [vmem:[#allocation2] sm:$0xff]  ;;  %885 = vmatprep.subr.bf16.mxu0 %v774_v58  ;;  %958 = vmatprep.subr.bf16.mxu1 %v776_v59  ;;  %v775_v61 = vld [vmem:[#allocation2 + $0x10] sm:$0xff]  ;;  %v778_v62 = vld [vmem:[#allocation2 + $0x28] sm:$0xff] }
  0x66   : > { %v780_v63 = vld [vmem:[#allocation2 + $0x38] sm:$0xff]  ;;  %886 = vmatpush1.bf16.msra.mxu0 %v773_v60  ;;  %959 = vmatpush1.bf16.msra.mxu1 %v775_v61  ;;  %v777_v0 = vld [vmem:[#allocation2 + $0x20] sm:$0xff]  ;;  %v779_v1 = vld [vmem:[#allocation2 + $0x30] sm:$0xff] }
  0x67   : > { %887 = vmatprep.subr.bf16.mxu0 %v778_v62  ;;  %960 = vmatprep.subr.bf16.mxu1 %v780_v63  ;;  %v782_v2 = vld [vmem:[#allocation2 + $0x48] sm:$0xff]  ;;  %v784_v3 = vld [vmem:[#allocation2 + $0x58] sm:$0xff]  ;;  %v781_v4 = vld [vmem:[#allocation2 + $0x40] sm:$0xff] }
  0x68   : > { %v783_v5 = vld [vmem:[#allocation2 + $0x50] sm:$0xff]  ;;  %v786_v6 = vld [vmem:[#allocation2 + $0x68] sm:$0xff]  ;;  %v788_v7 = vld [vmem:[#allocation2 + $0x78] sm:$0xff] }
  0x69   : > { %v785_v8 = vld [vmem:[#allocation2 + $0x60] sm:$0xff]  ;;  %v787_v9 = vld [vmem:[#allocation2 + $0x70] sm:$0xff]  ;;  %v790_v10 = vld [vmem:[#allocation2 + $0x88] sm:$0xff] }
  0x6a   : > { %888 = vmatpush1.bf16.msra.mxu0 %v777_v0  ;;  %961 = vmatpush1.bf16.msra.mxu1 %v779_v1  ;;  %v792_v11 = vld [vmem:[#allocation2 + $0x98] sm:$0xff]  ;;  %v789_v12 = vld [vmem:[#allocation2 + $0x80] sm:$0xff]  ;;  %v791_v13 = vld [vmem:[#allocation2 + $0x90] sm:$0xff] }
  0x6b   : > { %889 = vmatprep.subr.bf16.mxu0 %v782_v2  ;;  %962 = vmatprep.subr.bf16.mxu1 %v784_v3  ;;  %v794_v14 = vld [vmem:[#allocation2 + $0xa8] sm:$0xff]  ;;  %v796_v15 = vld [vmem:[#allocation2 + $0xb8] sm:$0xff]  ;;  %v793_v16 = vld [vmem:[#allocation2 + $0xa0] sm:$0xff] }
  0x6c   : > { %v795_v17 = vld [vmem:[#allocation2 + $0xb0] sm:$0xff]  ;;  %v798_v18 = vld [vmem:[#allocation2 + $0xc8] sm:$0xff]  ;;  %v800_v19 = vld [vmem:[#allocation2 + $0xd8] sm:$0xff] }
  0x6d   : > { %v797_v20 = vld [vmem:[#allocation2 + $0xc0] sm:$0xff]  ;;  %v799_v22 = vld [vmem:[#allocation2 + $0xd0] sm:$0xff]  ;;  %v802_v23 = vld [vmem:[#allocation2 + $0xe8] sm:$0xff] }
  0x6e   : > { %890 = vmatpush1.bf16.msra.mxu0 %v781_v4  ;;  %963 = vmatpush1.bf16.msra.mxu1 %v783_v5  ;;  %v1443_v21 = vld [vmem:[%s1962_s23 + $0x4] ss:$8 sps:$4 sm:$0xff]   ;;  %v804_v24 = vld [vmem:[#allocation2 + $0xf8] sm:$0xff]  ;;  %v803_v26 = vld [vmem:[#allocation2 + $0xf0] sm:$0xff] }
  0x6f   : > { %891 = vmatprep.subr.bf16.mxu0 %v786_v6  ;;  %964 = vmatprep.subr.bf16.mxu1 %v788_v7  ;;  %v801_v25 = vld [vmem:[#allocation2 + $0xe0] sm:$0xff]  ;;  %v806_v27 = vld [vmem:[#allocation2 + $0x108] sm:$0xff]  ;;  %v808_v28 = vld [vmem:[#allocation2 + $0x118] sm:$0xff] }
  0x70   : > { %917 = vmatprep.mubr.bf16.mxu0 %v1443_v21  ;;  %990 = vmatprep.mubr.bf16.mxu1 %v1443_v21  ;;  %v805_v29 = vld [vmem:[#allocation2 + $0x100] sm:$0xff]  ;;  %v807_v30 = vld [vmem:[#allocation2 + $0x110] sm:$0xff]  ;;  %v810_v31 = vld [vmem:[#allocation2 + $0x128] sm:$0xff] }
  0x71   : > { %v812_v32 = vld [vmem:[#allocation2 + $0x138] sm:$0xff]  ;;  %v809_v33 = vld [vmem:[#allocation2 + $0x120] sm:$0xff]  ;;  %v811_v34 = vld [vmem:[#allocation2 + $0x130] sm:$0xff] }
  0x72   : > { %892 = vmatpush1.bf16.msra.mxu0 %v785_v8  ;;  %965 = vmatpush1.bf16.msra.mxu1 %v787_v9  ;;  %v814_v35 = vld [vmem:[#allocation2 + $0x148] sm:$0xff]  ;;  %v816_v36 = vld [vmem:[#allocation2 + $0x158] sm:$0xff]  ;;  %v813_v37 = vld [vmem:[#allocation2 + $0x140] sm:$0xff] }
  0x73   : > { %893 = vmatprep.subr.bf16.mxu0 %v790_v10  ;;  %966 = vmatprep.subr.bf16.mxu1 %v792_v11  ;;  %v815_v38 = vld [vmem:[#allocation2 + $0x150] sm:$0xff]  ;;  %v818_v39 = vld [vmem:[#allocation2 + $0x168] sm:$0xff]  ;;  %v820_v40 = vld [vmem:[#allocation2 + $0x178] sm:$0xff] }
  0x74   : > { %v817_v41 = vld [vmem:[#allocation2 + $0x160] sm:$0xff]  ;;  %v819_v42 = vld [vmem:[#allocation2 + $0x170] sm:$0xff]  ;;  %v822_v43 = vld [vmem:[#allocation2 + $0x188] sm:$0xff] }
  0x75   : > { %v824_v44 = vld [vmem:[#allocation2 + $0x198] sm:$0xff]  ;;  %v821_v45 = vld [vmem:[#allocation2 + $0x180] sm:$0xff]  ;;  %v823_v46 = vld [vmem:[#allocation2 + $0x190] sm:$0xff] }
  0x76   : > { %894 = vmatpush1.bf16.msra.mxu0 %v789_v12  ;;  %967 = vmatpush1.bf16.msra.mxu1 %v791_v13  ;;  %v826_v47 = vld [vmem:[#allocation2 + $0x1a8] sm:$0xff]  ;;  %v828_v48 = vld [vmem:[#allocation2 + $0x1b8] sm:$0xff]  ;;  %v825_v49 = vld [vmem:[#allocation2 + $0x1a0] sm:$0xff] }
  0x77   : > { %895 = vmatprep.subr.bf16.mxu0 %v794_v14  ;;  %968 = vmatprep.subr.bf16.mxu1 %v796_v15  ;;  %v827_v50 = vld [vmem:[#allocation2 + $0x1b0] sm:$0xff]  ;;  %v830_v51 = vld [vmem:[#allocation2 + $0x1c8] sm:$0xff]  ;;  %v832_v52 = vld [vmem:[#allocation2 + $0x1d8] sm:$0xff] }
  0x78   : > { %v829_v53 = vld [vmem:[#allocation2 + $0x1c0] sm:$0xff]  ;;  %v831_v54 = vld [vmem:[#allocation2 + $0x1d0] sm:$0xff]  ;;  %v834_v55 = vld [vmem:[#allocation2 + $0x1e8] sm:$0xff] }
  0x79   : > { %v836_v56 = vld [vmem:[#allocation2 + $0x1f8] sm:$0xff]  ;;  %v833_v57 = vld [vmem:[#allocation2 + $0x1e0] sm:$0xff]  ;;  %v835_v58 = vld [vmem:[#allocation2 + $0x1f0] sm:$0xff] }
  0x7a   : > { %896 = vmatpush1.bf16.msra.mxu0 %v793_v16  ;;  %969 = vmatpush1.bf16.msra.mxu1 %v795_v17  ;;  %v1441_v59 = vld [vmem:[%s1962_s23] ss:$8 sps:$4 sm:$0xff]   ;;  %v1444_v60 = vld [vmem:[%s1962_s23 + $0x14] ss:$8 sps:$4 sm:$0xff]   ;;  %v1446_v61 = vld [vmem:[%s1962_s23 + $0x10] ss:$8 sps:$4 sm:$0xff]  }
  0x7b   : > { %897 = vmatprep.subr.bf16.mxu0 %v798_v18  ;;  %970 = vmatprep.subr.bf16.mxu1 %v800_v19  ;;  %v1447_v62 = vld [vmem:[%s1962_s23 + $0x24] ss:$8 sps:$4 sm:$0xff]   ;;  %v1449_v63 = vld [vmem:[%s1962_s23 + $0x20] ss:$8 sps:$4 sm:$0xff]   ;;  %v1450_v0 = vld [vmem:[%s1962_s23 + $0x34] ss:$8 sps:$4 sm:$0xff]  }
  0x7c   : > { %v1452_v1 = vld [vmem:[%s1962_s23 + $0x30] ss:$8 sps:$4 sm:$0xff]  }
  0x7e   : > { %898 = vmatpush1.bf16.msra.mxu0 %v797_v20  ;;  %971 = vmatpush1.bf16.msra.mxu1 %v799_v22 }
  0x7f   : > { %899 = vmatprep.subr.bf16.mxu0 %v802_v23  ;;  %972 = vmatprep.subr.bf16.mxu1 %v804_v24 }
  0x82   : > { %900 = vmatpush1.bf16.msra.mxu0 %v801_v25  ;;  %973 = vmatpush1.bf16.msra.mxu1 %v803_v26 }
  0x83   : > { %901 = vmatprep.subr.bf16.mxu0 %v806_v27  ;;  %974 = vmatprep.subr.bf16.mxu1 %v808_v28 }
  0x86   : > { %902 = vmatpush1.bf16.msra.mxu0 %v805_v29  ;;  %975 = vmatpush1.bf16.msra.mxu1 %v807_v30 }
  0x87   : > { %903 = vmatprep.subr.bf16.mxu0 %v810_v31  ;;  %976 = vmatprep.subr.bf16.mxu1 %v812_v32 }
  0x8a   : > { %904 = vmatpush1.bf16.msra.mxu0 %v809_v33  ;;  %977 = vmatpush1.bf16.msra.mxu1 %v811_v34 }
  0x8b   : > { %905 = vmatprep.subr.bf16.mxu0 %v814_v35  ;;  %978 = vmatprep.subr.bf16.mxu1 %v816_v36 }
  0x8e   : > { %906 = vmatpush1.bf16.msra.mxu0 %v813_v37  ;;  %979 = vmatpush1.bf16.msra.mxu1 %v815_v38 }
  0x8f   : > { %907 = vmatprep.subr.bf16.mxu0 %v818_v39  ;;  %980 = vmatprep.subr.bf16.mxu1 %v820_v40 }
  0x92   : > { %908 = vmatpush1.bf16.msra.mxu0 %v817_v41  ;;  %981 = vmatpush1.bf16.msra.mxu1 %v819_v42 }
  0x93   : > { %909 = vmatprep.subr.bf16.mxu0 %v822_v43  ;;  %982 = vmatprep.subr.bf16.mxu1 %v824_v44 }
  0x96   : > { %910 = vmatpush1.bf16.msra.mxu0 %v821_v45  ;;  %983 = vmatpush1.bf16.msra.mxu1 %v823_v46 }
  0x97   : > { %911 = vmatprep.subr.bf16.mxu0 %v826_v47  ;;  %984 = vmatprep.subr.bf16.mxu1 %v828_v48 }
  0x9a   : > { %912 = vmatpush1.bf16.msra.mxu0 %v825_v49  ;;  %985 = vmatpush1.bf16.msra.mxu1 %v827_v50 }
  0x9b   : > { %913 = vmatprep.subr.bf16.mxu0 %v830_v51  ;;  %986 = vmatprep.subr.bf16.mxu1 %v832_v52 }
  0x9e   : > { %914 = vmatpush1.bf16.msra.mxu0 %v829_v53  ;;  %987 = vmatpush1.bf16.msra.mxu1 %v831_v54 }
  0x9f   : > { %915 = vmatprep.subr.bf16.mxu0 %v834_v55  ;;  %988 = vmatprep.subr.bf16.mxu1 %v836_v56 }
  0xa2   : > { %916 = vmatpush1.bf16.msra.mxu0 %v833_v57  ;;  %989 = vmatpush1.bf16.msra.mxu1 %v835_v58 }
  0xa5   : > { %918 = vmatmul.mubr.bf16.vlgmr.msra.gmra.mrb[0].mxu0 %v1441_v59  ;;  %991 = vmatmul.mubr.bf16.vlgmr.msra.gmra.mrb[0].mxu1 %v1441_v59 }
  0xa6   : > { %927 = vmatprep.mubr.bf16.mxu0 %v1444_v60  ;;  %1000 = vmatprep.mubr.bf16.mxu1 %v1444_v60 }
  0xad   : > { %928 = vmatmul.mubr.bf16.gmra.mrb[4].mxu0 %v1446_v61  ;;  %1001 = vmatmul.mubr.bf16.gmra.mrb[4].mxu1 %v1446_v61 }
  0xae   : > { %937 = vmatprep.mubr.bf16.mxu0 %v1447_v62  ;;  %1010 = vmatprep.mubr.bf16.mxu1 %v1447_v62 }
  0xb5   : > { %938 = vmatmul.mubr.bf16.gmra.mrb[8].mxu0 %v1449_v63  ;;  %1011 = vmatmul.mubr.bf16.gmra.mrb[8].mxu1 %v1449_v63 }
  0xb6   : > { %947 = vmatprep.mubr.bf16.mxu0 %v1450_v0  ;;  %1020 = vmatprep.mubr.bf16.mxu1 %v1450_v0 }
  0xbd   : > { %948 = vmatmul.mubr.bf16.gmra.mrb[12].mxu0 %v1452_v1  ;;  %1021 = vmatmul.mubr.bf16.gmra.mrb[12].mxu1 %v1452_v1 }
 0x178   : > { %v919_v2 = vpop.f32.mrb[0].mxu0  ;;  %v992_v3 = vpop.f32.mrb[0].mxu1 }
 0x179   : > { %v1031_v4 = vmul.f32 %v919_v2, %v919_v2  ;;  %v1047_v5 = vmul.f32 %v992_v3, %v992_v3  ;;  %v921_v6 = vpop.f32.mrb[1].mxu0  ;;  %v994_v7 = vpop.f32.mrb[1].mxu1 }
 0x17a   : > { %v1032_v8 = vmul.f32 %v921_v6, %v921_v6  ;;  %v1048_v9 = vmul.f32 %v994_v7, %v994_v7  ;;  %v923_v10 = vpop.f32.mrb[2].mxu0  ;;  %v996_v11 = vpop.f32.mrb[2].mxu1 }
 0x17b   : > { %v1063_v12 = vadd.f32 %v1047_v5, %v1031_v4  ;;  %v1033_v13 = vmul.f32 %v923_v10, %v923_v10  ;;  %v1049_v14 = vmul.f32 %v996_v11, %v996_v11  ;;  %v925_v15 = vpop.f32.mrb[3].mxu0  ;;  %v998_v16 = vpop.f32.mrb[3].mxu1 }
 0x17c   : > { %v1064_v17 = vadd.f32 %v1048_v9, %v1032_v8  ;;  %v1034_v18 = vmul.f32 %v925_v15, %v925_v15  ;;  %v1050_v19 = vmul.f32 %v998_v16, %v998_v16 }
 0x17d   : > { %v1065_v20 = vadd.f32 %v1049_v14, %v1033_v13  ;;  %v1079_v60 = vmax.f32 %v1063_v12, 1e-07 }
 0x17e   : > { %v1066_v21 = vadd.f32 %v1050_v19, %v1034_v18  ;;  %v1080_v63 = vmax.f32 %v1064_v17, 1e-07 }
 0x17f   : > { %v1982_v10 = vmax.f32 %v1065_v20, 1e-07 }
 0x180   : > { %v929_v22 = vpop.f32.mrb[4].mxu0  ;;  %v1002_v23 = vpop.f32.mrb[4].mxu1  ;;  %v1985_v13 = vmax.f32 %v1066_v21, 1e-07 }
 0x181   : > { %v1035_v24 = vmul.f32 %v929_v22, %v929_v22  ;;  %v1051_v25 = vmul.f32 %v1002_v23, %v1002_v23  ;;  %v931_v26 = vpop.f32.mrb[5].mxu0  ;;  %v1004_v27 = vpop.f32.mrb[5].mxu1 }
 0x182   : > { %v1036_v28 = vmul.f32 %v931_v26, %v931_v26  ;;  %v1052_v29 = vmul.f32 %v1004_v27, %v1004_v27  ;;  %v933_v30 = vpop.f32.mrb[6].mxu0  ;;  %v1006_v31 = vpop.f32.mrb[6].mxu1 }
 0x183   : > { %v1067_v32 = vadd.f32 %v1051_v25, %v1035_v24  ;;  %v1037_v33 = vmul.f32 %v933_v30, %v933_v30  ;;  %v1053_v34 = vmul.f32 %v1006_v31, %v1006_v31  ;;  %v935_v35 = vpop.f32.mrb[7].mxu0  ;;  %v1008_v36 = vpop.f32.mrb[7].mxu1 }
 0x184   : > { %v1068_v37 = vadd.f32 %v1052_v29, %v1036_v28  ;;  %v1038_v38 = vmul.f32 %v935_v35, %v935_v35  ;;  %v1054_v39 = vmul.f32 %v1008_v36, %v1008_v36 }
 0x185   : > { %v1069_v40 = vadd.f32 %v1053_v34, %v1037_v33  ;;  %v1987_v14 = vmax.f32 %v1067_v32, 1e-07 }
 0x186   : > { %v1972_v41 = vadd.f32 %v1054_v39, %v1038_v38  ;;  %v2006_v25 = vmax.f32 %v1068_v37, 1e-07 }
 0x187   : > { %v2008_v26 = vmax.f32 %v1069_v40, 1e-07 }
 0x188   : > { %v939_v42 = vpop.f32.mrb[8].mxu0  ;;  %v1012_v43 = vpop.f32.mrb[8].mxu1 }
 0x189   : > { %v1039_v44 = vmul.f32 %v939_v42, %v939_v42  ;;  %v1055_v45 = vmul.f32 %v1012_v43, %v1012_v43  ;;  %v941_v46 = vpop.f32.mrb[9].mxu0  ;;  %v1014_v47 = vpop.f32.mrb[9].mxu1 }
 0x18a   : > { %v1040_v48 = vmul.f32 %v941_v46, %v941_v46  ;;  %v1056_v49 = vmul.f32 %v1014_v47, %v1014_v47  ;;  %v943_v50 = vpop.f32.mrb[10].mxu0  ;;  %v1016_v51 = vpop.f32.mrb[10].mxu1 }
 0x18b   : > { %v1071_v52 = vadd.f32 %v1055_v45, %v1039_v44  ;;  %v1041_v53 = vmul.f32 %v943_v50, %v943_v50  ;;  %v1057_v54 = vmul.f32 %v1016_v51, %v1016_v51  ;;  %v945_v55 = vpop.f32.mrb[11].mxu0  ;;  %v1018_v56 = vpop.f32.mrb[11].mxu1 }
 0x18c   : > { %v1072_v57 = vadd.f32 %v1056_v49, %v1040_v48  ;;  %v1042_v58 = vmul.f32 %v945_v55, %v945_v55  ;;  %v1058_v59 = vmul.f32 %v1018_v56, %v1018_v56 }
 0x18d   : > { %v1087_v61 = vmax.f32 %v1071_v52, 1e-07  ;;  %v1073_v62 = vadd.f32 %v1057_v54, %v1041_v53 }
 0x18e   : > { %v1088_v0 = vmax.f32 %v1072_v57, 1e-07  ;;  %v1074_v1 = vadd.f32 %v1058_v59, %v1042_v58 }
 0x18f   : > { %1453 = vrcp.f32 %v1087_v61  ;;  %v1974_v2 = vadd.f32 %v1087_v61, %v1079_v60  ;;  %v1976_v3 = vmul.f32 %v1087_v61, %v1079_v60  ;;  %v1089_v4 = vmax.f32 %v1073_v62, 1e-07 }
 0x190   : > { %1455 = vrcp.f32 %v1088_v0  ;;  %v1978_v5 = vadd.f32 %v1088_v0, %v1080_v63  ;;  %v1980_v6 = vmul.f32 %v1088_v0, %v1080_v63  ;;  %v1090_v7 = vmax.f32 %v1074_v1, 1e-07  ;;  %v949_v8 = vpop.f32.mrb[12].mxu0  ;;  %v1022_v9 = vpop.f32.mrb[12].mxu1 }
 0x191   : > { %1457 = vrsqrt.f32 %v1976_v3  ;;  %v951_v11 = vpop.f32.mrb[13].mxu0  ;;  %v1024_v12 = vpop.f32.mrb[13].mxu1  ;;  %v1991_v17 = vadd.f32 %v1089_v4, %v1982_v10  ;;  %v1994_v18 = vmul.f32 %v1089_v4, %v1982_v10  ;;  %v1996_v19 = vadd.f32 %v1089_v4, %v1087_v61 }
 0x192   : > { %1459 = vrsqrt.f32 %v1980_v6  ;;  %v953_v15 = vpop.f32.mrb[14].mxu0  ;;  %v1026_v16 = vpop.f32.mrb[14].mxu1  ;;  %v1999_v21 = vadd.f32 %v1090_v7, %v1985_v13  ;;  %v2002_v23 = vmul.f32 %v1090_v7, %v1985_v13  ;;  %v2004_v24 = vadd.f32 %v1090_v7, %v1088_v0 }
 0x193   : > { %1461 = vrcp.f32 %v1089_v4  ;;  %v955_v20 = vpop.f32.mrb[15].mxu0  ;;  %v1028_v22 = vpop.f32.mrb[15].mxu1  ;;  %vm1161_vm0 = vcmp.eq.f32.partialorder %v1976_v3, inf  ;;  %vm1163_vm1 = vcmp.eq.f32.partialorder %v1976_v3, 0.0  ;;  %v1164_v27 = vand.u32 2147483648, %v1976_v3 }
 0x194   : > { %1463 = vrcp.f32 %v1090_v7  ;;  %vm1168_vm2 = vcmp.eq.f32.partialorder %v1980_v6, inf  ;;  %v1043_v28 = vmul.f32 %v949_v8, %v949_v8  ;;  %v1059_v29 = vmul.f32 %v1022_v9, %v1022_v9 }
 0x195   : > { %1465 = vrsqrt.f32 %v1994_v18  ;;  %v1044_v30 = vmul.f32 %v951_v11, %v951_v11  ;;  %v1060_v31 = vmul.f32 %v1024_v12, %v1024_v12  ;;  %v1045_v32 = vmul.f32 %v953_v15, %v953_v15 }
 0x196   : > { %1467 = vrsqrt.f32 %v2002_v23  ;;  %v1061_v33 = vmul.f32 %v1026_v16, %v1026_v16  ;;  %v1046_v34 = vmul.f32 %v955_v20, %v955_v20  ;;  %v1062_v35 = vmul.f32 %v1028_v22, %v1028_v22 }
 0x197   : > { %vm1170_vm3 = vcmp.eq.f32.partialorder %v1980_v6, 0.0  ;;  %v1171_v37 = vand.u32 2147483648, %v1980_v6  ;;  %v1075_v38 = vadd.f32 %v1059_v29, %v1043_v28  ;;  %v1076_v39 = vadd.f32 %v1060_v31, %v1044_v30 }
 0x198   : > { %vm1175_vm4 = vcmp.eq.f32.partialorder %v1994_v18, inf  ;;  %v1077_v43 = vadd.f32 %v1061_v33, %v1045_v32  ;;  %v1078_v44 = vadd.f32 %v1062_v35, %v1046_v34  ;;  %vm1177_vm5 = vcmp.eq.f32.partialorder %v1994_v18, 0.0 }
 0x199   : > { %v1454_v36 = vpop.eup %1453  ;;  %v1091_v47 = vmax.f32 %v1075_v38, 1e-07  ;;  %v2020_v48 = vmax.f32 %v1076_v39, 1e-07  ;;  %v1178_v51 = vand.u32 2147483648, %v1994_v18  ;;  %vm1182_vm6 = vcmp.eq.f32.partialorder %v2002_v23, inf }
 0x19a   : > { %v1456_v40 = vpop.eup %1455  ;;  %v1096_v42 = vmul.f32 %v1454_v36, %v1079_v60  ;;  %v1093_v9 = vmax.f32 %v1077_v43, 1e-07  ;;  %vm1184_vm7 = vcmp.eq.f32.partialorder %v2002_v23, 0.0  ;;  %v1185_v12 = vand.u32 2147483648, %v2002_v23 }
 0x19b   : > { %v1458_v45 = vpop.eup %1457  ;;  %v1098_v46 = vmul.f32 %v1456_v40, %v1080_v63  ;;  %v2027_v54 = vadd.f32 %v1091_v47, %v1987_v14  ;;  %v2030_v55 = vmul.f32 %v1091_v47, %v1987_v14  ;;  %v2038_v59 = vadd.f32 %v2020_v48, %v2006_v25 }
 0x19c   : > { %v1460_v49 = vpop.eup %1459  ;;  %1469 = vlog2.f32 %v1096_v42  ;;  %v1160_v50 = vmul.f32 %v1458_v45, %v1976_v3  ;;  %v2066_v20 = vmul.f32 %v2020_v48, %v2006_v25  ;;  %v1094_v22 = vmax.f32 %v1078_v44, 1e-07 }
 0x19d   : > { %v1462_v52 = vpop.eup %1461  ;;  %1471 = vlog2.f32 %v1098_v46  ;;  %v1167_v53 = vmul.f32 %v1460_v49, %v1980_v6  ;;  %v2072_v28 = vmax.f32 %v1972_v41, 1e-07  ;;  %v2078_v34 = vmul.f32 %v1093_v9, %v2008_v26 }
 0x19e   : > { %v1464_v56 = vpop.eup %1463  ;;  %v1162_v57 = vsel %vm1161_vm0, %v1976_v3, %v1160_v50  ;;  %v1100_v58 = vmul.f32 %v1462_v52, %v1982_v10  ;;  %1473 = vrcp.f32 %v1091_v47  ;;  %v1269_v38 = vadd.f32 %v1093_v9, %v1091_v47  ;;  %v1390_v52 = vld [vmem:[%s1674_s26 + $0x20] sm:$0xff] }
 0x19f   : > { %v1466_v60 = vpop.eup %1465  ;;  %v1165_v61 = vsel %vm1163_vm1, %v1164_v27, %v1162_v57  ;;  %v1169_v62 = vsel %vm1168_vm2, %v1980_v6, %v1167_v53  ;;  %v1102_v63 = vmul.f32 %v1464_v56, %v1985_v13  ;;  %1475 = vrsqrt.f32 %v2030_v55 }
 0x1a0   : > { %v1468_v0 = vpop.eup %1467  ;;  %v1215_v1 = vmul.f32 2.0, %v1165_v61  ;;  %v1172_v4 = vsel %vm1170_vm3, %v1171_v37, %v1169_v62  ;;  %1477 = vlog2.f32 %v1100_v58  ;;  %v1174_v7 = vmul.f32 %v1466_v60, %v1994_v18 }
 0x1a1   : > { %v1216_v8 = vmul.f32 2.0, %v1172_v4  ;;  %1479 = vlog2.f32 %v1102_v63  ;;  %v1181_v3 = vmul.f32 %v1468_v0, %v2002_v23  ;;  %vm1189_vm8 = vcmp.eq.f32.partialorder %v2030_v55, inf }
 0x1a2   : > { %v1223_v10 = vsub.f32 %v1974_v2, %v1215_v1  ;;  %v1176_v11 = vsel %vm1175_vm4, %v1994_v18, %v1174_v7  ;;  %1481 = vrcp.f32 %v2020_v48  ;;  %vm1191_vm9 = vcmp.eq.f32.partialorder %v2030_v55, 0.0 }
 0x1a3   : > { %v1224_v6 = vsub.f32 %v1978_v5, %v1216_v8  ;;  %v1179_v13 = vsel %vm1177_vm5, %v1178_v51, %v1176_v11  ;;  %v1183_v15 = vsel %vm1182_vm6, %v2002_v23, %v1181_v3  ;;  %1483 = vrcp.f32 %v1093_v9 }
 0x1a4   : > { %v1217_v2 = vmul.f32 2.0, %v1179_v13  ;;  %v1186_v16 = vsel %vm1184_vm7, %v1185_v12, %v1183_v15  ;;  %v2069_v5 = vadd.f32 %v1093_v9, %v2008_v26  ;;  %v1231_v29 = vmax.f32 %v1223_v10, 0.0  ;;  %v1391_v13 = vld [vmem:[%s1674_s26 + $0x28] sm:$0xff] }
 0x1a5   : > { %v1218_v27 = vmul.f32 2.0, %v1186_v16  ;;  %1485 = vrsqrt.f32 %v2066_v20  ;;  %v1232_v32 = vmax.f32 %v1224_v6, 0.0  ;;  %v1192_v49 = vand.u32 2147483648, %v2030_v55 }
 0x1a6   : > { %v1470_v18 = vpop.eup %1469  ;;  %v1225_v23 = vsub.f32 %v1991_v17, %v1217_v2  ;;  %1487 = vrcp.f32 %v1094_v22  ;;  %v1271_v60 = vadd.f32 %v1269_v38, %v1996_v19  ;;  %v2095_v0 = vadd.f32 %v1094_v22, %v2072_v28 }
 0x1a7   : > { %v1472_v30 = vpop.eup %1471  ;;  %v1112_v31 = vmul.f32 0.6931472, %v1470_v18  ;;  %v1226_v33 = vsub.f32 %v1999_v21, %v1218_v27  ;;  %1489 = vrsqrt.f32 %v2078_v34  ;;  %v1270_v8 = vadd.f32 %v1094_v22, %v2020_v48 }
 0x1a8   : > { %v1474_v35 = vpop.eup %1473  ;;  %v1114_v36 = vmul.f32 0.6931472, %v1472_v30  ;;  %v1233_v37 = vmax.f32 %v1225_v23, 0.0  ;;  %v1273_v7 = vadd.f32 %v1390_v52, %v1271_v60  ;;  %vm1196_vm10 = vcmp.eq.f32.partialorder %v2066_v20, inf }
 0x1a9   : > { %v1476_v41 = vpop.eup %1475  ;;  %v1127_v39 = vand.u32 2147483647, %v1112_v31  ;;  %v1234_v40 = vmax.f32 %v1226_v33, 0.0  ;;  %v1104_v17 = vmul.f32 %v1474_v35, %v1987_v14  ;;  %v1199_v48 = vand.u32 2147483648, %v2066_v20 }
 0x1aa   : > { %v1478_v42 = vpop.eup %1477  ;;  %v1128_v43 = vand.u32 2147483647, %v1114_v36  ;;  %v2082_v44 = vadd.f32 %v1233_v37, %v1231_v29  ;;  %v1188_v21 = vmul.f32 %v1476_v41, %v2030_v55  ;;  %1392 = vst [vmem:[%s1674_s26 + $0x20] sm:$0xff] %v1273_v7  ;;  %vm1198_vm11 = vcmp.eq.f32.partialorder %v2066_v20, 0.0 }
 0x1ab   : > { %v1480_v45 = vpop.eup %1479  ;;  %v1116_v46 = vmul.f32 0.6931472, %v1478_v42  ;;  %v2086_v47 = vadd.f32 %v1234_v40, %v1232_v32  ;;  %v1135_v14 = vmul.f32 0.5, %v1127_v39  ;;  %1491 = vlog2.f32 %v1104_v17 }
 0x1ac   : > { %v1118_v50 = vmul.f32 0.6931472, %v1480_v45  ;;  %v1190_v51 = vsel %vm1189_vm8, %v2030_v55, %v1188_v21  ;;  %v1482_v53 = vpop.eup %1481  ;;  %v1136_v56 = vmul.f32 0.5, %v1128_v43  ;;  %v1158_v55 = vmul.f32 %v1094_v22, %v2072_v28  ;;  %v1386_v45 = vld [vmem:[%s1674_s26 + $0x10] sm:$0xff] }
 0x1ad   : > { %v1129_v57 = vand.u32 2147483647, %v1116_v46  ;;  %v1193_v58 = vsel %vm1191_vm9, %v1192_v49, %v1190_v51  ;;  %v1106_v63 = vmul.f32 %v1482_v53, %v2006_v25  ;;  %v1484_v1 = vpop.eup %1483  ;;  %v1272_v2 = vadd.f32 %v1270_v8, %v2004_v24  ;;  %v1240_v8 = vld [vmem:[%s1674_s26 + $0x8] sm:$0xff] }
 0x1ae   : > { %v1130_v61 = vand.u32 2147483647, %v1118_v50  ;;  %v1219_v62 = vmul.f32 2.0, %v1193_v58  ;;  %v1108_v10 = vmul.f32 %v1484_v1, %v2008_v26  ;;  %vm1203_vm12 = vcmp.eq.f32.partialorder %v2078_v34, inf }
 0x1af   : > { %v1137_v4 = vmul.f32 0.5, %v1129_v57  ;;  %v1486_v3 = vpop.eup %1485  ;;  %1493 = vlog2.f32 %v1106_v63  ;;  %v1206_v18 = vand.u32 2147483648, %v2078_v34  ;;  %v1274_v29 = vadd.f32 %v1391_v13, %v1272_v2 }
 0x1b0   : > { %v1138_v9 = vmul.f32 0.5, %v1130_v61  ;;  %v1227_v19 = vsub.f32 %v2027_v54, %v1219_v62  ;;  %v1195_v25 = vmul.f32 %v1486_v3, %v2066_v20  ;;  %1495 = vrsqrt.f32 %v1158_v55  ;;  %v1488_v12 = vpop.eup %1487  ;;  %v1239_v62 = vld [vmem:[%s1674_s26] sm:$0xff]  ;;  %v1387_v3 = vld [vmem:[%s1674_s26 + $0x18] sm:$0xff] }
 0x1b1   : > { %v2101_v11 = vadd.f32 %v1137_v4, %v1135_v14  ;;  %1497 = vlog2.f32 %v1108_v10  ;;  %v1490_v15 = vpop.eup %1489  ;;  %v1110_v26 = vmul.f32 %v1488_v12, %v2072_v28  ;;  %vm1205_vm13 = vcmp.eq.f32.partialorder %v2078_v34, 0.0  ;;  %1393 = vst [vmem:[%s1674_s26 + $0x28] sm:$0xff] %v1274_v29 }
 0x1b2   : > { %v2105_v6 = vadd.f32 %v1138_v9, %v1136_v56  ;;  %v1197_v54 = vsel %vm1196_vm10, %v2066_v20, %v1195_v25  ;;  %v1202_v22 = vmul.f32 %v1490_v15, %v2078_v34  ;;  %v1235_v37 = vmax.f32 %v1227_v19, 0.0 }
 0x1b3   : > { %v1200_v16 = vsel %vm1198_vm11, %v1199_v48, %v1197_v54  ;;  %1499 = vlog2.f32 %v1110_v26  ;;  %vm1210_vm14 = vcmp.eq.f32.partialorder %v1158_v55, inf  ;;  %vm1212_vm15 = vcmp.eq.f32.partialorder %v1158_v55, 0.0 }
 0x1b4   : > { %v1220_v27 = vmul.f32 2.0, %v1200_v16  ;;  %v1204_v30 = vsel %vm1203_vm12, %v2078_v34, %v1202_v22  ;;  %v1213_v34 = vand.u32 2147483648, %v1158_v55 }
 0x1b5   : > { %v1492_v23 = vpop.eup %1491  ;;  %v1207_v28 = vsel %vm1205_vm13, %v1206_v18, %v1204_v30 }
 0x1b6   : > { %v1228_v20 = vsub.f32 %v2038_v59, %v1220_v27  ;;  %v1221_v24 = vmul.f32 2.0, %v1207_v28  ;;  %v1120_v31 = vmul.f32 0.6931472, %v1492_v23 }
 0x1b8   : > { %v1229_v33 = vsub.f32 %v2069_v5, %v1221_v24  ;;  %v1131_v40 = vand.u32 2147483647, %v1120_v31  ;;  %v1236_v61 = vmax.f32 %v1228_v20, 0.0 }
 0x1b9   : > { %v1494_v32 = vpop.eup %1493 }
 0x1ba   : > { %v1496_v35 = vpop.eup %1495  ;;  %v1122_v38 = vmul.f32 0.6931472, %v1494_v32  ;;  %v1237_v41 = vmax.f32 %v1229_v33, 0.0  ;;  %v1139_v51 = vmul.f32 0.5, %v1131_v40 }
 0x1bb   : > { %v1498_v36 = vpop.eup %1497  ;;  %v1209_v39 = vmul.f32 %v1496_v35, %v1158_v55 }
 0x1bc   : > { %v1124_v17 = vmul.f32 0.6931472, %v1498_v36  ;;  %v1256_v42 = vadd.f32 %v1237_v41, %v1235_v37  ;;  %v1132_v46 = vand.u32 2147483647, %v1122_v38 }
 0x1bd   : > { %v1211_v59 = vsel %vm1210_vm14, %v1158_v55, %v1209_v39  ;;  %v1500_v43 = vpop.eup %1499 }
 0x1be   : > { %v1133_v21 = vand.u32 2147483647, %v1124_v17  ;;  %v1214_v5 = vsel %vm1212_vm15, %v1213_v34, %v1211_v59  ;;  %v1258_v49 = vadd.f32 %v1256_v42, %v2082_v44  ;;  %v1126_v14 = vmul.f32 0.6931472, %v1500_v43 }
 0x1bf   : > { %v1222_v50 = vmul.f32 2.0, %v1214_v5  ;;  %v1140_v60 = vmul.f32 0.5, %v1132_v46 }
 0x1c0   : > { %v1141_v52 = vmul.f32 0.5, %v1133_v21  ;;  %v1260_v53 = vadd.f32 %v1386_v45, %v1258_v49  ;;  %v1134_v56 = vand.u32 2147483647, %v1126_v14 }
 0x1c1   : > { %v1230_v57 = vsub.f32 %v2095_v0, %v1222_v50 }
 0x1c2   : > { %v1243_v58 = vadd.f32 %v1141_v52, %v1139_v51  ;;  %1388 = vst [vmem:[%s1674_s26 + $0x10] sm:$0xff] %v1260_v53  ;;  %v1142_v63 = vmul.f32 0.5, %v1134_v56 }
 0x1c3   : > { %v1238_v44 = vmax.f32 %v1230_v57, 0.0 }
 0x1c4   : > { %v1245_v1 = vadd.f32 %v1243_v58, %v2101_v11  ;;  %v1244_v4 = vadd.f32 %v1142_v63, %v1140_v60 }
 0x1c5   : > { %v1257_v7 = vadd.f32 %v1238_v44, %v1236_v61 }
 0x1c6   : > { %v1247_v55 = vadd.f32 %v1245_v1, %v1239_v62  ;;  %v1246_v9 = vadd.f32 %v1244_v4, %v2105_v6 }
 0x1c7   : > { %v1259_v0 = vadd.f32 %v1257_v7, %v2086_v47 }
 0x1c8   : > { %1249 = vst [vmem:[%s1674_s26] sm:$0xff] %v1247_v55  ;;  %v1248_v19 = vadd.f32 %v1246_v9, %v1240_v8 }
 0x1c9   : > { %v1261_v10 = vadd.f32 %v1387_v3, %v1259_v0 }
 0x1ca   : > { %1250 = vst [vmem:[%s1674_s26 + $0x8] sm:$0xff] %v1248_v19 }
 0x1cb   : > { %1389 = vst [vmem:[%s1674_s26 + $0x18] sm:$0xff] %v1261_v10 }
 0x1cc PF: > { %s12_s13 = sadd.s32 1, %s1541_s13   ;;  %s2153_s9 = smov %s1529_s10 }
 0x1cd   : > { %p9_p10 = scmp.ge.s32.totalorder %s12_s13, 4   ;;  %s2154_s10 = smov %s1594_s17 }
 0x1ce   : > { %s2155_s11 = smov %s1537_s12  ;;  %s2156_s12 = smov %s2158_s14 }
 0x1cf   :  { %11 = sbr.rel (!%p9_p10) target bundleno = 3 (0x3), region = 154 }
 0x1d6   :  { %1298 = vsyncmov [#allocation3] }
 0x1d9   :  { %s1299_s30 = vpop.sfrf %1298 }
 0x1da   :  { %p1396_p11 = scmp.ne.s32.totalorder %s1299_s30, 0 }
 0x1dc   :  { %1303 = shalt.err (%p1396_p11)  }

// kernel: multi_resolution_stft_loss.3
= control target key start
LH: loop header
LB: loop body
LE: loop exit
PB: predicated region body
PF: predicated region fallthrough
CT: control target
= control target key end

     0   :  { %s1084_s9 = smov 0   ;;  %s1086_s10 = smov 0   ;;  %s1363_s0 = inlined_call_operand.vmem [shape: bf16[2,112,128], index: 0, kind: input, shape index: {}]   ;;  %s1364_s1 = inlined_call_operand.vmem [shape: bf16[128,256], index: 1, kind: input, shape index: {}]   ;;  %s1365_s2 = inlined_call_operand.vmem [shape: f32[2,3,8,128], index: 2, kind: output, shape index: {}]  }
   0x1   :  { %s1088_s11 = smov 0   ;;  %s1090_s12 = smov 0  }
   0x2   :  { %s1092_s13 = smov 0  }
   0x3 LB: > { %s24_s14 = sadd.s32 1, %s1061_s12  ;;  %p40_p1 = scmp.ne.s32.totalorder %s1053_s10, %s1049_s9  ;;  %s1065_s13 = sphi %s1092_s13, %s12_s13   ;;  %s1061_s12 = sphi %s1090_s12, %s1369_s12   ;;  %s1057_s11 = sphi %s1088_s11, %s1368_s11   ;;  %s1053_s10 = sphi %s1086_s10, %s1367_s10   ;;  %s1049_s9 = sphi %s1084_s9, %s1366_s9  }
   0x4   : > { %p26_p0 = scmp.ge.s32.totalorder %s24_s14, 2  ;;  %p41_p2 = scmp.eq.s32.totalorder %s1065_s13, 0 }
   0x5   : > { %s33_s16 = sadd.s32 1, %s1053_s10  ;;  %p896_p5 = scmp.ge.s32.totalorder %s1065_s13, 2 }
   0x6   : > { %s1371_s14 = smov (%p26_p0, %s24_s14), 0  ;;  %p42_p3 = por %p41_p2, %p40_p1 }
   0x7   : > { %s30_s15 = ssub.s32 %s1061_s12, %s1371_s14  ;;  %92 = sbr.rel (%p896_p5) target bundleno = 23 (0x17), region = 16 }
   0x8   : > { %p31_p4 = scmp.eq.s32.totalorder %s30_s15, 0 }
   0xa   : > { %s1119_s17 = scalar_select %p31_p4, %s1053_s10, %s33_s16  }
   0xe   : > { %95 = sbr.rel (!%p42_p3) target bundleno = 23 (0x17), region = 20  ;;  %s97_s18 = sand.u32 (%p42_p3), 1, %s1053_s10  }
   0xf   : > { %s914_s19 = smul.u32 (%p42_p3), 28, %s1061_s12 }
  0x10   : > { %s931_s20 = smul.u32 (%p42_p3), 56, %s97_s18 }
  0x11   : > { %s103_s23 = scalar_lea.vmem (%p42_p3), %s1363_s0, %s914_s19 }
  0x12   : > { %v119_v0 = vld [vmem:[%s103_s23] sm:$0xff] (%p42_p3)   ;;  %v123_v1 = vld [vmem:[%s103_s23 + $0x8] sm:$0xff] (%p42_p3)   ;;  %v127_v2 = vld [vmem:[%s103_s23 + $0x10] sm:$0xff] (%p42_p3)   ;;  %s99_s24 = scalar_lea.vmem (%p42_p3), [#allocation4], %s931_s20 }
  0x13   : > { %120 = vst [vmem:[%s99_s24] sm:$0xff] (%p42_p3), %v119_v0   ;;  %124 = vst [vmem:[%s99_s24 + $0x8] sm:$0xff] (%p42_p3), %v123_v1   ;;  %v131_v3 = vld [vmem:[%s103_s23 + $0x18] sm:$0xf] (%p42_p3)  ;;  %v137_v5 = vld [vmem:[%s103_s23 + $0x40] sm:$0xff] (%p42_p3)  }
  0x14   : > { %128 = vst [vmem:[%s99_s24 + $0x10] sm:$0xff] (%p42_p3), %v127_v2   ;;  %v133_v4 = vld [vmem:[%s103_s23 + $0x38] sm:$0xff] (%p42_p3)   ;;  %132 = vst [vmem:[%s99_s24 + $0x18] sm:$0xf] (%p42_p3), %v131_v3  ;;  %v141_v6 = vld [vmem:[%s103_s23 + $0x48] sm:$0xff] (%p42_p3)  }
  0x15   : > { %134 = vst [vmem:[%s99_s24 + $0x1c] sm:$0xff] %v133_v4   ;;  %138 = vst [vmem:[%s99_s24 + $0x24] sm:$0xff] %v137_v5   ;;  %v145_v7 = vld [vmem:[%s103_s23 + $0x50] sm:$0xf] }
  0x16   : > { %142 = vst [vmem:[%s99_s24 + $0x2c] sm:$0xff] %v141_v6   ;;  %146 = vst [vmem:[%s99_s24 + $0x34] sm:$0xf] %v145_v7 }
  0x17 PF: > { %p898_p6 = scmp.ge.s32.totalorder %s1065_s13, 1  ;;  %p196_p7 = scmp.lt.s32.totalorder %s1065_s13, 3 }
  0x19   : > { %p197_p8 = pnand %p898_p6, %p196_p7 }
  0x1a   : > { %s203_s25 = sand.u32 (!%p197_p8), 1, %s1049_s9   ;;  %p224_p9 = scmp.lt.s32.totalorder (!%p197_p8), %s1057_s11, 1  ;;  %v254_v8 = vld [vmem:[%s1364_s1] sm:$0xf] (!%p197_p8)  ;;  %v260_v9 = vld [vmem:[%s1364_s1 + $0xc] sm:$0xff] (!%p197_p8)   ;;  %v1067_v28 = vmov (!%p197_p8), 0.0  }
  0x1b   : > { %200 = sbr.rel (%p197_p8) target bundleno = 374 (0x176), region = 61  ;;  %255 = vst [vmem:[#allocation2] sm:$0xf] (!%p197_p8), %v254_v8  ;;  %v256_v10 = vld [vmem:[%s1364_s1 + $0x8] sm:$0xf] (!%p197_p8)  ;;  %261 = vst [vmem:[#allocation2 + $0xc] sm:$0xff] (!%p197_p8), %v260_v9  }
  0x1c   : > { %s1137_s30 = smul.u32 (!%p197_p8), 56, %s203_s25  ;;  %v258_v11 = vld [vmem:[%s1364_s1 + $0x4] sm:$0xf] (!%p197_p8)  ;;  %v268_v12 = vld [vmem:[%s1364_s1 + $0x1c] sm:$0xff] (!%p197_p8)   ;;  %257 = vst [vmem:[#allocation2 + $0x4] sm:$0xf] (!%p197_p8), %v256_v10 }
  0x1d   : > { %259 = vst [vmem:[#allocation2 + $0x8] sm:$0xf] (!%p197_p8), %v258_v11  ;;  %v264_v13 = vld [vmem:[%s1364_s1 + $0x18] sm:$0xf] (!%p197_p8)  ;;  %v266_v14 = vld [vmem:[%s1364_s1 + $0x14] sm:$0xf] (!%p197_p8) }
  0x1e   : > { %269 = vst [vmem:[#allocation2 + $0x1c] sm:$0xff] (!%p197_p8), %v268_v12   ;;  %v276_v15 = vld [vmem:[%s1364_s1 + $0x2c] sm:$0xff] (!%p197_p8)   ;;  %265 = vst [vmem:[#allocation2 + $0x14] sm:$0xf] (!%p197_p8), %v264_v13  ;;  %v272_v16 = vld [vmem:[%s1364_s1 + $0x28] sm:$0xf] (!%p197_p8) }
  0x1f   : > { %267 = vst [vmem:[#allocation2 + $0x18] sm:$0xf] (!%p197_p8), %v266_v14  ;;  %v274_v17 = vld [vmem:[%s1364_s1 + $0x24] sm:$0xf] (!%p197_p8)  ;;  %277 = vst [vmem:[#allocation2 + $0x2c] sm:$0xff] (!%p197_p8), %v276_v15   ;;  %v284_v18 = vld [vmem:[%s1364_s1 + $0x3c] sm:$0xff] (!%p197_p8)  }
  0x20   : > { %273 = vst [vmem:[#allocation2 + $0x24] sm:$0xf] (!%p197_p8), %v272_v16  ;;  %275 = vst [vmem:[#allocation2 + $0x28] sm:$0xf] (!%p197_p8), %v274_v17  ;;  %v280_v19 = vld [vmem:[%s1364_s1 + $0x38] sm:$0xf] (!%p197_p8) }
  0x21   : > { %v282_v20 = vld [vmem:[%s1364_s1 + $0x34] sm:$0xf] (!%p197_p8)  ;;  %285 = vst [vmem:[#allocation2 + $0x3c] sm:$0xff] (!%p197_p8), %v284_v18   ;;  %v292_v21 = vld [vmem:[%s1364_s1 + $0x4c] sm:$0xff] (!%p197_p8)   ;;  %281 = vst [vmem:[#allocation2 + $0x34] sm:$0xf] (!%p197_p8), %v280_v19 }
  0x22   : > { %s1373_s11 = smov (!%p224_p9, %s1057_s11), 1  ;;  %283 = vst [vmem:[#allocation2 + $0x38] sm:$0xf] %v282_v20  ;;  %v288_v22 = vld [vmem:[%s1364_s1 + $0x48] sm:$0xf]  ;;  %293 = vst [vmem:[#allocation2 + $0x4c] sm:$0xff] %v292_v21  }
  0x23   : > { %s933_s27 = smul.u32 24, %s1373_s11  ;;  %v290_v23 = vld [vmem:[%s1364_s1 + $0x44] sm:$0xf]  ;;  %v296_v24 = vld [vmem:[%s1364_s1 + $0x58] sm:$0xf]  ;;  %v300_v26 = vld [vmem:[%s1364_s1 + $0x5c] sm:$0xff]  }
  0x24   : > { %289 = vst [vmem:[#allocation2 + $0x44] sm:$0xf] %v288_v22  ;;  %291 = vst [vmem:[#allocation2 + $0x48] sm:$0xf] %v290_v23  ;;  %v298_v25 = vld [vmem:[%s1364_s1 + $0x54] sm:$0xf] }
  0x25   : > { %s1188_s20 = scalar_lea.vmem %s1365_s2, %s933_s27  ;;  %297 = vst [vmem:[#allocation2 + $0x54] sm:$0xf] %v296_v24  ;;  %v304_v27 = vld [vmem:[%s1364_s1 + $0x68] sm:$0xf]  ;;  %299 = vst [vmem:[#allocation2 + $0x58] sm:$0xf] %v298_v25 }
  0x26   : > { %234 = vst [vmem:[%s1188_s20] sm:$0xff] %v1067_v28  ;;  %235 = vst [vmem:[%s1188_s20 + $0x8] sm:$0xff] %v1067_v28  ;;  %v306_v29 = vld [vmem:[%s1364_s1 + $0x64] sm:$0xf]  ;;  %v308_v30 = vld [vmem:[%s1364_s1 + $0x6c] sm:$0xff]   ;;  %s1218_s9 = scalar_lea.vmem [#allocation4], %s1137_s30 }
  0x27   : > { %236 = vst [vmem:[%s1188_s20 + $0x10] sm:$0xff] %v1067_v28  ;;  %301 = vst [vmem:[#allocation2 + $0x5c] sm:$0xff] %v300_v26   ;;  %v312_v31 = vld [vmem:[%s1364_s1 + $0x78] sm:$0xf]  ;;  %v314_v32 = vld [vmem:[%s1364_s1 + $0x74] sm:$0xf] }
  0x28   : > { %305 = vst [vmem:[#allocation2 + $0x64] sm:$0xf] %v304_v27  ;;  %307 = vst [vmem:[#allocation2 + $0x68] sm:$0xf] %v306_v29  ;;  %v316_v33 = vld [vmem:[%s1364_s1 + $0x7c] sm:$0xf] }
  0x29   : > { %309 = vst [vmem:[#allocation2 + $0x6c] sm:$0xff] %v308_v30   ;;  %313 = vst [vmem:[#allocation2 + $0x74] sm:$0xf] %v312_v31 }
  0x2a   : > { %315 = vst [vmem:[#allocation2 + $0x78] sm:$0xf] %v314_v32  ;;  %317 = vst [vmem:[#allocation2 + $0x7c] sm:$0xf] %v316_v33 }
  0x2b   : > { %412 = vsyncadd [#allocation3], 2048 }
  0x2c   : > { %1045 = dma.done.wait [#allocation3], 2048 }
  0x2d   : > { %1046 = vsyncadd [#allocation3], 4294965248  ;;  %v1068_v34 = vmov 0   ;;  %v418_v35 = vld [vmem:[#allocation2 + $0x8] sm:$0xff]  ;;  %v417_v36 = vld [vmem:[#allocation2] sm:$0xff] }
  0x2e   : > { %521 = vmatprep.mubr.bf16.mxu0 %v1068_v34  ;;  %561 = vmatprep.mubr.bf16.mxu1 %v1068_v34  ;;  %v420_v37 = vld [vmem:[#allocation2 + $0x18] sm:$0xff]  ;;  %v419_v38 = vld [vmem:[#allocation2 + $0x10] sm:$0xff]  ;;  %v422_v39 = vld [vmem:[#allocation2 + $0x28] sm:$0xff] }
  0x2f   : > { %489 = vmatprep.subr.bf16.mxu0 %v418_v35  ;;  %915 = vmatprep.subr.bf16.mxu1 %v418_v35  ;;  %v421_v40 = vld [vmem:[#allocation2 + $0x20] sm:$0xff]  ;;  %v424_v41 = vld [vmem:[#allocation2 + $0x38] sm:$0xff]  ;;  %v423_v42 = vld [vmem:[#allocation2 + $0x30] sm:$0xff] }
  0x30   : > { %490 = vmatpush1.bf16.msra.mxu0 %v417_v36  ;;  %923 = vmatpush1.bf16.msra.mxu1 %v417_v36  ;;  %v426_v43 = vld [vmem:[#allocation2 + $0x48] sm:$0xff]  ;;  %v425_v44 = vld [vmem:[#allocation2 + $0x40] sm:$0xff]  ;;  %v428_v45 = vld [vmem:[#allocation2 + $0x58] sm:$0xff] }
  0x31   : > { %491 = vmatprep.subr.bf16.mxu0 %v420_v37  ;;  %916 = vmatprep.subr.bf16.mxu1 %v420_v37  ;;  %v427_v46 = vld [vmem:[#allocation2 + $0x50] sm:$0xff]  ;;  %v430_v47 = vld [vmem:[#allocation2 + $0x68] sm:$0xff]  ;;  %v429_v48 = vld [vmem:[#allocation2 + $0x60] sm:$0xff] }
  0x32   : > { %v432_v49 = vld [vmem:[#allocation2 + $0x78] sm:$0xff]  ;;  %v431_v50 = vld [vmem:[#allocation2 + $0x70] sm:$0xff]  ;;  %v978_v53 = vld [vmem:[%s1218_s9 + $0x8] sm:$0xff]  }
  0x33   : > { %v976_v51 = vld [vmem:[%s1218_s9] sm:$0xff]   ;;  %v979_v54 = vld [vmem:[%s1218_s9 + $0x28] sm:$0xff]   ;;  %v980_v55 = vld [vmem:[%s1218_s9 + $0x10] sm:$0xff]  }
  0x34   : > { %492 = vmatpush1.bf16.msra.mxu0 %v419_v38  ;;  %924 = vmatpush1.bf16.msra.mxu1 %v419_v38  ;;  %v977_v52 = vld [vmem:[%s1218_s9 + $0x20] sm:$0xff]   ;;  %v981_v56 = vld [vmem:[%s1218_s9 + $0x30] sm:$0xff]   ;;  %v982_v57 = vld [vmem:[%s1218_s9 + $0x18] sm:$0xff]  }
  0x35   : > { %493 = vmatprep.subr.bf16.mxu0 %v422_v39  ;;  %917 = vmatprep.subr.bf16.mxu1 %v422_v39 }
  0x38   : > { %494 = vmatpush1.bf16.msra.mxu0 %v421_v40  ;;  %925 = vmatpush1.bf16.msra.mxu1 %v421_v40 }
  0x39   : > { %495 = vmatprep.subr.bf16.mxu0 %v424_v41  ;;  %918 = vmatprep.subr.bf16.mxu1 %v424_v41 }
  0x3c   : > { %496 = vmatpush1.bf16.msra.mxu0 %v423_v42  ;;  %926 = vmatpush1.bf16.msra.mxu1 %v423_v42 }
  0x3d   : > { %497 = vmatprep.subr.bf16.mxu0 %v426_v43  ;;  %919 = vmatprep.subr.bf16.mxu1 %v426_v43 }
  0x40   : > { %498 = vmatpush1.bf16.msra.mxu0 %v425_v44  ;;  %927 = vmatpush1.bf16.msra.mxu1 %v425_v44 }
  0x41   : > { %499 = vmatprep.subr.bf16.mxu0 %v428_v45  ;;  %920 = vmatprep.subr.bf16.mxu1 %v428_v45 }
  0x44   : > { %500 = vmatpush1.bf16.msra.mxu0 %v427_v46  ;;  %928 = vmatpush1.bf16.msra.mxu1 %v427_v46 }
  0x45   : > { %501 = vmatprep.subr.bf16.mxu0 %v430_v47  ;;  %921 = vmatprep.subr.bf16.mxu1 %v430_v47 }
  0x48   : > { %502 = vmatpush1.bf16.msra.mxu0 %v429_v48  ;;  %929 = vmatpush1.bf16.msra.mxu1 %v429_v48 }
  0x49   : > { %503 = vmatprep.subr.bf16.mxu0 %v432_v49  ;;  %922 = vmatprep.subr.bf16.mxu1 %v432_v49 }
  0x4c   : > { %504 = vmatpush1.bf16.msra.mxu0 %v431_v50  ;;  %930 = vmatpush1.bf16.msra.mxu1 %v431_v50 }
  0x4f   : > { %522 = vmatmul.mubr.bf16.vlgmr.msra.gmra.mrb[0].mxu0 %v976_v51  ;;  %562 = vmatmul.mubr.bf16.vlgmr.msra.gmra.mrb[0].mxu1 %v977_v52 }
  0x50   : > { %531 = vmatprep.mubr.bf16.mxu0 %v1068_v34  ;;  %571 = vmatprep.mubr.bf16.mxu1 %v1068_v34 }
  0x57   : > { %532 = vmatmul.mubr.bf16.gmra.mrb[4].mxu0 %v978_v53  ;;  %572 = vmatmul.mubr.bf16.gmra.mrb[4].mxu1 %v979_v54 }
  0x58   : > { %541 = vmatprep.mubr.bf16.mxu0 %v1068_v34  ;;  %581 = vmatprep.mubr.bf16.mxu1 %v1068_v34 }
  0x5f   : > { %542 = vmatmul.mubr.bf16.gmra.mrb[8].mxu0 %v980_v55  ;;  %582 = vmatmul.mubr.bf16.gmra.mrb[8].mxu1 %v981_v56 }
  0x60   : > { %551 = vmatprep.mubr.bf16.mxu0 %v1068_v34 }
  0x67   : > { %552 = vmatmul.mubr.bf16.gmra.mrb[12].mxu0 %v982_v57 }
 0x122   : > { %v523_v58 = vpop.f32.mrb[0].mxu0  ;;  %v563_v59 = vpop.f32.mrb[0].mxu1 }
 0x123   : > { %v592_v60 = vmul.f32 %v523_v58, %v523_v58  ;;  %v600_v61 = vmul.f32 %v563_v59, %v563_v59  ;;  %v525_v62 = vpop.f32.mrb[1].mxu0  ;;  %v565_v63 = vpop.f32.mrb[1].mxu1 }
 0x124   : > { %v606_v0 = vmul.f32 %v525_v62, %v525_v62  ;;  %v614_v1 = vmul.f32 %v565_v63, %v565_v63  ;;  %v527_v2 = vpop.f32.mrb[2].mxu0  ;;  %v567_v3 = vpop.f32.mrb[2].mxu1 }
 0x125   : > { %v593_v4 = vmul.f32 %v527_v2, %v527_v2  ;;  %v601_v5 = vmul.f32 %v567_v3, %v567_v3  ;;  %v529_v6 = vpop.f32.mrb[3].mxu0  ;;  %v569_v7 = vpop.f32.mrb[3].mxu1 }
 0x126   : > { %v1234_v8 = vadd.f32 %v606_v0, %v592_v60  ;;  %v628_v9 = vadd.f32 %v614_v1, %v600_v61  ;;  %v607_v10 = vmul.f32 %v529_v6, %v529_v6  ;;  %v615_v11 = vmul.f32 %v569_v7, %v569_v7 }
 0x128   : > { %v1236_v12 = vmax.f32 %v628_v9, 1e-07  ;;  %v621_v13 = vadd.f32 %v607_v10, %v593_v4  ;;  %v629_v14 = vadd.f32 %v615_v11, %v601_v5 }
 0x12a   : > { %983 = vrcp.f32 %v1236_v12  ;;  %v635_v15 = vmax.f32 %v621_v13, 1e-07  ;;  %v643_v16 = vmax.f32 %v629_v14, 1e-07  ;;  %v533_v17 = vpop.f32.mrb[4].mxu0  ;;  %v573_v18 = vpop.f32.mrb[4].mxu1 }
 0x12b   : > { %v594_v19 = vmul.f32 %v533_v17, %v533_v17  ;;  %v602_v20 = vmul.f32 %v573_v18, %v573_v18  ;;  %v535_v21 = vpop.f32.mrb[5].mxu0  ;;  %v575_v22 = vpop.f32.mrb[5].mxu1 }
 0x12c   : > { %v1240_v23 = vadd.f32 %v1236_v12, %v635_v15  ;;  %v1243_v24 = vmul.f32 %v1236_v12, %v635_v15  ;;  %985 = vrcp.f32 %v643_v16  ;;  %v608_v25 = vmul.f32 %v535_v21, %v535_v21  ;;  %v537_v26 = vpop.f32.mrb[6].mxu0  ;;  %v577_v27 = vpop.f32.mrb[6].mxu1 }
 0x12d   : > { %v616_v28 = vmul.f32 %v575_v22, %v575_v22  ;;  %v595_v29 = vmul.f32 %v537_v26, %v537_v26  ;;  %v603_v30 = vmul.f32 %v577_v27, %v577_v27  ;;  %v539_v31 = vpop.f32.mrb[7].mxu0  ;;  %v579_v32 = vpop.f32.mrb[7].mxu1 }
 0x12e   : > { %987 = vrsqrt.f32 %v1243_v24  ;;  %v622_v33 = vadd.f32 %v608_v25, %v594_v19  ;;  %v609_v35 = vmul.f32 %v539_v31, %v539_v31  ;;  %v617_v36 = vmul.f32 %v579_v32, %v579_v32 }
 0x12f   : > { %v630_v34 = vadd.f32 %v616_v28, %v602_v20  ;;  %vm713_vm0 = vcmp.eq.f32.partialorder %v1243_v24, inf  ;;  %vm715_vm1 = vcmp.eq.f32.partialorder %v1243_v24, 0.0  ;;  %v716_v1 = vand.u32 2147483648, %v1243_v24 }
 0x130   : > { %v636_v37 = vmax.f32 %v622_v33, 1e-07  ;;  %v623_v39 = vadd.f32 %v609_v35, %v595_v29  ;;  %v631_v40 = vadd.f32 %v617_v36, %v603_v30 }
 0x131   : > { %v644_v38 = vmax.f32 %v630_v34, 1e-07 }
 0x132   : > { %v543_v41 = vpop.f32.mrb[8].mxu0  ;;  %v583_v42 = vpop.f32.mrb[8].mxu1  ;;  %v1246_v43 = vadd.f32 %v643_v16, %v636_v37  ;;  %v1248_v44 = vmul.f32 %v643_v16, %v636_v37  ;;  %v637_v49 = vmax.f32 %v623_v39, 1e-07  ;;  %v645_v50 = vmax.f32 %v631_v40, 1e-07 }
 0x133   : > { %989 = vrcp.f32 %v644_v38  ;;  %v1250_v45 = vadd.f32 %v644_v38, %v643_v16  ;;  %v545_v46 = vpop.f32.mrb[9].mxu0  ;;  %v585_v47 = vpop.f32.mrb[9].mxu1  ;;  %v596_v54 = vmul.f32 %v543_v41, %v543_v41  ;;  %v604_v55 = vmul.f32 %v583_v42, %v583_v42 }
 0x134   : > { %v984_v48 = vpop.eup %983  ;;  %v547_v51 = vpop.f32.mrb[10].mxu0  ;;  %991 = vrsqrt.f32 %v1248_v44  ;;  %v1255_v59 = vadd.f32 %v644_v38, %v637_v49  ;;  %v1257_v60 = vmul.f32 %v644_v38, %v637_v49  ;;  %v610_v62 = vmul.f32 %v545_v46, %v545_v46 }
 0x135   : > { %v587_v52 = vpop.f32.mrb[10].mxu1  ;;  %v1252_v53 = vmul.f32 %v984_v48, %v635_v15  ;;  %v549_v56 = vpop.f32.mrb[11].mxu0  ;;  %993 = vrcp.f32 %v645_v50  ;;  %v618_v63 = vmul.f32 %v585_v47, %v585_v47  ;;  %v597_v5 = vmul.f32 %v547_v51, %v547_v51 }
 0x136   : > { %v589_v57 = vpop.f32.mrb[11].mxu1  ;;  %v986_v58 = vpop.eup %985  ;;  %995 = vrsqrt.f32 %v1257_v60  ;;  %v624_v3 = vadd.f32 %v610_v62, %v596_v54  ;;  %v605_v6 = vmul.f32 %v587_v52, %v587_v52  ;;  %v611_v7 = vmul.f32 %v549_v56, %v549_v56 }
 0x137   : > { %v653_v61 = vmul.f32 %v986_v58, %v636_v37  ;;  %v632_v4 = vadd.f32 %v618_v63, %v604_v55  ;;  %v619_v9 = vmul.f32 %v589_v57, %v589_v57  ;;  %vm720_vm2 = vcmp.eq.f32.partialorder %v1248_v44, inf }
 0x138   : > { %v988_v0 = vpop.eup %987  ;;  %v638_v13 = vmax.f32 %v624_v3, 1e-07  ;;  %v625_v18 = vadd.f32 %v611_v7, %v597_v5  ;;  %v723_v37 = vand.u32 2147483648, %v1248_v44  ;;  %vm722_vm3 = vcmp.eq.f32.partialorder %v1248_v44, 0.0 }
 0x139   : > { %v712_v2 = vmul.f32 %v988_v0, %v1243_v24  ;;  %997 = vlog2.f32 %v653_v61  ;;  %v646_v14 = vmax.f32 %v632_v4, 1e-07  ;;  %v633_v19 = vadd.f32 %v619_v9, %v605_v6 }
 0x13a   : > { %v553_v10 = vpop.f32.mrb[12].mxu0  ;;  %v1269_v26 = vadd.f32 %v645_v50, %v638_v13  ;;  %v1271_v27 = vmul.f32 %v645_v50, %v638_v13  ;;  %v639_v31 = vmax.f32 %v625_v18, 1e-07  ;;  %vm727_vm4 = vcmp.eq.f32.partialorder %v1257_v60, inf }
 0x13b   : > { %v714_v11 = vsel %vm713_vm0, %v1243_v24, %v712_v2  ;;  %v598_v15 = vmul.f32 %v553_v10, %v553_v10  ;;  %v555_v16 = vpop.f32.mrb[13].mxu0  ;;  %999 = vrcp.f32 %v646_v14  ;;  %v797_v30 = vadd.f32 %v646_v14, %v645_v50 }
 0x13c   : > { %v717_v17 = vsel %vm715_vm1, %v716_v1, %v714_v11  ;;  %v612_v20 = vmul.f32 %v555_v16, %v555_v16  ;;  %v557_v21 = vpop.f32.mrb[14].mxu0  ;;  %v647_v32 = vmax.f32 %v633_v19, 1e-07  ;;  %1001 = vrsqrt.f32 %v1271_v27 }
 0x13d   : > { %v990_v22 = vpop.eup %989  ;;  %v1267_v25 = vmul.f32 2.0, %v717_v17  ;;  %v559_v28 = vpop.f32.mrb[15].mxu0  ;;  %v1278_v36 = vadd.f32 %v646_v14, %v639_v31  ;;  %v1281_v39 = vmul.f32 %v646_v14, %v639_v31  ;;  %v730_v51 = vand.u32 2147483648, %v1257_v60 }
 0x13e   : > { %v655_v29 = vmul.f32 %v990_v22, %v637_v49  ;;  %v992_v33 = vpop.eup %991  ;;  %v1285_v42 = vadd.f32 %v797_v30, %v647_v32  ;;  %v626_v46 = vadd.f32 %v612_v20, %v598_v15  ;;  %vm729_vm5 = vcmp.eq.f32.partialorder %v1257_v60, 0.0 }
 0x13f   : > { %v761_v24 = vsub.f32 %v1240_v23, %v1267_v25  ;;  %v994_v34 = vpop.eup %993  ;;  %v719_v35 = vmul.f32 %v992_v33, %v1248_v44  ;;  %v599_v63 = vmul.f32 %v557_v21, %v557_v21  ;;  %v613_v1 = vmul.f32 %v559_v28, %v559_v28  ;;  %v774_v25 = vld [vmem:[%s1188_s20] sm:$0xff] }
 0x140   : > { %1003 = vlog2.f32 %v655_v29  ;;  %v657_v38 = vmul.f32 %v994_v34, %v638_v13  ;;  %v996_v40 = vpop.eup %995  ;;  %v1299_v3 = vmax.f32 %v1234_v8, 1e-07  ;;  %vm734_vm6 = vcmp.eq.f32.partialorder %v1271_v27, inf }
 0x141   : > { %1005 = vrcp.f32 %v647_v32  ;;  %v721_v41 = vsel %vm720_vm2, %v1248_v44, %v719_v35  ;;  %v726_v49 = vmul.f32 %v996_v40, %v1257_v60  ;;  %v640_v44 = vmax.f32 %v626_v46, 1e-07 }
 0x142   : > { %v724_v48 = vsel %vm722_vm3, %v723_v37, %v721_v41  ;;  %1007 = vlog2.f32 %v657_v38  ;;  %v627_v6 = vadd.f32 %v613_v1, %v599_v63  ;;  %v737_v13 = vand.u32 2147483648, %v1271_v27 }
 0x143   : > { %v998_v47 = vpop.eup %997  ;;  %v755_v50 = vmul.f32 2.0, %v724_v48  ;;  %1009 = vrsqrt.f32 %v1281_v39  ;;  %v728_v52 = vsel %vm727_vm4, %v1257_v60, %v726_v49  ;;  %v1294_v61 = vadd.f32 %v647_v32, %v640_v44 }
 0x144   : > { %v667_v54 = vmul.f32 0.6931472, %v998_v47  ;;  %v731_v56 = vsel %vm729_vm5, %v730_v51, %v728_v52  ;;  %v1296_v62 = vmul.f32 %v647_v32, %v640_v44  ;;  %vm736_vm7 = vcmp.eq.f32.partialorder %v1271_v27, 0.0  ;;  %v909_v47 = vld [vmem:[%s1188_s20 + $0x10] sm:$0xff] }
 0x145   : > { %v762_v55 = vsub.f32 %v1246_v43, %v755_v50  ;;  %v1000_v57 = vpop.eup %999  ;;  %v756_v58 = vmul.f32 2.0, %v731_v56  ;;  %v641_v14 = vmax.f32 %v627_v6, 1e-07  ;;  %vm741_vm8 = vcmp.eq.f32.partialorder %v1281_v39, inf }
 0x146   : > { %v659_v0 = vmul.f32 %v1000_v57, %v639_v31  ;;  %v1002_v2 = vpop.eup %1001  ;;  %1011 = vrsqrt.f32 %v1296_v62  ;;  %v678_v4 = vand.u32 2147483647, %v667_v54  ;;  %vm743_vm9 = vcmp.eq.f32.partialorder %v1281_v39, 0.0 }
 0x147   : > { %v763_v60 = vsub.f32 %v1255_v59, %v756_v58  ;;  %v733_v5 = vmul.f32 %v1002_v2, %v1271_v27  ;;  %v769_v9 = vmax.f32 %v762_v55, 0.0  ;;  %v1312_v22 = vadd.f32 %v641_v14, %v1299_v3 }
 0x148   : > { %1013 = vlog2.f32 %v659_v0  ;;  %v685_v20 = vmul.f32 0.5, %v678_v4  ;;  %v744_v31 = vand.u32 2147483648, %v1281_v39  ;;  %v795_v32 = vadd.f32 %v1236_v12, %v641_v14 }
 0x149   : > { %v770_v11 = vmax.f32 %v763_v60, 0.0  ;;  %v735_v8 = vsel %vm734_vm6, %v1271_v27, %v733_v5  ;;  %v697_v27 = vmul.f32 %v641_v14, %v1299_v3  ;;  %vm748_vm10 = vcmp.eq.f32.partialorder %v1296_v62, inf }
 0x14a   : > { %v1004_v43 = vpop.eup %1003  ;;  %v738_v18 = vsel %vm736_vm7, %v737_v13, %v735_v8  ;;  %v751_v12 = vand.u32 2147483648, %v1296_v62  ;;  %vm750_vm11 = vcmp.eq.f32.partialorder %v1296_v62, 0.0 }
 0x14b   : > { %v1006_v7 = vpop.eup %1005  ;;  %v669_v10 = vmul.f32 0.6931472, %v1004_v43  ;;  %v1308_v17 = vadd.f32 %v770_v11, %v769_v9  ;;  %v757_v21 = vmul.f32 2.0, %v738_v18  ;;  %vm706_vm12 = vcmp.eq.f32.partialorder %v697_v27, inf }
 0x14c   : > { %v661_v59 = vmul.f32 %v1006_v7, %v640_v44  ;;  %v1008_v15 = vpop.eup %1007  ;;  %v709_v6 = vand.u32 2147483648, %v697_v27  ;;  %vm708_vm13 = vcmp.eq.f32.partialorder %v697_v27, 0.0 }
 0x14d   : > { %v679_v16 = vand.u32 2147483647, %v669_v10  ;;  %v1010_v19 = vpop.eup %1009  ;;  %v764_v30 = vsub.f32 %v1269_v26, %v757_v21  ;;  %v671_v34 = vmul.f32 0.6931472, %v1008_v15  ;;  %v798_v26 = vadd.f32 %v1250_v45, %v795_v32 }
 0x14e   : > { %1015 = vlog2.f32 %v661_v59  ;;  %v740_v29 = vmul.f32 %v1010_v19, %v1281_v39  ;;  %v768_v59 = vmax.f32 %v761_v24, 0.0 }
 0x14f   : > { %v686_v28 = vmul.f32 0.5, %v679_v16  ;;  %1017 = vrcp.f32 %v641_v14  ;;  %v680_v48 = vand.u32 2147483647, %v671_v34  ;;  %v771_v51 = vmax.f32 %v764_v30, 0.0 }
 0x150   : > { %v742_v35 = vsel %vm741_vm8, %v1281_v39, %v740_v29  ;;  %1019 = vrsqrt.f32 %v697_v27  ;;  %v1012_v38 = vpop.eup %1011  ;;  %v800_v39 = vadd.f32 %v1285_v42, %v798_v26 }
 0x151   : > { %v1320_v33 = vadd.f32 %v686_v28, %v685_v20  ;;  %v745_v37 = vsel %vm743_vm9, %v744_v31, %v742_v35  ;;  %v747_v46 = vmul.f32 %v1012_v38, %v1296_v62  ;;  %1021 = vlog2.f32 %v1252_v53  ;;  %v907_v28 = vld [vmem:[%s1188_s20 + $0x8] sm:$0xff] }
 0x152   : > { %v758_v40 = vmul.f32 2.0, %v745_v37  ;;  %v1014_v41 = vpop.eup %1013  ;;  %v801_v55 = vadd.f32 %v909_v47, %v800_v39  ;;  %v687_v63 = vmul.f32 0.5, %v680_v48 }
 0x153   : > { %v673_v49 = vmul.f32 0.6931472, %v1014_v41  ;;  %v749_v45 = vsel %vm748_vm10, %v1296_v62, %v747_v46 }
 0x154   : > { %v765_v50 = vsub.f32 %v1278_v36, %v758_v40  ;;  %v752_v54 = vsel %vm750_vm11, %v751_v12, %v749_v45  ;;  %910 = vst [vmem:[%s1188_s20 + $0x10] sm:$0xff] %v801_v55 }
 0x155   : > { %v681_v52 = vand.u32 2147483647, %v673_v49  ;;  %v759_v57 = vmul.f32 2.0, %v752_v54 }
 0x156   : > { %v772_v44 = vmax.f32 %v765_v50, 0.0 }
 0x157   : > { %v688_v0 = vmul.f32 0.5, %v681_v52  ;;  %v766_v42 = vsub.f32 %v1294_v61, %v759_v57 }
 0x158   : > { %v1016_v56 = vpop.eup %1015  ;;  %v787_v36 = vadd.f32 %v772_v44, %v771_v51 }
 0x159   : > { %v1018_v58 = vpop.eup %1017  ;;  %v675_v1 = vmul.f32 0.6931472, %v1016_v56  ;;  %v777_v60 = vadd.f32 %v688_v0, %v687_v63  ;;  %v773_v62 = vmax.f32 %v766_v42, 0.0 }
 0x15a   : > { %v649_v53 = vmul.f32 %v1018_v58, %v1299_v3  ;;  %v1020_v2 = vpop.eup %1019 }
 0x15b   : > { %v682_v43 = vand.u32 2147483647, %v675_v1  ;;  %v705_v4 = vmul.f32 %v1020_v2, %v697_v27  ;;  %v789_v7 = vadd.f32 %v787_v36, %v773_v62  ;;  %v1022_v13 = vpop.eup %1021 }
 0x15c   : > { %1023 = vlog2.f32 %v649_v53  ;;  %v665_v3 = vmul.f32 0.6931472, %v1022_v13 }
 0x15d   : > { %v689_v5 = vmul.f32 0.5, %v682_v43  ;;  %v707_v9 = vsel %vm706_vm12, %v697_v27, %v705_v4 }
 0x15e   : > { %v710_v11 = vsel %vm708_vm13, %v709_v6, %v707_v9  ;;  %v677_v18 = vand.u32 2147483647, %v665_v3 }
 0x15f   : > { %v779_v10 = vadd.f32 %v777_v60, %v689_v5  ;;  %v753_v8 = vmul.f32 2.0, %v710_v11 }
 0x160   : > { %v684_v27 = vmul.f32 0.5, %v677_v18 }
 0x161   : > { %v760_v61 = vsub.f32 %v1312_v22, %v753_v8 }
 0x163   : > { %v767_v14 = vmax.f32 %v760_v61, 0.0 }
 0x165   : > { %v785_v16 = vadd.f32 %v768_v59, %v767_v14 }
 0x166   : > { %v1024_v15 = vpop.eup %1023 }
 0x167   : > { %v663_v19 = vmul.f32 0.6931472, %v1024_v15  ;;  %v788_v20 = vadd.f32 %v1308_v17, %v785_v16 }
 0x169   : > { %v676_v21 = vand.u32 2147483647, %v663_v19  ;;  %v790_v29 = vadd.f32 %v789_v7, %v788_v20 }
 0x16b   : > { %v683_v22 = vmul.f32 0.5, %v676_v21  ;;  %v791_v30 = vadd.f32 %v907_v28, %v790_v29 }
 0x16d   : > { %v775_v31 = vadd.f32 %v684_v27, %v683_v22  ;;  %908 = vst [vmem:[%s1188_s20 + $0x8] sm:$0xff] %v791_v30 }
 0x16f   : > { %v778_v23 = vadd.f32 %v1320_v33, %v775_v31 }
 0x171   : > { %v780_v24 = vadd.f32 %v779_v10, %v778_v23 }
 0x173   : > { %v781_v32 = vadd.f32 %v780_v24, %v774_v25 }
 0x175   : > { %782 = vst [vmem:[%s1188_s20] sm:$0xff] %v781_v32 }
 0x176 PF: > { %s12_s13 = sadd.s32 1, %s1065_s13   ;;  %s1366_s9 = smov %s1053_s10 }
 0x177   : > { %p9_p10 = scmp.ge.s32.totalorder %s12_s13, 4   ;;  %s1367_s10 = smov %s1119_s17 }
 0x178   : > { %s1368_s11 = smov %s1061_s12  ;;  %s1369_s12 = smov %s1371_s14 }
 0x179   :  { %11 = sbr.rel (!%p9_p10) target bundleno = 3 (0x3), region = 157 }
 0x180   :  { %824 = vsyncmov [#allocation3] }
 0x183   :  { %s825_s30 = vpop.sfrf %824 }
 0x184   :  { %p913_p11 = scmp.ne.s32.totalorder %s825_s30, 0 }
 0x186   :  { %829 = shalt.err (%p913_p11)  }

// kernel: multi_resolution_stft_loss.5
= control target key start
LH: loop header
LB: loop body
LE: loop exit
PB: predicated region body
PF: predicated region fallthrough
CT: control target
= control target key end

     0   :  { %s1422_s9 = smov 0   ;;  %s1424_s10 = smov 0   ;;  %s1872_s0 = inlined_call_operand.vmem [shape: bf16[2,208,64], index: 0, kind: input, shape index: {}]   ;;  %s1873_s1 = inlined_call_operand.vmem [shape: bf16[64,256], index: 1, kind: input, shape index: {}]   ;;  %s1874_s2 = inlined_call_operand.vmem [shape: f32[2,3,8,128], index: 2, kind: output, shape index: {}]  }
   0x1   :  { %s1426_s11 = smov 0   ;;  %s1428_s12 = smov 0  }
   0x2   :  { %s1430_s13 = smov 0  }
   0x3 LB: > { %s24_s14 = sadd.s32 1, %s1399_s12  ;;  %p40_p1 = scmp.ne.s32.totalorder %s1391_s10, %s1387_s9  ;;  %s1403_s13 = sphi %s1430_s13, %s12_s13   ;;  %s1399_s12 = sphi %s1428_s12, %s1878_s12   ;;  %s1395_s11 = sphi %s1426_s11, %s1877_s11   ;;  %s1391_s10 = sphi %s1424_s10, %s1876_s10   ;;  %s1387_s9 = sphi %s1422_s9, %s1875_s9  }
   0x4   : > { %p26_p0 = scmp.ge.s32.totalorder %s24_s14, 2  ;;  %p41_p2 = scmp.eq.s32.totalorder %s1403_s13, 0 }
   0x5   : > { %s33_s16 = sadd.s32 1, %s1391_s10  ;;  %p1181_p5 = scmp.ge.s32.totalorder %s1403_s13, 2 }
   0x6   : > { %s1880_s14 = smov (%p26_p0, %s24_s14), 0  ;;  %p42_p3 = por %p41_p2, %p40_p1 }
   0x7   : > { %s30_s15 = ssub.s32 %s1399_s12, %s1880_s14  ;;  %92 = sbr.rel (%p1181_p5) target bundleno = 26 (0x1a), region = 16 }
   0x8   : > { %p31_p4 = scmp.eq.s32.totalorder %s30_s15, 0 }
   0xa   : > { %s1457_s17 = scalar_select %p31_p4, %s1391_s10, %s33_s16  }
   0xe   : > { %95 = sbr.rel (!%p42_p3) target bundleno = 26 (0x1a), region = 20  ;;  %s97_s18 = sand.u32 (%p42_p3), 1, %s1391_s10  }
   0xf   : > { %s1218_s19 = smul.u32 (%p42_p3), 52, %s1399_s12 }
  0x10   : > { %s1227_s20 = smul.u32 (%p42_p3), 104, %s97_s18 }
  0x11   : > { %s103_s23 = scalar_lea.vmem (%p42_p3), %s1872_s0, %s1218_s19 }
  0x12   : > { %v119_v0 = vld [vmem:[%s103_s23] sm:$0xff] (%p42_p3)   ;;  %v123_v1 = vld [vmem:[%s103_s23 + $0x8] sm:$0xff] (%p42_p3)   ;;  %v127_v2 = vld [vmem:[%s103_s23 + $0x10] sm:$0xff] (%p42_p3)   ;;  %s99_s24 = scalar_lea.vmem (%p42_p3), [#allocation4], %s1227_s20 }
  0x13   : > { %120 = vst [vmem:[%s99_s24] sm:$0xff] (%p42_p3), %v119_v0   ;;  %124 = vst [vmem:[%s99_s24 + $0x8] sm:$0xff] (%p42_p3), %v123_v1   ;;  %v131_v3 = vld [vmem:[%s103_s23 + $0x18] sm:$0xff] (%p42_p3)   ;;  %v135_v4 = vld [vmem:[%s103_s23 + $0x20] sm:$0xff] (%p42_p3)  }
  0x14   : > { %128 = vst [vmem:[%s99_s24 + $0x10] sm:$0xff] (%p42_p3), %v127_v2   ;;  %v139_v5 = vld [vmem:[%s103_s23 + $0x28] sm:$0xff] (%p42_p3)   ;;  %132 = vst [vmem:[%s99_s24 + $0x18] sm:$0xff] (%p42_p3), %v131_v3   ;;  %v143_v6 = vld [vmem:[%s103_s23 + $0x30] sm:$0xf] (%p42_p3) }
  0x15   : > { %136 = vst [vmem:[%s99_s24 + $0x20] sm:$0xff] %v135_v4   ;;  %140 = vst [vmem:[%s99_s24 + $0x28] sm:$0xff] %v139_v5   ;;  %v145_v7 = vld [vmem:[%s103_s23 + $0x68] sm:$0xff]   ;;  %v149_v8 = vld [vmem:[%s103_s23 + $0x70] sm:$0xff]  }
  0x16   : > { %144 = vst [vmem:[%s99_s24 + $0x30] sm:$0xf] %v143_v6  ;;  %146 = vst [vmem:[%s99_s24 + $0x34] sm:$0xff] %v145_v7   ;;  %v153_v9 = vld [vmem:[%s103_s23 + $0x78] sm:$0xff]   ;;  %v157_v10 = vld [vmem:[%s103_s23 + $0x80] sm:$0xff]  }
  0x17   : > { %150 = vst [vmem:[%s99_s24 + $0x3c] sm:$0xff] %v149_v8   ;;  %v161_v11 = vld [vmem:[%s103_s23 + $0x88] sm:$0xff]   ;;  %154 = vst [vmem:[%s99_s24 + $0x44] sm:$0xff] %v153_v9   ;;  %v165_v12 = vld [vmem:[%s103_s23 + $0x90] sm:$0xff]  }
  0x18   : > { %158 = vst [vmem:[%s99_s24 + $0x4c] sm:$0xff] %v157_v10   ;;  %162 = vst [vmem:[%s99_s24 + $0x54] sm:$0xff] %v161_v11   ;;  %v169_v13 = vld [vmem:[%s103_s23 + $0x98] sm:$0xf] }
  0x19   : > { %166 = vst [vmem:[%s99_s24 + $0x5c] sm:$0xff] %v165_v12   ;;  %170 = vst [vmem:[%s99_s24 + $0x64] sm:$0xf] %v169_v13 }
  0x1a PF: > { %p1183_p6 = scmp.ge.s32.totalorder %s1403_s13, 1  ;;  %p244_p7 = scmp.lt.s32.totalorder %s1403_s13, 3 }
  0x1c   : > { %p245_p8 = pnand %p1183_p6, %p244_p7 }
  0x1d   : > { %s251_s25 = sand.u32 (!%p245_p8), 1, %s1387_s9   ;;  %p272_p9 = scmp.lt.s32.totalorder (!%p245_p8), %s1395_s11, 1  ;;  %v302_v14 = vld [vmem:[%s1873_s1] sm:$0xf] (!%p245_p8)  ;;  %v308_v15 = vld [vmem:[%s1873_s1 + $0xc] sm:$0xff] (!%p245_p8)   ;;  %v1405_v27 = vmov (!%p245_p8), 0.0  }
  0x1e   : > { %248 = sbr.rel (%p245_p8) target bundleno = 397 (0x18d), region = 61  ;;  %303 = vst [vmem:[#allocation2] sm:$0xf] (!%p245_p8), %v302_v14  ;;  %v304_v16 = vld [vmem:[%s1873_s1 + $0x8] sm:$0xf] (!%p245_p8)  ;;  %309 = vst [vmem:[#allocation2 + $0xc] sm:$0xff] (!%p245_p8), %v308_v15  }
  0x1f   : > { %s1475_s30 = smul.u32 (!%p245_p8), 104, %s251_s25  ;;  %v306_v17 = vld [vmem:[%s1873_s1 + $0x4] sm:$0xf] (!%p245_p8)  ;;  %v316_v18 = vld [vmem:[%s1873_s1 + $0x1c] sm:$0xff] (!%p245_p8)   ;;  %305 = vst [vmem:[#allocation2 + $0x4] sm:$0xf] (!%p245_p8), %v304_v16 }
  0x20   : > { %307 = vst [vmem:[#allocation2 + $0x8] sm:$0xf] (!%p245_p8), %v306_v17  ;;  %v312_v19 = vld [vmem:[%s1873_s1 + $0x18] sm:$0xf] (!%p245_p8)  ;;  %v314_v20 = vld [vmem:[%s1873_s1 + $0x14] sm:$0xf] (!%p245_p8) }
  0x21   : > { %317 = vst [vmem:[#allocation2 + $0x1c] sm:$0xff] (!%p245_p8), %v316_v18   ;;  %v324_v21 = vld [vmem:[%s1873_s1 + $0x2c] sm:$0xff] (!%p245_p8)   ;;  %313 = vst [vmem:[#allocation2 + $0x14] sm:$0xf] (!%p245_p8), %v312_v19  ;;  %v320_v22 = vld [vmem:[%s1873_s1 + $0x28] sm:$0xf] (!%p245_p8) }
  0x22   : > { %315 = vst [vmem:[#allocation2 + $0x18] sm:$0xf] (!%p245_p8), %v314_v20  ;;  %v322_v23 = vld [vmem:[%s1873_s1 + $0x24] sm:$0xf] (!%p245_p8)  ;;  %325 = vst [vmem:[#allocation2 + $0x2c] sm:$0xff] (!%p245_p8), %v324_v21   ;;  %s1520_s7 = scalar_lea.vmem (!%p245_p8), [#allocation4], %s1475_s30 }
  0x23   : > { %321 = vst [vmem:[#allocation2 + $0x24] sm:$0xf] (!%p245_p8), %v320_v22  ;;  %323 = vst [vmem:[#allocation2 + $0x28] sm:$0xf] (!%p245_p8), %v322_v23  ;;  %v328_v24 = vld [vmem:[%s1873_s1 + $0x38] sm:$0xf] (!%p245_p8) }
  0x24   : > { %v330_v25 = vld [vmem:[%s1873_s1 + $0x34] sm:$0xf] (!%p245_p8)  ;;  %329 = vst [vmem:[#allocation2 + $0x34] sm:$0xf] (!%p245_p8), %v328_v24  ;;  %v332_v26 = vld [vmem:[%s1873_s1 + $0x3c] sm:$0xf] (!%p245_p8) }
  0x25   : > { %s1882_s11 = smov (!%p272_p9, %s1395_s11), 1  ;;  %331 = vst [vmem:[#allocation2 + $0x38] sm:$0xf] %v330_v25  ;;  %333 = vst [vmem:[#allocation2 + $0x3c] sm:$0xf] %v332_v26 }
  0x26   : > { %s1229_s25 = smul.u32 24, %s1882_s11 }
  0x28   : > { %s1514_s11 = scalar_lea.vmem %s1874_s2, %s1229_s25 }
  0x29   : > { %282 = vst [vmem:[%s1514_s11] sm:$0xff] %v1405_v27  ;;  %283 = vst [vmem:[%s1514_s11 + $0x8] sm:$0xff] %v1405_v27 }
  0x2a   : > { %284 = vst [vmem:[%s1514_s11 + $0x10] sm:$0xff] %v1405_v27 }
  0x2b   : > { %396 = vsyncadd [#allocation3], 1024 }
  0x2c   : > { %1383 = dma.done.wait [#allocation3], 1024 }
  0x2d   : > { %1384 = vsyncadd [#allocation3], 4294966272  ;;  %v1406_v28 = vmov 0   ;;  %v402_v29 = vld [vmem:[#allocation2 + $0x8] sm:$0xff]  ;;  %v401_v30 = vld [vmem:[#allocation2] sm:$0xff]  ;;  %vm500_vm0 = vcmask 523264  }
  0x2e   : > { %572 = vmatprep.mubr.bf16.mxu0 %v1406_v28  ;;  %642 = vmatprep.mubr.bf16.mxu1 %v1406_v28  ;;  %v404_v31 = vld [vmem:[#allocation2 + $0x18] sm:$0xff]  ;;  %v403_v32 = vld [vmem:[#allocation2 + $0x10] sm:$0xff]  ;;  %v406_v33 = vld [vmem:[#allocation2 + $0x28] sm:$0xff] }
  0x2f   : > { %540 = vmatprep.subr.bf16.mxu0 %v402_v29  ;;  %1219 = vmatprep.subr.bf16.mxu1 %v402_v29  ;;  %v405_v34 = vld [vmem:[#allocation2 + $0x20] sm:$0xff]  ;;  %v408_v35 = vld [vmem:[#allocation2 + $0x38] sm:$0xff]  ;;  %v407_v36 = vld [vmem:[#allocation2 + $0x30] sm:$0xff] }
  0x30   : > { %541 = vmatpush1.bf16.msra.mxu0 %v401_v30  ;;  %1223 = vmatpush1.bf16.msra.mxu1 %v401_v30  ;;  %v1272_v37 = vld [vmem:[%s1520_s7] sm:$0xff]   ;;  %v1273_v38 = vld [vmem:[%s1520_s7 + $0x38] sm:$0xff]   ;;  %v1274_v39 = vld [vmem:[%s1520_s7 + $0x8] sm:$0xff]  }
  0x31   : > { %542 = vmatprep.subr.bf16.mxu0 %v404_v31  ;;  %1220 = vmatprep.subr.bf16.mxu1 %v404_v31  ;;  %v1275_v40 = vld [vmem:[%s1520_s7 + $0x40] sm:$0xff]   ;;  %v1276_v41 = vld [vmem:[%s1520_s7 + $0x10] sm:$0xff]   ;;  %v1277_v42 = vld [vmem:[%s1520_s7 + $0x48] sm:$0xff]  }
  0x32   : > { %v1278_v43 = vld [vmem:[%s1520_s7 + $0x18] sm:$0xff]   ;;  %v1279_v44 = vld [vmem:[%s1520_s7 + $0x50] sm:$0xff]   ;;  %v1280_v45 = vld [vmem:[%s1520_s7 + $0x20] sm:$0xff]  }
  0x33   : > { %v1281_v46 = vld [vmem:[%s1520_s7 + $0x58] sm:$0xff]   ;;  %v1282_v47 = vld [vmem:[%s1520_s7 + $0x28] sm:$0xff]   ;;  %v1283_v48 = vld [vmem:[%s1520_s7 + $0x60] sm:$0xff]  }
  0x34   : > { %543 = vmatpush1.bf16.msra.mxu0 %v403_v32  ;;  %1224 = vmatpush1.bf16.msra.mxu1 %v403_v32  ;;  %v1284_v49 = vld [vmem:[%s1520_s7 + $0x30] sm:$0xff]  }
  0x35   : > { %544 = vmatprep.subr.bf16.mxu0 %v406_v33  ;;  %1221 = vmatprep.subr.bf16.mxu1 %v406_v33 }
  0x38   : > { %545 = vmatpush1.bf16.msra.mxu0 %v405_v34  ;;  %1225 = vmatpush1.bf16.msra.mxu1 %v405_v34 }
  0x39   : > { %546 = vmatprep.subr.bf16.mxu0 %v408_v35  ;;  %1222 = vmatprep.subr.bf16.mxu1 %v408_v35 }
  0x3c   : > { %547 = vmatpush1.bf16.msra.mxu0 %v407_v36  ;;  %1226 = vmatpush1.bf16.msra.mxu1 %v407_v36 }
  0x3f   : > { %1198 = vmatmul.mubr.msk.bf16.vlgmr.msra.gmra.mrb[0].mxu0 %vm500_vm0, %v1272_v37  ;;  %1205 = vmatmul.mubr.msk.bf16.vlgmr.msra.gmra.mrb[0].mxu1 %vm500_vm0, %v1273_v38 }
  0x40   : > { %582 = vmatprep.mubr.bf16.mxu0 %v1406_v28  ;;  %652 = vmatprep.mubr.bf16.mxu1 %v1406_v28 }
  0x47   : > { %1199 = vmatmul.mubr.msk.bf16.gmra.mrb[4].mxu0 %vm500_vm0, %v1274_v39  ;;  %1206 = vmatmul.mubr.msk.bf16.gmra.mrb[4].mxu1 %vm500_vm0, %v1275_v40 }
  0x48   : > { %592 = vmatprep.mubr.bf16.mxu0 %v1406_v28  ;;  %662 = vmatprep.mubr.bf16.mxu1 %v1406_v28 }
  0x4f   : > { %1200 = vmatmul.mubr.msk.bf16.gmra.mrb[8].mxu0 %vm500_vm0, %v1276_v41  ;;  %1207 = vmatmul.mubr.msk.bf16.gmra.mrb[8].mxu1 %vm500_vm0, %v1277_v42 }
  0x50   : > { %602 = vmatprep.mubr.bf16.mxu0 %v1406_v28  ;;  %672 = vmatprep.mubr.bf16.mxu1 %v1406_v28 }
  0x57   : > { %1201 = vmatmul.mubr.msk.bf16.gmra.mrb[12].mxu0 %vm500_vm0, %v1278_v43  ;;  %1208 = vmatmul.mubr.msk.bf16.gmra.mrb[12].mxu1 %vm500_vm0, %v1279_v44 }
  0x58   : > { %612 = vmatprep.mubr.bf16.mxu0 %v1406_v28  ;;  %682 = vmatprep.mubr.bf16.mxu1 %v1406_v28 }
  0x5f   : > { %1202 = vmatmul.mubr.msk.bf16.gmra.mrb[16].mxu0 %vm500_vm0, %v1280_v45  ;;  %1209 = vmatmul.mubr.msk.bf16.gmra.mrb[16].mxu1 %vm500_vm0, %v1281_v46 }
  0x60   : > { %622 = vmatprep.mubr.bf16.mxu0 %v1406_v28  ;;  %692 = vmatprep.mubr.bf16.mxu1 %v1406_v28 }
  0x67   : > { %1203 = vmatmul.mubr.msk.bf16.gmra.mrb[20].mxu0 %vm500_vm0, %v1282_v47  ;;  %1210 = vmatmul.mubr.msk.bf16.gmra.mrb[20].mxu1 %vm500_vm0, %v1283_v48 }
  0x68   : > { %632 = vmatprep.mubr.bf16.mxu0 %v1406_v28 }
  0x6f   : > { %1204 = vmatmul.mubr.msk.bf16.gmra.mrb[24].mxu0 %vm500_vm0, %v1284_v49 }
 0x112   : > { %v574_v50 = vpop.f32.mrb[0].mxu0  ;;  %v644_v51 = vpop.f32.mrb[0].mxu1 }
 0x113   : > { %v703_v52 = vmul.f32 %v574_v50, %v574_v50  ;;  %v717_v53 = vmul.f32 %v644_v51, %v644_v51  ;;  %v576_v54 = vpop.f32.mrb[1].mxu0  ;;  %v646_v55 = vpop.f32.mrb[1].mxu1 }
 0x114   : > { %v729_v56 = vmul.f32 %v576_v54, %v576_v54  ;;  %v743_v57 = vmul.f32 %v646_v55, %v646_v55  ;;  %v578_v58 = vpop.f32.mrb[2].mxu0  ;;  %v648_v59 = vpop.f32.mrb[2].mxu1 }
 0x115   : > { %v704_v60 = vmul.f32 %v578_v58, %v578_v58  ;;  %v718_v61 = vmul.f32 %v648_v59, %v648_v59  ;;  %v580_v62 = vpop.f32.mrb[3].mxu0  ;;  %v650_v63 = vpop.f32.mrb[3].mxu1 }
 0x116   : > { %v1548_v0 = vadd.f32 %v729_v56, %v703_v52  ;;  %v769_v1 = vadd.f32 %v743_v57, %v717_v53  ;;  %v730_v2 = vmul.f32 %v580_v62, %v580_v62  ;;  %v744_v3 = vmul.f32 %v650_v63, %v650_v63 }
 0x118   : > { %v1550_v4 = vmax.f32 %v769_v1, 1e-07  ;;  %v756_v5 = vadd.f32 %v730_v2, %v704_v60  ;;  %v770_v6 = vadd.f32 %v744_v3, %v718_v61 }
 0x11a   : > { %1285 = vrcp.f32 %v1550_v4  ;;  %v782_v7 = vmax.f32 %v756_v5, 1e-07  ;;  %v796_v8 = vmax.f32 %v770_v6, 1e-07  ;;  %v584_v9 = vpop.f32.mrb[4].mxu0  ;;  %v654_v10 = vpop.f32.mrb[4].mxu1 }
 0x11b   : > { %v705_v11 = vmul.f32 %v584_v9, %v584_v9  ;;  %v719_v12 = vmul.f32 %v654_v10, %v654_v10  ;;  %v586_v13 = vpop.f32.mrb[5].mxu0  ;;  %v656_v14 = vpop.f32.mrb[5].mxu1 }
 0x11c   : > { %v1554_v15 = vadd.f32 %v1550_v4, %v782_v7  ;;  %v1557_v16 = vmul.f32 %v1550_v4, %v782_v7  ;;  %1287 = vrcp.f32 %v796_v8  ;;  %v731_v17 = vmul.f32 %v586_v13, %v586_v13  ;;  %v588_v18 = vpop.f32.mrb[6].mxu0  ;;  %v658_v19 = vpop.f32.mrb[6].mxu1 }
 0x11d   : > { %v745_v20 = vmul.f32 %v656_v14, %v656_v14  ;;  %v706_v21 = vmul.f32 %v588_v18, %v588_v18  ;;  %v720_v22 = vmul.f32 %v658_v19, %v658_v19  ;;  %v590_v23 = vpop.f32.mrb[7].mxu0  ;;  %v660_v24 = vpop.f32.mrb[7].mxu1 }
 0x11e   : > { %1289 = vrsqrt.f32 %v1557_v16  ;;  %v757_v25 = vadd.f32 %v731_v17, %v705_v11  ;;  %v732_v27 = vmul.f32 %v590_v23, %v590_v23  ;;  %v746_v28 = vmul.f32 %v660_v24, %v660_v24 }
 0x11f   : > { %v771_v26 = vadd.f32 %v745_v20, %v719_v12  ;;  %vm920_vm1 = vcmp.eq.f32.partialorder %v1557_v16, inf  ;;  %vm922_vm2 = vcmp.eq.f32.partialorder %v1557_v16, 0.0  ;;  %v923_v57 = vand.u32 2147483648, %v1557_v16 }
 0x120   : > { %v783_v29 = vmax.f32 %v757_v25, 1e-07  ;;  %v758_v31 = vadd.f32 %v732_v27, %v706_v21  ;;  %v772_v32 = vadd.f32 %v746_v28, %v720_v22 }
 0x121   : > { %v797_v30 = vmax.f32 %v771_v26, 1e-07 }
 0x122   : > { %v594_v33 = vpop.f32.mrb[8].mxu0  ;;  %v664_v34 = vpop.f32.mrb[8].mxu1  ;;  %v1560_v35 = vadd.f32 %v796_v8, %v783_v29  ;;  %v1562_v36 = vmul.f32 %v796_v8, %v783_v29  ;;  %v784_v41 = vmax.f32 %v758_v31, 1e-07  ;;  %v798_v42 = vmax.f32 %v772_v32, 1e-07 }
 0x123   : > { %1291 = vrcp.f32 %v797_v30  ;;  %v1564_v37 = vadd.f32 %v797_v30, %v796_v8  ;;  %v596_v38 = vpop.f32.mrb[9].mxu0  ;;  %v666_v39 = vpop.f32.mrb[9].mxu1  ;;  %v707_v46 = vmul.f32 %v594_v33, %v594_v33  ;;  %v721_v47 = vmul.f32 %v664_v34, %v664_v34 }
 0x124   : > { %v1286_v40 = vpop.eup %1285  ;;  %v598_v43 = vpop.f32.mrb[10].mxu0  ;;  %1293 = vrsqrt.f32 %v1562_v36  ;;  %v1569_v51 = vadd.f32 %v797_v30, %v784_v41  ;;  %v1571_v52 = vmul.f32 %v797_v30, %v784_v41  ;;  %v733_v54 = vmul.f32 %v596_v38, %v596_v38 }
 0x125   : > { %v668_v44 = vpop.f32.mrb[10].mxu1  ;;  %v1566_v45 = vmul.f32 %v1286_v40, %v782_v7  ;;  %v600_v48 = vpop.f32.mrb[11].mxu0  ;;  %1295 = vrcp.f32 %v798_v42  ;;  %v747_v55 = vmul.f32 %v666_v39, %v666_v39  ;;  %v708_v61 = vmul.f32 %v598_v43, %v598_v43 }
 0x126   : > { %v670_v49 = vpop.f32.mrb[11].mxu1  ;;  %v1288_v50 = vpop.eup %1287  ;;  %1297 = vrsqrt.f32 %v1571_v52  ;;  %v759_v59 = vadd.f32 %v733_v54, %v707_v46  ;;  %v722_v62 = vmul.f32 %v668_v44, %v668_v44  ;;  %v734_v63 = vmul.f32 %v600_v48, %v600_v48 }
 0x127   : > { %v812_v53 = vmul.f32 %v1288_v50, %v783_v29  ;;  %v773_v60 = vadd.f32 %v747_v55, %v721_v47  ;;  %v748_v1 = vmul.f32 %v670_v49, %v670_v49  ;;  %vm927_vm3 = vcmp.eq.f32.partialorder %v1562_v36, inf }
 0x128   : > { %v1290_v56 = vpop.eup %1289  ;;  %v785_v6 = vmax.f32 %v759_v59, 1e-07  ;;  %v760_v11 = vadd.f32 %v734_v63, %v708_v61  ;;  %vm929_vm4 = vcmp.eq.f32.partialorder %v1562_v36, 0.0  ;;  %v930_v30 = vand.u32 2147483648, %v1562_v36 }
 0x129   : > { %v919_v58 = vmul.f32 %v1290_v56, %v1557_v16  ;;  %1299 = vlog2.f32 %v812_v53  ;;  %v799_v7 = vmax.f32 %v773_v60, 1e-07  ;;  %v774_v12 = vadd.f32 %v748_v1, %v722_v62 }
 0x12a   : > { %v604_v2 = vpop.f32.mrb[12].mxu0  ;;  %v674_v3 = vpop.f32.mrb[12].mxu1  ;;  %v1587_v19 = vadd.f32 %v798_v42, %v785_v6  ;;  %v1589_v20 = vmul.f32 %v798_v42, %v785_v6  ;;  %v786_v24 = vmax.f32 %v760_v11, 1e-07  ;;  %vm934_vm5 = vcmp.eq.f32.partialorder %v1571_v52, inf }
 0x12b   : > { %v921_v5 = vsel %vm920_vm1, %v1557_v16, %v919_v58  ;;  %v606_v8 = vpop.f32.mrb[13].mxu0  ;;  %v676_v9 = vpop.f32.mrb[13].mxu1  ;;  %1301 = vrcp.f32 %v799_v7  ;;  %v1595_v23 = vadd.f32 %v799_v7, %v798_v42  ;;  %v1597_v25 = vmax.f32 %v774_v12, 1e-07 }
 0x12c   : > { %v924_v10 = vsel %vm922_vm2, %v923_v57, %v921_v5  ;;  %v1581_v13 = vpop.f32.mrb[14].mxu0  ;;  %v1583_v14 = vpop.f32.mrb[14].mxu1  ;;  %1303 = vrsqrt.f32 %v1589_v20  ;;  %v1606_v31 = vadd.f32 %v799_v7, %v786_v24  ;;  %v1608_v33 = vmul.f32 %v799_v7, %v786_v24 }
 0x12d   : > { %v1292_v17 = vpop.eup %1291  ;;  %v1585_v18 = vmul.f32 2.0, %v924_v10  ;;  %v1591_v21 = vpop.f32.mrb[15].mxu0  ;;  %v709_v34 = vmul.f32 %v604_v2, %v604_v2  ;;  %v723_v40 = vmul.f32 %v674_v3, %v674_v3  ;;  %v749_v48 = vmul.f32 %v676_v9, %v676_v9 }
 0x12e   : > { %v1593_v22 = vpop.f32.mrb[15].mxu1  ;;  %v814_v16 = vmul.f32 %v1292_v17, %v784_v41  ;;  %v1294_v26 = vpop.eup %1293  ;;  %v735_v41 = vmul.f32 %v606_v8, %v606_v8  ;;  %v937_v55 = vand.u32 2147483648, %v1571_v52  ;;  %vm936_vm6 = vcmp.eq.f32.partialorder %v1571_v52, 0.0 }
 0x12f   : > { %v1016_v27 = vsub.f32 %v1554_v15, %v1585_v18  ;;  %v1296_v28 = vpop.eup %1295  ;;  %v926_v29 = vmul.f32 %v1294_v26, %v1562_v36  ;;  %vm941_vm7 = vcmp.eq.f32.partialorder %v1589_v20, inf  ;;  %vm943_vm8 = vcmp.eq.f32.partialorder %v1589_v20, 0.0 }
 0x130   : > { %1305 = vlog2.f32 %v814_v16  ;;  %v816_v32 = vmul.f32 %v1296_v28, %v785_v6  ;;  %v1298_v38 = vpop.eup %1297  ;;  %v761_v57 = vadd.f32 %v735_v41, %v709_v34  ;;  %v944_v2 = vand.u32 2147483648, %v1589_v20 }
 0x131   : > { %1307 = vrcp.f32 %v1597_v25  ;;  %v928_v39 = vsel %vm927_vm3, %v1562_v36, %v926_v29  ;;  %v933_v47 = vmul.f32 %v1298_v38, %v1571_v52  ;;  %vm948_vm9 = vcmp.eq.f32.partialorder %v1608_v33, inf }
 0x132   : > { %v1613_v42 = vpop.f32.mrb[16].mxu0  ;;  %v1615_v43 = vpop.f32.mrb[16].mxu1  ;;  %v931_v46 = vsel %vm929_vm4, %v930_v30, %v928_v39  ;;  %1309 = vlog2.f32 %v816_v32  ;;  %v787_v3 = vmax.f32 %v761_v57, 1e-07  ;;  %v750_v32 = vmul.f32 %v1593_v22, %v1593_v22 }
 0x133   : > { %v1300_v44 = vpop.eup %1299  ;;  %v1620_v49 = vpop.f32.mrb[17].mxu0  ;;  %v1004_v54 = vmul.f32 2.0, %v931_v46  ;;  %1311 = vrsqrt.f32 %v1608_v33  ;;  %v935_v36 = vsel %vm934_vm5, %v1571_v52, %v933_v47  ;;  %v775_v52 = vadd.f32 %v749_v48, %v723_v40 }
 0x134   : > { %v1622_v50 = vpop.f32.mrb[17].mxu1  ;;  %v838_v53 = vmul.f32 0.6931472, %v1300_v44  ;;  %v1626_v56 = vpop.f32.mrb[18].mxu0  ;;  %v938_v61 = vsel %vm936_vm6, %v937_v55, %v935_v36  ;;  %v1647_v10 = vadd.f32 %v1597_v25, %v787_v3  ;;  %v1650_v11 = vmul.f32 %v1597_v25, %v787_v3 }
 0x135   : > { %v1632_v58 = vpop.f32.mrb[18].mxu1  ;;  %v1634_v59 = vpop.f32.mrb[19].mxu0  ;;  %v1017_v60 = vsub.f32 %v1560_v35, %v1004_v54  ;;  %v1005_v1 = vmul.f32 2.0, %v938_v61  ;;  %v710_v35 = vmul.f32 %v1581_v13, %v1581_v13  ;;  %v801_v12 = vmax.f32 %v775_v52, 1e-07 }
 0x136   : > { %v1639_v62 = vpop.f32.mrb[19].mxu1  ;;  %v1302_v63 = vpop.eup %1301  ;;  %v861_v5 = vand.u32 2147483647, %v838_v53  ;;  %v736_v13 = vmul.f32 %v1591_v21, %v1591_v21  ;;  %vm950_vm10 = vcmp.eq.f32.partialorder %v1608_v33, 0.0  ;;  %vm955_vm11 = vcmp.eq.f32.partialorder %v1650_v11, inf }
 0x137   : > { %v1030_v6 = vmax.f32 %v1017_v60, 0.0  ;;  %v818_v7 = vmul.f32 %v1302_v63, %v786_v24  ;;  %v1304_v8 = vpop.eup %1303  ;;  %v1018_v9 = vsub.f32 %v1569_v51, %v1005_v1  ;;  %v724_v24 = vmul.f32 %v1583_v14, %v1583_v14 }
 0x138   : > { %v940_v16 = vmul.f32 %v1304_v8, %v1589_v20  ;;  %v874_v14 = vmul.f32 0.5, %v861_v5  ;;  %v1077_v57 = vadd.f32 %v801_v12, %v1597_v25  ;;  %v762_v63 = vadd.f32 %v736_v13, %v710_v35 }
 0x139   : > { %1313 = vlog2.f32 %v818_v7  ;;  %v1031_v30 = vmax.f32 %v1018_v9, 0.0  ;;  %v776_v1 = vadd.f32 %v750_v32, %v724_v24  ;;  %vm957_vm12 = vcmp.eq.f32.partialorder %v1650_v11, 0.0 }
 0x13a   : > { %v1306_v17 = vpop.eup %1305  ;;  %v1657_v26 = vpop.f32.mrb[20].mxu0  ;;  %1315 = vrsqrt.f32 %v1650_v11  ;;  %v942_v21 = vsel %vm941_vm7, %v1589_v20, %v940_v16  ;;  %v1689_v52 = vadd.f32 %v1077_v57, %v1595_v23  ;;  %v788_v25 = vmax.f32 %v762_v63, 1e-07 }
 0x13b   : > { %v1659_v51 = vpop.f32.mrb[20].mxu1  ;;  %v1308_v28 = vpop.eup %1307  ;;  %v840_v29 = vmul.f32 0.6931472, %v1306_v17  ;;  %v1676_v47 = vadd.f32 %v1031_v30, %v1030_v6  ;;  %v945_v22 = vsel %vm943_vm8, %v944_v2, %v942_v21  ;;  %1317 = vrcp.f32 %v801_v12 }
 0x13c   : > { %v1664_v34 = vpop.f32.mrb[21].mxu0  ;;  %v1666_v38 = vpop.f32.mrb[21].mxu1  ;;  %v820_v39 = vmul.f32 %v1308_v28, %v787_v3  ;;  %v1006_v36 = vmul.f32 2.0, %v945_v22  ;;  %v951_v2 = vand.u32 2147483648, %v1608_v33  ;;  %v802_v7 = vmax.f32 %v776_v1, 1e-07 }
 0x13d   : > { %v1672_v40 = vpop.f32.mrb[22].mxu0  ;;  %v1674_v41 = vpop.f32.mrb[22].mxu1  ;;  %v862_v46 = vand.u32 2147483647, %v840_v29  ;;  %v725_v23 = vmul.f32 %v1615_v43, %v1615_v43  ;;  %v1705_v17 = vadd.f32 %v801_v12, %v788_v25  ;;  %v1707_v16 = vmul.f32 %v801_v12, %v788_v25 }
 0x13e   : > { %v1310_v44 = vpop.eup %1309  ;;  %v1680_v48 = vpop.f32.mrb[23].mxu0  ;;  %1319 = vlog2.f32 %v820_v39  ;;  %v1019_v20 = vsub.f32 %v1587_v19, %v1006_v36  ;;  %v711_v19 = vmul.f32 %v1613_v42, %v1613_v42  ;;  %v958_v13 = vand.u32 2147483648, %v1650_v11 }
 0x13f   : > { %v1682_v53 = vpop.f32.mrb[23].mxu1  ;;  %v1312_v54 = vpop.eup %1311  ;;  %v842_v55 = vmul.f32 0.6931472, %v1310_v44  ;;  %v875_v60 = vmul.f32 0.5, %v862_v46  ;;  %1321 = vrcp.f32 %v802_v7  ;;  %v737_v42 = vmul.f32 %v1620_v49, %v1620_v49 }
 0x140   : > { %v947_v61 = vmul.f32 %v1312_v54, %v1608_v33  ;;  %v751_v43 = vmul.f32 %v1622_v50, %v1622_v50  ;;  %1323 = vrsqrt.f32 %v1707_v16  ;;  %v1032_v21 = vmax.f32 %v1019_v20, 0.0 }
 0x141   : > { %v863_v3 = vand.u32 2147483647, %v842_v55  ;;  %v1691_v5 = vadd.f32 %v875_v60, %v874_v14  ;;  %v763_v44 = vadd.f32 %v737_v42, %v711_v19  ;;  %v712_v49 = vmul.f32 %v1626_v56, %v1626_v56 }
 0x142   : > { %v949_v6 = vsel %vm948_vm9, %v1608_v33, %v947_v61  ;;  %v1703_v8 = vpop.f32.mrb[24].mxu0  ;;  %v777_v54 = vadd.f32 %v751_v43, %v725_v23  ;;  %v738_v55 = vmul.f32 %v1634_v59, %v1634_v59  ;;  %v726_v61 = vmul.f32 %v1632_v58, %v1632_v58 }
 0x143   : > { %v952_v35 = vsel %vm950_vm10, %v951_v2, %v949_v6  ;;  %v1709_v24 = vpop.f32.mrb[25].mxu0  ;;  %v1314_v33 = vpop.eup %1313  ;;  %v876_v30 = vmul.f32 0.5, %v863_v3  ;;  %v789_v60 = vmax.f32 %v763_v44, 1e-07  ;;  %v752_v3 = vmul.f32 %v1639_v62, %v1639_v62 }
 0x144   : > { %v1007_v9 = vmul.f32 2.0, %v952_v35  ;;  %v1717_v28 = vpop.f32.mrb[26].mxu0  ;;  %v1316_v29 = vpop.eup %1315  ;;  %v844_v12 = vmul.f32 0.6931472, %v1314_v33  ;;  %v764_v35 = vadd.f32 %v738_v55, %v712_v49  ;;  %vm962_vm13 = vcmp.eq.f32.partialorder %v1707_v16, inf }
 0x145   : > { %v1721_v14 = vpop.f32.mrb[27].mxu0  ;;  %v954_v39 = vmul.f32 %v1316_v29, %v1650_v11  ;;  %v1318_v46 = vpop.eup %1317  ;;  %v1739_v20 = vadd.f32 %v802_v7, %v789_v60  ;;  %v1741_v2 = vmul.f32 %v802_v7, %v789_v60  ;;  %vm964_vm14 = vcmp.eq.f32.partialorder %v1707_v16, 0.0 }
 0x146   : > { %v1020_v32 = vsub.f32 %v1606_v31, %v1007_v9  ;;  %v864_v50 = vand.u32 2147483647, %v844_v12  ;;  %v822_v57 = vmul.f32 %v1318_v46, %v788_v25  ;;  %v803_v25 = vmax.f32 %v777_v54, 1e-07 }
 0x147   : > { %v956_v31 = vsel %vm955_vm11, %v1650_v11, %v954_v39  ;;  %v965_v23 = vand.u32 2147483648, %v1707_v16  ;;  %v790_v33 = vmax.f32 %v764_v35, 1e-07  ;;  %v713_v43 = vmul.f32 %v1657_v26, %v1657_v26 }
 0x148   : > { %v1033_v22 = vmax.f32 %v1020_v32, 0.0  ;;  %v1320_v36 = vpop.eup %1319  ;;  %v877_v63 = vmul.f32 0.5, %v864_v50  ;;  %v959_v56 = vsel %vm957_vm12, %v958_v13, %v956_v31  ;;  %1325 = vlog2.f32 %v822_v57 }
 0x149   : > { %v1008_v59 = vmul.f32 2.0, %v959_v56  ;;  %v846_v58 = vmul.f32 0.6931472, %v1320_v36  ;;  %1327 = vrsqrt.f32 %v1741_v2  ;;  %v1322_v11 = vpop.eup %1321  ;;  %v1078_v62 = vadd.f32 %v803_v25, %v802_v7 }
 0x14a   : > { %v1733_v1 = vadd.f32 %v1033_v22, %v1032_v21  ;;  %v1743_v6 = vadd.f32 %v877_v63, %v876_v30  ;;  %1329 = vrcp.f32 %v803_v25  ;;  %v824_v9 = vmul.f32 %v1322_v11, %v789_v60  ;;  %v1324_v42 = vpop.eup %1323 }
 0x14b   : > { %v1021_v19 = vsub.f32 %v1647_v10, %v1008_v59  ;;  %v778_v13 = vadd.f32 %v752_v3, %v726_v61  ;;  %v727_v10 = vmul.f32 %v1659_v51, %v1659_v51  ;;  %v739_v29 = vmul.f32 %v1664_v34, %v1664_v34 }
 0x14c   : > { %v753_v30 = vmul.f32 %v1666_v38, %v1666_v38  ;;  %v865_v12 = vand.u32 2147483647, %v846_v58  ;;  %v961_v7 = vmul.f32 %v1324_v42, %v1707_v16  ;;  %v1759_v32 = vadd.f32 %v803_v25, %v790_v33 }
 0x14d   : > { %v1761_v21 = vmul.f32 %v803_v25, %v790_v33  ;;  %1331 = vlog2.f32 %v824_v9  ;;  %v804_v39 = vmax.f32 %v778_v13, 1e-07  ;;  %v765_v44 = vadd.f32 %v739_v29, %v713_v43 }
 0x14e   : > { %v779_v26 = vadd.f32 %v753_v30, %v727_v10  ;;  %v963_v51 = vsel %vm962_vm13, %v1707_v16, %v961_v7  ;;  %vm969_vm15 = vcmp.eq.f32.partialorder %v1741_v2, inf  ;;  %v714_v34 = vmul.f32 %v1672_v40, %v1672_v40 }
 0x14f   : > { %1333 = vrsqrt.f32 %v1761_v21  ;;  %v966_v38 = vsel %vm964_vm14, %v965_v23, %v963_v51  ;;  %vm971_vm0 = vcmp.eq.f32.partialorder %v1741_v2, 0.0  ;;  %v791_v49 = vmax.f32 %v765_v44, 1e-07 }
 0x150   : > { %1335 = vrcp.f32 %v804_v39  ;;  %v1009_v50 = vmul.f32 2.0, %v966_v38  ;;  %v805_v22 = vmax.f32 %v779_v26, 1e-07  ;;  %v728_v54 = vmul.f32 %v1674_v41, %v1674_v41 }
 0x151   : > { %v740_v55 = vmul.f32 %v1680_v48, %v1680_v48  ;;  %v1777_v31 = vadd.f32 %v804_v39, %v791_v49  ;;  %v1779_v40 = vmul.f32 %v804_v39, %v791_v49  ;;  %v754_v16 = vmul.f32 %v1682_v53, %v1682_v53 }
 0x152   : > { %v1326_v46 = vpop.eup %1325  ;;  %v1022_v60 = vsub.f32 %v1705_v17, %v1009_v50  ;;  %1337 = vrcp.f32 %v805_v22  ;;  %v1079_v61 = vadd.f32 %v805_v22, %v804_v39  ;;  %v878_v3 = vmul.f32 0.5, %v865_v12 }
 0x153   : > { %v848_v36 = vmul.f32 0.6931472, %v1326_v46  ;;  %v1328_v57 = vpop.eup %1327  ;;  %v766_v63 = vadd.f32 %v740_v55, %v714_v34  ;;  %1339 = vrsqrt.f32 %v1779_v40  ;;  %v1034_v48 = vmax.f32 %v1021_v19, 0.0 }
 0x154   : > { %v1330_v56 = vpop.eup %1329  ;;  %v968_v59 = vmul.f32 %v1328_v57, %v1741_v2  ;;  %v1035_v25 = vmax.f32 %v1022_v60, 0.0  ;;  %v972_v35 = vand.u32 2147483648, %v1741_v2  ;;  %v780_v23 = vadd.f32 %v754_v16, %v728_v54 }
 0x155   : > { %v866_v41 = vand.u32 2147483647, %v848_v36  ;;  %v826_v58 = vmul.f32 %v1330_v56, %v790_v33  ;;  %v792_v17 = vmax.f32 %v766_v63, 1e-07  ;;  %v1082_v42 = vadd.f32 %v1079_v61, %v1078_v62 }
 0x156   : > { %v970_v53 = vsel %vm969_vm15, %v1741_v2, %v968_v59  ;;  %v1061_v9 = vadd.f32 %v1035_v25, %v1034_v48  ;;  %vm976_vm1 = vcmp.eq.f32.partialorder %v1761_v21, inf  ;;  %v806_v44 = vmax.f32 %v780_v23, 1e-07 }
 0x157   : > { %v879_v11 = vmul.f32 0.5, %v866_v41  ;;  %v973_v13 = vsel %vm971_vm0, %v972_v35, %v970_v53  ;;  %1341 = vlog2.f32 %v826_v58  ;;  %v1332_v43 = vpop.eup %1331  ;;  %v1792_v29 = vadd.f32 %v805_v22, %v792_v17 }
 0x158   : > { %v1010_v19 = vmul.f32 2.0, %v973_v13  ;;  %v1795_v33 = vadd.f32 %v1061_v9, %v1733_v1  ;;  %v1798_v12 = vmul.f32 %v805_v22, %v792_v17  ;;  %v979_v26 = vand.u32 2147483648, %v1761_v21 }
 0x159   : > { %v1045_v10 = vadd.f32 %v879_v11, %v878_v3  ;;  %v1334_v30 = vpop.eup %1333  ;;  %v715_v1 = vmul.f32 %v1703_v8, %v1703_v8  ;;  %v850_v34 = vmul.f32 0.6931472, %v1332_v43  ;;  %vm978_vm2 = vcmp.eq.f32.partialorder %v1761_v21, 0.0 }
 0x15a   : > { %v1336_v7 = vpop.eup %1335  ;;  %v1023_v2 = vsub.f32 %v1739_v20, %v1010_v19  ;;  %v975_v62 = vmul.f32 %v1334_v30, %v1761_v21  ;;  %1343 = vrsqrt.f32 %v1798_v12  ;;  %v1811_v20 = vadd.f32 %v1082_v42, %v806_v44 }
 0x15b   : > { %v1801_v39 = vadd.f32 %v1045_v10, %v1743_v6  ;;  %v828_v51 = vmul.f32 %v1336_v7, %v791_v49  ;;  %v741_v50 = vmul.f32 %v1709_v24, %v1709_v24  ;;  %v716_v8 = vmul.f32 %v1717_v28, %v1717_v28 }
 0x15c   : > { %v977_v38 = vsel %vm976_vm1, %v1761_v21, %v975_v62  ;;  %v1338_v6 = vpop.eup %1337  ;;  %vm983_vm3 = vcmp.eq.f32.partialorder %v1779_v40, inf  ;;  %v742_v36 = vmul.f32 %v1721_v14, %v1721_v14  ;;  %vm985_vm4 = vcmp.eq.f32.partialorder %v1779_v40, 0.0 }
 0x15d   : > { %v980_v46 = vsel %vm978_vm2, %v979_v26, %v977_v38  ;;  %1345 = vlog2.f32 %v828_v51  ;;  %v1340_v22 = vpop.eup %1339  ;;  %v830_v54 = vmul.f32 %v1338_v6, %v792_v17  ;;  %v767_v21 = vadd.f32 %v741_v50, %v715_v1  ;;  %v1213_v50 = vld [vmem:[%s1514_s11 + $0x10] sm:$0xff] }
 0x15e   : > { %v1011_v49 = vmul.f32 2.0, %v980_v46  ;;  %1347 = vrcp.f32 %v806_v44  ;;  %v982_v55 = vmul.f32 %v1340_v22, %v1779_v40  ;;  %v986_v24 = vand.u32 2147483648, %v1779_v40 }
 0x15f   : > { %1349 = vlog2.f32 %v830_v54  ;;  %v867_v60 = vand.u32 2147483647, %v850_v34  ;;  %v793_v28 = vmax.f32 %v767_v21, 1e-07  ;;  %v768_v63 = vadd.f32 %v742_v36, %v716_v8 }
 0x160   : > { %v1024_v16 = vsub.f32 %v1759_v32, %v1011_v49  ;;  %v984_v61 = vsel %vm983_vm3, %v1779_v40, %v982_v55  ;;  %v1036_v56 = vmax.f32 %v1023_v2, 0.0  ;;  %v781_v53 = vmax.f32 %v1548_v0, 1e-07 }
 0x161   : > { %v1342_v57 = vpop.eup %1341  ;;  %v987_v59 = vsel %vm985_vm4, %v986_v24, %v984_v61  ;;  %v1825_v25 = vadd.f32 %v806_v44, %v793_v28  ;;  %v910_v14 = vmul.f32 %v806_v44, %v793_v28  ;;  %v794_v32 = vmax.f32 %v768_v63, 1e-07 }
 0x162   : > { %v852_v3 = vmul.f32 0.6931472, %v1342_v57  ;;  %v1037_v41 = vmax.f32 %v1024_v16, 0.0  ;;  %v1012_v48 = vmul.f32 2.0, %v987_v59  ;;  %vm990_vm5 = vcmp.eq.f32.partialorder %v1798_v12, inf }
 0x163   : > { %1351 = vrsqrt.f32 %v910_v14  ;;  %v880_v40 = vmul.f32 0.5, %v867_v60  ;;  %v993_v42 = vand.u32 2147483648, %v1798_v12  ;;  %v1832_v43 = vadd.f32 %v794_v32, %v781_v53 }
 0x164   : > { %v868_v35 = vand.u32 2147483647, %v852_v3  ;;  %v1062_v58 = vadd.f32 %v1037_v41, %v1036_v56  ;;  %v1344_v11 = vpop.eup %1343  ;;  %v1025_v17 = vsub.f32 %v1777_v31, %v1012_v48  ;;  %1353 = vrcp.f32 %v794_v32 }
 0x165   : > { %v989_v9 = vmul.f32 %v1344_v11, %v1798_v12  ;;  %v898_v10 = vmul.f32 %v794_v32, %v781_v53  ;;  %v1074_v19 = vadd.f32 %v1550_v4, %v794_v32  ;;  %vm992_vm6 = vcmp.eq.f32.partialorder %v1798_v12, 0.0 }
 0x166   : > { %v881_v23 = vmul.f32 0.5, %v868_v35  ;;  %v1038_v46 = vmax.f32 %v1025_v17, 0.0  ;;  %vm997_vm7 = vcmp.eq.f32.partialorder %v910_v14, inf  ;;  %vm999_vm8 = vcmp.eq.f32.partialorder %v910_v14, 0.0 }
 0x167   : > { %v1346_v13 = vpop.eup %1345  ;;  %v991_v31 = vsel %vm990_vm5, %v1798_v12, %v989_v9  ;;  %1355 = vrsqrt.f32 %v898_v10  ;;  %v1080_v34 = vadd.f32 %v1564_v37, %v1074_v19  ;;  %vm913_vm9 = vcmp.eq.f32.partialorder %v898_v10, inf }
 0x168   : > { %v1348_v30 = vpop.eup %1347  ;;  %v1046_v0 = vadd.f32 %v881_v23, %v880_v40  ;;  %v854_v7 = vmul.f32 0.6931472, %v1346_v13  ;;  %v994_v2 = vsel %vm992_vm6, %v993_v42, %v991_v31  ;;  %v916_v56 = vand.u32 2147483648, %v898_v10 }
 0x169   : > { %v832_v62 = vmul.f32 %v1348_v30, %v793_v28  ;;  %v1350_v44 = vpop.eup %1349  ;;  %v1013_v26 = vmul.f32 2.0, %v994_v2  ;;  %v1083_v6 = vadd.f32 %v1689_v52, %v1080_v34  ;;  %vm915_vm10 = vcmp.eq.f32.partialorder %v898_v10, 0.0  ;;  %v1211_v2 = vld [vmem:[%s1514_s11 + $0x8] sm:$0xff] }
 0x16a   : > { %v869_v51 = vand.u32 2147483647, %v854_v7  ;;  %v856_v1 = vmul.f32 0.6931472, %v1350_v44  ;;  %v1029_v23 = vmax.f32 %v1016_v27, 0.0 }
 0x16b   : > { %1357 = vlog2.f32 %v832_v62  ;;  %v1026_v4 = vsub.f32 %v1792_v29, %v1013_v26  ;;  %v1085_v8 = vadd.f32 %v1811_v20, %v1083_v6  ;;  %v1000_v29 = vand.u32 2147483648, %v910_v14  ;;  %v1041_v26 = vld [vmem:[%s1514_s11] sm:$0xff] }
 0x16c   : > { %1359 = vlog2.f32 %v1566_v45  ;;  %v870_v38 = vand.u32 2147483647, %v856_v1  ;;  %v882_v49 = vmul.f32 0.5, %v869_v51 }
 0x16d   : > { %v1039_v12 = vmax.f32 %v1026_v4, 0.0  ;;  %v1352_v22 = vpop.eup %1351  ;;  %v1086_v45 = vadd.f32 %v1213_v50, %v1085_v8 }
 0x16e   : > { %v883_v54 = vmul.f32 0.5, %v870_v38  ;;  %v1354_v55 = vpop.eup %1353  ;;  %v996_v36 = vmul.f32 %v1352_v22, %v910_v14 }
 0x16f   : > { %v1063_v21 = vadd.f32 %v1039_v12, %v1038_v46  ;;  %v808_v16 = vmul.f32 %v1354_v55, %v781_v53  ;;  %1214 = vst [vmem:[%s1514_s11 + $0x10] sm:$0xff] %v1086_v45 }
 0x170   : > { %v1047_v37 = vadd.f32 %v883_v54, %v882_v49  ;;  %v998_v24 = vsel %vm997_vm7, %v910_v14, %v996_v36 }
 0x171   : > { %v1066_v52 = vadd.f32 %v1063_v21, %v1062_v58  ;;  %v1356_v57 = vpop.eup %1355  ;;  %v1001_v60 = vsel %vm999_vm8, %v1000_v29, %v998_v24  ;;  %1361 = vlog2.f32 %v808_v16 }
 0x172   : > { %v1050_v61 = vadd.f32 %v1047_v37, %v1046_v0  ;;  %v1014_v28 = vmul.f32 2.0, %v1001_v60  ;;  %v912_v63 = vmul.f32 %v1356_v57, %v898_v10 }
 0x174   : > { %v1027_v41 = vsub.f32 %v1825_v25, %v1014_v28  ;;  %v914_v59 = vsel %vm913_vm9, %v898_v10, %v912_v63 }
 0x175   : > { %v1358_v20 = vpop.eup %1357  ;;  %v917_v32 = vsel %vm915_vm10, %v916_v56, %v914_v59 }
 0x176   : > { %v858_v3 = vmul.f32 0.6931472, %v1358_v20  ;;  %v1360_v48 = vpop.eup %1359  ;;  %v1040_v14 = vmax.f32 %v1027_v41, 0.0  ;;  %v1002_v58 = vmul.f32 2.0, %v917_v32 }
 0x177   : > { %v836_v11 = vmul.f32 0.6931472, %v1360_v48 }
 0x178   : > { %v871_v35 = vand.u32 2147483647, %v858_v3  ;;  %v1068_v17 = vadd.f32 %v1066_v52, %v1040_v14  ;;  %v1015_v40 = vsub.f32 %v1832_v43, %v1002_v58 }
 0x179   : > { %v860_v42 = vand.u32 2147483647, %v836_v11 }
 0x17a   : > { %v884_v53 = vmul.f32 0.5, %v871_v35  ;;  %v1028_v13 = vmax.f32 %v1015_v40, 0.0 }
 0x17b   : > { %v1362_v25 = vpop.eup %1361  ;;  %v873_v7 = vmul.f32 0.5, %v860_v42 }
 0x17c   : > { %v1052_v9 = vadd.f32 %v1050_v61, %v884_v53  ;;  %v834_v10 = vmul.f32 0.6931472, %v1362_v25  ;;  %v1058_v19 = vadd.f32 %v1029_v23, %v1028_v13 }
 0x17e   : > { %v859_v30 = vand.u32 2147483647, %v834_v10  ;;  %v1064_v0 = vadd.f32 %v1676_v47, %v1058_v19 }
 0x180   : > { %v872_v31 = vmul.f32 0.5, %v859_v30  ;;  %v1067_v43 = vadd.f32 %v1795_v33, %v1064_v0 }
 0x182   : > { %v1042_v62 = vadd.f32 %v873_v7, %v872_v31  ;;  %v1069_v15 = vadd.f32 %v1068_v17, %v1067_v43 }
 0x184   : > { %v1048_v18 = vadd.f32 %v1691_v5, %v1042_v62  ;;  %v1070_v27 = vadd.f32 %v1211_v2, %v1069_v15 }
 0x186   : > { %v1051_v44 = vadd.f32 %v1801_v39, %v1048_v18  ;;  %1212 = vst [vmem:[%s1514_s11 + $0x8] sm:$0xff] %v1070_v27 }
 0x188   : > { %v1053_v51 = vadd.f32 %v1052_v9, %v1051_v44 }
 0x18a   : > { %v1054_v1 = vadd.f32 %v1053_v51, %v1041_v26 }
 0x18c   : > { %1055 = vst [vmem:[%s1514_s11] sm:$0xff] %v1054_v1 }
 0x18d PF: > { %s12_s13 = sadd.s32 1, %s1403_s13   ;;  %s1875_s9 = smov %s1391_s10 }
 0x18e   : > { %p9_p10 = scmp.ge.s32.totalorder %s12_s13, 4   ;;  %s1876_s10 = smov %s1457_s17 }
 0x18f   : > { %s1877_s11 = smov %s1399_s12  ;;  %s1878_s12 = smov %s1880_s14 }
 0x190   :  { %11 = sbr.rel (!%p9_p10) target bundleno = 3 (0x3), region = 157 }
 0x197   :  { %1109 = vsyncmov [#allocation3] }
 0x19a   :  { %s1110_s30 = vpop.sfrf %1109 }
 0x19b   :  { %p1217_p11 = scmp.ne.s32.totalorder %s1110_s30, 0 }
 0x19d   :  { %1114 = shalt.err (%p1217_p11)  }

</bundles_post_ra>
